<compile_context>
chip_gen: v5e
topology: v5e:2x2
jax: 0.10.0
libtpu: 0.0.40
codegen_flags: <defaults>
</compile_context>

<pallas_src>
import jax
import jax.numpy as jnp
from jax.experimental import pallas as pl
from jax.experimental.pallas import tpu as pltpu


def _cdiv(a, b):
    return -(-a // b)


def _make_kernel(*, sz, sp, Dzm, Dpm, Cin, Cpad, P, Qp_max, q_tile, excess_p):
    K = Dzm * Dpm * Cin
    lz = q_tile + Dzm - 1

    def kernel(x_ref, w_ref, b_ref, o_ref, patch_ref):
        # x_ref    : (1, Zpad, Ppad, Cin)        bf16, halo-padded ORIGINAL input (no dilation)
        # w_ref    : (K, nphase*Cpad)            bf16, all taps x phases in one matrix
        # b_ref    : (1, Cpad)                   f32 bias (zero-padded to lane width)
        # o_ref    : (1, nphase, q_tile, P, Cpad) f32, phase-blocked output tile
        # patch_ref: (q_tile, Qp_max, K)         bf16 VMEM scratch (im2col patch)
        t = pl.program_id(1)
        z0 = pl.multiple_of(t * q_tile, q_tile)

        # Build the im2col patch once.  The phi-shifted window (unaligned sublane
        # offset) is loaded once per phi tap 'e' and reused for every z tap 'd'
        # (z slicing of the value is cheap leading-dim addressing).
        for e in range(Dpm):
            po = Dpm - 1 - e
            slab = x_ref[0, pl.ds(z0, lz), po:po + Qp_max, :]          # (lz, Qp_max, Cin)
            for d in range(Dzm):
                c0 = (d * Dpm + e) * Cin
                patch_ref[:, :, c0:c0 + Cin] = slab[(Dzm - 1 - d):(Dzm - 1 - d) + q_tile]

        # Single MXU matmul over all (z-tap, phi-tap, Cin) x (phase, Cout).
        res = jnp.einsum("zpk,kc->zpc", patch_ref[...], w_ref[...],
                         preferred_element_type=jnp.float32)           # (q_tile, Qp_max, nphase*Cpad)

        bvec = b_ref[...].reshape(1, 1, Cpad)

        # Per-phase epilogue: cylindrical phi fold + bias, written with direct
        # sliced stores (lane-dense Cpad last dim -> unmasked vst).
        for rz in range(sz):
            for rp in range(sp):
                ph = rz * sp + rp
                pr = res[:, :, ph * Cpad:(ph + 1) * Cpad]              # (q_tile, Qp_max, Cpad)
                ep = excess_p[rp]
                if ep > 0:
                    head = pr[:, 0:ep, :] + pr[:, P:P + ep, :] + bvec
                    o_ref[0, ph, :, 0:ep, :] = head.astype(o_ref.dtype)
                if ep < P:
                    mid = pr[:, ep:P, :] + bvec
                    o_ref[0, ph, :, ep:P, :] = mid.astype(o_ref.dtype)

    return kernel


def cylinder_conv_transpose(x, weights, bias, k, stride, pad_z=False, z_tile=None):
    """x: (N, C_in, Z, Phi) NCHW (PyTorch convention). Returns (N, C_out, Z_out, Phi_out)."""
    kz, kp = k
    sz, sp = stride
    if kz < sz:
        raise NotImplementedError(f"haven't considered kz<sz yet (got kz={kz} sz={sz})")
    if kp < sp:
        raise NotImplementedError("kp<sp not implemented")

    N, Cin, Z, P = x.shape
    Cout = weights.shape[1]

    Zout = (Z - 1) * sz + kz
    Pout = (P - 1) * sp + kp
    excess = kp - sp
    if excess > 0 and Pout < 2 * excess:
        raise ValueError("phi extent too small for the cylindrical wrap fold")
    npad = (kz - sz) // 2 if (pad_z and (kz - sz) > 0) else 0
    # TODO(synk): PyTorch's x[..., 0:-0, :] (pad_z=True, kz-sz==1 -> npad==0) yields an
    # empty tensor in the reference module; that degenerate edge case is not reproduced.

    # sub-pixel (phase) decomposition parameters
    Dzm = _cdiv(kz, sz)                 # z taps per phase (padded to the max over phases)
    Dpm = _cdiv(kp, sp)                 # phi taps per phase
    nphase = sz * sp
    Cpad = _cdiv(Cout, 128) * 128       # lane-dense output channels
    K = Dzm * Dpm * Cin
    Qz_max = Z + Dzm - 1                # per-phase z extent (max over phases)
    Qp_max = P + Dpm - 1                # per-phase phi extent (max over phases)

    q_tile = min(int(z_tile), Qz_max) if z_tile else Qz_max
    Tz = _cdiv(Qz_max, q_tile)
    Qz_pad = Tz * q_tile

    # ---- glue: layout + halo pad (NO stride zero-insertion), weight/bias prep ----
    x_nhwc = jnp.transpose(x, (0, 2, 3, 1)).astype(jnp.bfloat16)        # (N, Z, P, Cin)
    x_pad = jnp.pad(x_nhwc, ((0, 0),
                             (Dzm - 1, Qz_pad - Z),
                             (Dpm - 1, Dpm - 1),
                             (0, 0)))
    Zpad = Qz_pad + Dzm - 1
    Ppad = P + 2 * (Dpm - 1)

    # conv_transpose weight (Cin, Cout, kz, kp) -> one (K, nphase*Cpad) matrix:
    #   row (d, e, ci) , col (rz, rp, co)  <->  W[ci, co, d*sz+rz, e*sp+rp]
    # phantom taps (a>=kz or b>=kp) are zero-padded; the spatial flip is absorbed
    # in the phase formulation.
    w = jnp.transpose(weights, (2, 3, 0, 1)).astype(jnp.float32)         # (kz, kp, Cin, Cout)
    w = jnp.pad(w, ((0, Dzm * sz - kz), (0, Dpm * sp - kp), (0, 0), (0, Cpad - Cout)))
    w = w.reshape(Dzm, sz, Dpm, sp, Cin, Cpad)
    w = jnp.transpose(w, (0, 2, 4, 1, 3, 5))                             # (d, e, ci, rz, rp, co)
    w_all = w.reshape(K, nphase * Cpad).astype(jnp.bfloat16)

    b_pad = jnp.zeros((1, Cpad), jnp.float32).at[0, :Cout].set(bias.astype(jnp.float32))

    # per-phi-phase number of wrapped (folded) columns
    excess_p = [len(range(rp, excess, sp)) for rp in range(sp)]

    kernel = _make_kernel(sz=sz, sp=sp, Dzm=Dzm, Dpm=Dpm, Cin=Cin, Cpad=Cpad,
                          P=P, Qp_max=Qp_max, q_tile=q_tile, excess_p=excess_p)

    y = pl.pallas_call(
        kernel,
        out_shape=jax.ShapeDtypeStruct((N, nphase, Qz_pad, P, Cpad), jnp.float32),
        grid=(N, Tz),
        in_specs=[
            pl.BlockSpec((1, Zpad, Ppad, Cin), lambda n, t: (n, 0, 0, 0)),
            pl.BlockSpec((K, nphase * Cpad), lambda n, t: (0, 0)),
            pl.BlockSpec((1, Cpad), lambda n, t: (0, 0)),
        ],
        out_specs=pl.BlockSpec((1, nphase, q_tile, P, Cpad), lambda n, t: (n, 0, t, 0, 0)),
        scratch_shapes=[pltpu.VMEM((q_tile, Qp_max, K), jnp.bfloat16)],
        compiler_params=pltpu.CompilerParams(
            dimension_semantics=("parallel", "parallel")),
    )(x_pad, w_all, b_pad)

    # ---- glue: phase interleave (pure layout), pad_z crop, channel un-pad, NCHW ----
    y = y.reshape(N, sz, sp, Qz_pad, P, Cpad)
    y = jnp.transpose(y, (0, 3, 1, 4, 2, 5)).reshape(N, Qz_pad * sz, P * sp, Cpad)
    y = y[:, npad:Zout - npad, :, :Cout]
    return jnp.transpose(y, (0, 3, 1, 2))                                # back to NCHW


# ---------------- pure-JAX reference (matches F.conv_transpose2d semantics) ----------------
def _ref_forward(x, weights, bias, k, stride, pad_z):
    kz, kp = k
    sz, sp = stride
    w_t = jnp.transpose(weights[:, :, ::-1, ::-1], (1, 0, 2, 3))         # (Cout, Cin, kz, kp)
    y = jax.lax.conv_general_dilated(
        x, w_t, window_strides=(1, 1),
        padding=[(kz - 1, kz - 1), (kp - 1, kp - 1)],
        lhs_dilation=(sz, sp),
        dimension_numbers=("NCHW", "OIHW", "NCHW"),
        precision=jax.lax.Precision.HIGHEST)
    if pad_z and kz - sz > 0:
        npad = (kz - sz) // 2
        if npad > 0:
            y = y[..., npad:-npad, :]
    if kp > sp:
        excess = kp - sp
        xa = y[..., :excess]
        xb = y[..., excess:-excess]
        xc = y[..., -excess:]
        y = jnp.concatenate([xa + xc, xb], axis=-1)
    return y + bias.reshape(1, -1, 1, 1)


if __name__ == "__main__":
    key = jax.random.PRNGKey(0)
    kx, kw, kb = jax.random.split(key, 3)

    N, Cin, Cout, Z, P = 2, 4, 6, 8, 12
    x = jax.random.normal(kx, (N, Cin, Z, P), jnp.float32)

    # (k, stride, pad_z, z_tile) configs: default module config, pad_z, strided, kp==sp
    configs = [
        ((5, 3), (1, 1), False, None),
        ((5, 3), (1, 1), True, 8),     # exercises multi z-tile path + crop
        ((5, 3), (2, 2), True, 4),     # strided phases + multi z-tile + crop
        ((5, 3), (2, 2), False, None),
        ((3, 2), (1, 2), False, None), # kp == sp (no phi fold), mixed strides
    ]

    for (kk, ss, pz, zt) in configs:
        kz_, kp_ = kk
        # xavier_uniform_ for weight shape (Cin, Cout, kz, kp)
        bound = (6.0 / ((Cin + Cout) * kz_ * kp_)) ** 0.5
        weights = jax.random.uniform(kw, (Cin, Cout, kz_, kp_), jnp.float32, -bound, bound)
        bias = 0.1 * jax.random.normal(kb, (Cout,), jnp.float32)

        out = jax.block_until_ready(
            cylinder_conv_transpose(x, weights, bias, kk, ss, pad_z=pz, z_tile=zt))

        # exact-semantics check against a reference fed with the same bf16-rounded operands
        x16 = x.astype(jnp.bfloat16).astype(jnp.float32)
        w16 = weights.astype(jnp.bfloat16).astype(jnp.float32)
        ref16 = _ref_forward(x16, w16, bias, kk, ss, pz)
        # sanity check against the full-f32 reference (looser: kernel uses bf16 MXU operands)
        ref32 = _ref_forward(x, weights, bias, kk, ss, pz)

        assert out.shape == ref32.shape, (out.shape, ref32.shape)
        assert jnp.allclose(out, ref16, atol=1e-3, rtol=1e-3), \
            f"mismatch (bf16 ref) for k={kk} stride={ss} pad_z={pz} z_tile={zt}"
        assert jnp.allclose(out, ref32, atol=5e-2, rtol=5e-2), \
            f"mismatch (f32 ref) for k={kk} stride={ss} pad_z={pz} z_tile={zt}"

    print("KERNEL_OK")
</pallas_src>

<mosaic_0001>
module attributes {stable_mosaic.version = 11 : i64} {
  func.func @kernel(%arg0: i32, %arg1: i32, %arg2: memref<1x16x16x4xbf16, #tpu.memory_space<vmem>>, %arg3: memref<60x128xbf16, #tpu.memory_space<vmem>>, %arg4: memref<1x128xf32, #tpu.memory_space<vmem>>, %arg5: memref<1x1x12x12x128xf32, #tpu.memory_space<vmem>>, %arg6: memref<12x14x60xbf16, #tpu.memory_space<vmem>>) attributes {dimension_semantics = [#tpu.dimension_semantics<parallel>, #tpu.dimension_semantics<parallel>], iteration_bounds = array<i64: 2, 1>, scalar_prefetch = 0 : i64, scratch_operands = 1 : i64, tpu.core_type = #tpu.core_type<tc>, window_params = [{transform_indices = @transform_0, window_bounds = array<i64: 1, 16, 16, 4>}, {pipeline_mode = #tpu.pipeline_mode<synchronous>, transform_indices = @transform_1, window_bounds = array<i64: 60, 128>}, {pipeline_mode = #tpu.pipeline_mode<synchronous>, transform_indices = @transform_2, window_bounds = array<i64: 1, 128>}, {transform_indices = @transform_3, window_bounds = array<i64: 1, 1, 12, 12, 128>}]} {
    %c12_i32 = arith.constant 12 : i32
    %0 = arith.muli %arg1, %c12_i32 : i32
    %1 = tpu.assume_multiple %0, 12 : i32
    %c0 = arith.constant 0 : index
    %2 = arith.index_cast %1 : i32 to index
    %c2 = arith.constant 2 : index
    %c0_0 = arith.constant 0 : index
    %3 = vector.load %arg2[%c0, %2, %c2, %c0_0] : memref<1x16x16x4xbf16, #tpu.memory_space<vmem>>, vector<1x16x14x4xbf16>
    %4 = vector.shape_cast %3 : vector<1x16x14x4xbf16> to vector<16x14x4xbf16>
    %5 = vector.extract_strided_slice %4 {offsets = [4, 0, 0], sizes = [12, 14, 4], strides = [1, 1, 1]} : vector<16x14x4xbf16> to vector<12x14x4xbf16>
    %c0_1 = arith.constant 0 : index
    %c0_2 = arith.constant 0 : index
    %c0_3 = arith.constant 0 : index
    %6 = vector.load %arg6[%c0_1, %c0_2, %c0_3] : memref<12x14x60xbf16, #tpu.memory_space<vmem>>, vector<12x14x4xbf16>
    tpu.vector_store %arg6[%c0_1, %c0_2, %c0_3], %5 {strides = array<i32>} : memref<12x14x60xbf16, #tpu.memory_space<vmem>>, vector<12x14x4xbf16>,
    %7 = vector.extract_strided_slice %4 {offsets = [3, 0, 0], sizes = [12, 14, 4], strides = [1, 1, 1]} : vector<16x14x4xbf16> to vector<12x14x4xbf16>
    %c0_4 = arith.constant 0 : index
    %c0_5 = arith.constant 0 : index
    %c12 = arith.constant 12 : index
    %8 = vector.load %arg6[%c0_4, %c0_5, %c12] : memref<12x14x60xbf16, #tpu.memory_space<vmem>>, vector<12x14x4xbf16>
    tpu.vector_store %arg6[%c0_4, %c0_5, %c12], %7 {strides = array<i32>} : memref<12x14x60xbf16, #tpu.memory_space<vmem>>, vector<12x14x4xbf16>,
    %9 = vector.extract_strided_slice %4 {offsets = [2, 0, 0], sizes = [12, 14, 4], strides = [1, 1, 1]} : vector<16x14x4xbf16> to vector<12x14x4xbf16>
    %c0_6 = arith.constant 0 : index
    %c0_7 = arith.constant 0 : index
    %c24 = arith.constant 24 : index
    %10 = vector.load %arg6[%c0_6, %c0_7, %c24] : memref<12x14x60xbf16, #tpu.memory_space<vmem>>, vector<12x14x4xbf16>
    tpu.vector_store %arg6[%c0_6, %c0_7, %c24], %9 {strides = array<i32>} : memref<12x14x60xbf16, #tpu.memory_space<vmem>>, vector<12x14x4xbf16>,
    %11 = vector.extract_strided_slice %4 {offsets = [1, 0, 0], sizes = [12, 14, 4], strides = [1, 1, 1]} : vector<16x14x4xbf16> to vector<12x14x4xbf16>
    %c0_8 = arith.constant 0 : index
    %c0_9 = arith.constant 0 : index
    %c36 = arith.constant 36 : index
    %12 = vector.load %arg6[%c0_8, %c0_9, %c36] : memref<12x14x60xbf16, #tpu.memory_space<vmem>>, vector<12x14x4xbf16>
    tpu.vector_store %arg6[%c0_8, %c0_9, %c36], %11 {strides = array<i32>} : memref<12x14x60xbf16, #tpu.memory_space<vmem>>, vector<12x14x4xbf16>,
    %13 = vector.extract_strided_slice %4 {offsets = [0, 0, 0], sizes = [12, 14, 4], strides = [1, 1, 1]} : vector<16x14x4xbf16> to vector<12x14x4xbf16>
    %c0_10 = arith.constant 0 : index
    %c0_11 = arith.constant 0 : index
    %c48 = arith.constant 48 : index
    %14 = vector.load %arg6[%c0_10, %c0_11, %c48] : memref<12x14x60xbf16, #tpu.memory_space<vmem>>, vector<12x14x4xbf16>
    tpu.vector_store %arg6[%c0_10, %c0_11, %c48], %13 {strides = array<i32>} : memref<12x14x60xbf16, #tpu.memory_space<vmem>>, vector<12x14x4xbf16>,
    %c0_12 = arith.constant 0 : index
    %15 = arith.index_cast %1 : i32 to index
    %c1 = arith.constant 1 : index
    %c0_13 = arith.constant 0 : index
    %16 = vector.load %arg2[%c0_12, %15, %c1, %c0_13] : memref<1x16x16x4xbf16, #tpu.memory_space<vmem>>, vector<1x16x14x4xbf16>
    %17 = vector.shape_cast %16 : vector<1x16x14x4xbf16> to vector<16x14x4xbf16>
    %18 = vector.extract_strided_slice %17 {offsets = [4, 0, 0], sizes = [12, 14, 4], strides = [1, 1, 1]} : vector<16x14x4xbf16> to vector<12x14x4xbf16>
    %c0_14 = arith.constant 0 : index
    %c0_15 = arith.constant 0 : index
    %c4 = arith.constant 4 : index
    %19 = vector.load %arg6[%c0_14, %c0_15, %c4] : memref<12x14x60xbf16, #tpu.memory_space<vmem>>, vector<12x14x4xbf16>
    tpu.vector_store %arg6[%c0_14, %c0_15, %c4], %18 {strides = array<i32>} : memref<12x14x60xbf16, #tpu.memory_space<vmem>>, vector<12x14x4xbf16>,
    %20 = vector.extract_strided_slice %17 {offsets = [3, 0, 0], sizes = [12, 14, 4], strides = [1, 1, 1]} : vector<16x14x4xbf16> to vector<12x14x4xbf16>
    %c0_16 = arith.constant 0 : index
    %c0_17 = arith.constant 0 : index
    %c16 = arith.constant 16 : index
    %21 = vector.load %arg6[%c0_16, %c0_17, %c16] : memref<12x14x60xbf16, #tpu.memory_space<vmem>>, vector<12x14x4xbf16>
    tpu.vector_store %arg6[%c0_16, %c0_17, %c16], %20 {strides = array<i32>} : memref<12x14x60xbf16, #tpu.memory_space<vmem>>, vector<12x14x4xbf16>,
    %22 = vector.extract_strided_slice %17 {offsets = [2, 0, 0], sizes = [12, 14, 4], strides = [1, 1, 1]} : vector<16x14x4xbf16> to vector<12x14x4xbf16>
    %c0_18 = arith.constant 0 : index
    %c0_19 = arith.constant 0 : index
    %c28 = arith.constant 28 : index
    %23 = vector.load %arg6[%c0_18, %c0_19, %c28] : memref<12x14x60xbf16, #tpu.memory_space<vmem>>, vector<12x14x4xbf16>
    tpu.vector_store %arg6[%c0_18, %c0_19, %c28], %22 {strides = array<i32>} : memref<12x14x60xbf16, #tpu.memory_space<vmem>>, vector<12x14x4xbf16>,
    %24 = vector.extract_strided_slice %17 {offsets = [1, 0, 0], sizes = [12, 14, 4], strides = [1, 1, 1]} : vector<16x14x4xbf16> to vector<12x14x4xbf16>
    %c0_20 = arith.constant 0 : index
    %c0_21 = arith.constant 0 : index
    %c40 = arith.constant 40 : index
    %25 = vector.load %arg6[%c0_20, %c0_21, %c40] : memref<12x14x60xbf16, #tpu.memory_space<vmem>>, vector<12x14x4xbf16>
    tpu.vector_store %arg6[%c0_20, %c0_21, %c40], %24 {strides = array<i32>} : memref<12x14x60xbf16, #tpu.memory_space<vmem>>, vector<12x14x4xbf16>,
    %26 = vector.extract_strided_slice %17 {offsets = [0, 0, 0], sizes = [12, 14, 4], strides = [1, 1, 1]} : vector<16x14x4xbf16> to vector<12x14x4xbf16>
    %c0_22 = arith.constant 0 : index
    %c0_23 = arith.constant 0 : index
    %c52 = arith.constant 52 : index
    %27 = vector.load %arg6[%c0_22, %c0_23, %c52] : memref<12x14x60xbf16, #tpu.memory_space<vmem>>, vector<12x14x4xbf16>
    tpu.vector_store %arg6[%c0_22, %c0_23, %c52], %26 {strides = array<i32>} : memref<12x14x60xbf16, #tpu.memory_space<vmem>>, vector<12x14x4xbf16>,
    %c0_24 = arith.constant 0 : index
    %28 = arith.index_cast %1 : i32 to index
    %c0_25 = arith.constant 0 : index
    %c0_26 = arith.constant 0 : index
    %29 = vector.load %arg2[%c0_24, %28, %c0_25, %c0_26] : memref<1x16x16x4xbf16, #tpu.memory_space<vmem>>, vector<1x16x14x4xbf16>
    %30 = vector.shape_cast %29 : vector<1x16x14x4xbf16> to vector<16x14x4xbf16>
    %31 = vector.extract_strided_slice %30 {offsets = [4, 0, 0], sizes = [12, 14, 4], strides = [1, 1, 1]} : vector<16x14x4xbf16> to vector<12x14x4xbf16>
    %c0_27 = arith.constant 0 : index
    %c0_28 = arith.constant 0 : index
    %c8 = arith.constant 8 : index
    %32 = vector.load %arg6[%c0_27, %c0_28, %c8] : memref<12x14x60xbf16, #tpu.memory_space<vmem>>, vector<12x14x4xbf16>
    tpu.vector_store %arg6[%c0_27, %c0_28, %c8], %31 {strides = array<i32>} : memref<12x14x60xbf16, #tpu.memory_space<vmem>>, vector<12x14x4xbf16>,
    %33 = vector.extract_strided_slice %30 {offsets = [3, 0, 0], sizes = [12, 14, 4], strides = [1, 1, 1]} : vector<16x14x4xbf16> to vector<12x14x4xbf16>
    %c0_29 = arith.constant 0 : index
    %c0_30 = arith.constant 0 : index
    %c20 = arith.constant 20 : index
    %34 = vector.load %arg6[%c0_29, %c0_30, %c20] : memref<12x14x60xbf16, #tpu.memory_space<vmem>>, vector<12x14x4xbf16>
    tpu.vector_store %arg6[%c0_29, %c0_30, %c20], %33 {strides = array<i32>} : memref<12x14x60xbf16, #tpu.memory_space<vmem>>, vector<12x14x4xbf16>,
    %35 = vector.extract_strided_slice %30 {offsets = [2, 0, 0], sizes = [12, 14, 4], strides = [1, 1, 1]} : vector<16x14x4xbf16> to vector<12x14x4xbf16>
    %c0_31 = arith.constant 0 : index
    %c0_32 = arith.constant 0 : index
    %c32 = arith.constant 32 : index
    %36 = vector.load %arg6[%c0_31, %c0_32, %c32] : memref<12x14x60xbf16, #tpu.memory_space<vmem>>, vector<12x14x4xbf16>
    tpu.vector_store %arg6[%c0_31, %c0_32, %c32], %35 {strides = array<i32>} : memref<12x14x60xbf16, #tpu.memory_space<vmem>>, vector<12x14x4xbf16>,
    %37 = vector.extract_strided_slice %30 {offsets = [1, 0, 0], sizes = [12, 14, 4], strides = [1, 1, 1]} : vector<16x14x4xbf16> to vector<12x14x4xbf16>
    %c0_33 = arith.constant 0 : index
    %c0_34 = arith.constant 0 : index
    %c44 = arith.constant 44 : index
    %38 = vector.load %arg6[%c0_33, %c0_34, %c44] : memref<12x14x60xbf16, #tpu.memory_space<vmem>>, vector<12x14x4xbf16>
    tpu.vector_store %arg6[%c0_33, %c0_34, %c44], %37 {strides = array<i32>} : memref<12x14x60xbf16, #tpu.memory_space<vmem>>, vector<12x14x4xbf16>,
    %39 = vector.extract_strided_slice %30 {offsets = [0, 0, 0], sizes = [12, 14, 4], strides = [1, 1, 1]} : vector<16x14x4xbf16> to vector<12x14x4xbf16>
    %c0_35 = arith.constant 0 : index
    %c0_36 = arith.constant 0 : index
    %c56 = arith.constant 56 : index
    %40 = vector.load %arg6[%c0_35, %c0_36, %c56] : memref<12x14x60xbf16, #tpu.memory_space<vmem>>, vector<12x14x4xbf16>
    tpu.vector_store %arg6[%c0_35, %c0_36, %c56], %39 {strides = array<i32>} : memref<12x14x60xbf16, #tpu.memory_space<vmem>>, vector<12x14x4xbf16>,
    %c0_37 = arith.constant 0 : index
    %c0_38 = arith.constant 0 : index
    %c0_39 = arith.constant 0 : index
    %41 = vector.load %arg6[%c0_37, %c0_38, %c0_39] : memref<12x14x60xbf16, #tpu.memory_space<vmem>>, vector<12x14x60xbf16>
    %c0_40 = arith.constant 0 : index
    %c0_41 = arith.constant 0 : index
    %42 = vector.load %arg3[%c0_40, %c0_41] : memref<60x128xbf16, #tpu.memory_space<vmem>>, vector<60x128xbf16>
    "tpu.trace_start"() <{level = 10 : i32, message = "zpk,kc->zpc"}> : () -> ()
    %cst = arith.constant dense<0.000000e+00> : vector<12x14x128xf32>
    %43 = tpu.matmul %41, %42, %cst {dimension_numbers = #tpu.dot_dimension_numbers<[2], [0], [0, 1], [1], [0, 0, 0, 1, 1, 1], [], []>} : vector<12x14x60xbf16>, vector<60x128xbf16>, vector<12x14x128xf32> -> vector<12x14x128xf32>
    "tpu.trace_stop"() : () -> ()
    %c0_42 = arith.constant 0 : index
    %c0_43 = arith.constant 0 : index
    %44 = vector.load %arg4[%c0_42, %c0_43] : memref<1x128xf32, #tpu.memory_space<vmem>>, vector<1x128xf32>
    %45 = vector.shape_cast %44 : vector<1x128xf32> to vector<1x1x128xf32>
    %46 = vector.extract_strided_slice %43 {offsets = [0, 0, 0], sizes = [12, 2, 128], strides = [1, 1, 1]} : vector<12x14x128xf32> to vector<12x2x128xf32>
    %47 = vector.extract_strided_slice %43 {offsets = [0, 12, 0], sizes = [12, 2, 128], strides = [1, 1, 1]} : vector<12x14x128xf32> to vector<12x2x128xf32>
    %48 = arith.addf %46, %47 : vector<12x2x128xf32>
    %49 = vector.broadcast %45 : vector<1x1x128xf32> to vector<12x2x128xf32>
    %50 = arith.addf %48, %49 : vector<12x2x128xf32>
    %c0_44 = arith.constant 0 : index
    %c0_45 = arith.constant 0 : index
    %c0_46 = arith.constant 0 : index
    %c0_47 = arith.constant 0 : index
    %c0_48 = arith.constant 0 : index
    %51 = vector.load %arg5[%c0_44, %c0_45, %c0_46, %c0_47, %c0_48] : memref<1x1x12x12x128xf32, #tpu.memory_space<vmem>>, vector<1x1x12x2x128xf32>
    %52 = vector.shape_cast %51 : vector<1x1x12x2x128xf32> to vector<12x2x128xf32>
    %53 = vector.shape_cast %50 : vector<12x2x128xf32> to vector<1x1x12x2x128xf32>
    tpu.vector_store %arg5[%c0_44, %c0_45, %c0_46, %c0_47, %c0_48], %53 {strides = array<i32>} : memref<1x1x12x12x128xf32, #tpu.memory_space<vmem>>, vector<1x1x12x2x128xf32>,
    %54 = vector.extract_strided_slice %43 {offsets = [0, 2, 0], sizes = [12, 10, 128], strides = [1, 1, 1]} : vector<12x14x128xf32> to vector<12x10x128xf32>
    %55 = vector.broadcast %45 : vector<1x1x128xf32> to vector<12x10x128xf32>
    %56 = arith.addf %54, %55 : vector<12x10x128xf32>
    %c0_49 = arith.constant 0 : index
    %c0_50 = arith.constant 0 : index
    %c0_51 = arith.constant 0 : index
    %c2_52 = arith.constant 2 : index
    %c0_53 = arith.constant 0 : index
    %57 = vector.load %arg5[%c0_49, %c0_50, %c0_51, %c2_52, %c0_53] : memref<1x1x12x12x128xf32, #tpu.memory_space<vmem>>, vector<1x1x12x10x128xf32>
    %58 = vector.shape_cast %57 : vector<1x1x12x10x128xf32> to vector<12x10x128xf32>
    %59 = vector.shape_cast %56 : vector<12x10x128xf32> to vector<1x1x12x10x128xf32>
    tpu.vector_store %arg5[%c0_49, %c0_50, %c0_51, %c2_52, %c0_53], %59 {strides = array<i32>} : memref<1x1x12x12x128xf32, #tpu.memory_space<vmem>>, vector<1x1x12x10x128xf32>,
    return
  }
  func.func @transform_0(%arg0: i32, %arg1: i32) -> (i32, i32, i32, i32) {
    %c0_i32 = arith.constant 0 : i32
    %c0_i32_0 = arith.constant 0 : i32
    %c0_i32_1 = arith.constant 0 : i32
    %c0_i32_2 = arith.constant 0 : i32
    return %arg0, %c0_i32, %c0_i32_0, %c0_i32_1 : i32, i32, i32, i32
  }
  func.func @transform_1(%arg0: i32, %arg1: i32) -> (i32, i32) {
    %c0_i32 = arith.constant 0 : i32
    %c0_i32_0 = arith.constant 0 : i32
    %c0_i32_1 = arith.constant 0 : i32
    return %c0_i32, %c0_i32_0 : i32, i32
  }
  func.func @transform_2(%arg0: i32, %arg1: i32) -> (i32, i32) {
    %c0_i32 = arith.constant 0 : i32
    %c0_i32_0 = arith.constant 0 : i32
    %c0_i32_1 = arith.constant 0 : i32
    return %c0_i32, %c0_i32_0 : i32, i32
  }
  func.func @transform_3(%arg0: i32, %arg1: i32) -> (i32, i32, i32, i32, i32) {
    %c0_i32 = arith.constant 0 : i32
    %c0_i32_0 = arith.constant 0 : i32
    %c0_i32_1 = arith.constant 0 : i32
    %c0_i32_2 = arith.constant 0 : i32
    return %arg0, %c0_i32, %arg1, %c0_i32_0, %c0_i32_1 : i32, i32, i32, i32, i32
  }
}

</mosaic_0001>

<bundles_post_ra>
// kernel: tpu_custom_call.1
= control target key start
LH: loop header
LB: loop body
LE: loop exit
PB: predicated region body
PF: predicated region fallthrough
CT: control target
= control target key end

     0   :  { %s3491_s12 = smov 0   ;;  %s3493_s13 = smov 0   ;;  %s5209_s0 = inlined_call_operand.vmem [shape: bf16[2,16,16,4], index: 0, kind: input, shape index: {}]   ;;  %s5210_s1 = inlined_call_operand.vmem [shape: bf16[60,128], index: 1, kind: input, shape index: {}]   ;;  %s5211_s2 = inlined_call_operand.vmem [shape: f32[1,128], index: 2, kind: input, shape index: {}]   ;;  %s5212_s3 = inlined_call_operand.vmem [shape: f32[2,1,12,12,128], index: 3, kind: output, shape index: {}]  }
   0x1   :  { %s3495_s14 = smov 0  }
   0x2 LB: > { %s25_s15 = sadd.s32 1, %s3451_s13  ;;  %p3326_p0 = scmp.ge.s32.totalorder %s3455_s14, 1  ;;  %s3455_s14 = sphi %s3495_s14, %s13_s14   ;;  %s3451_s13 = sphi %s3493_s13, %s5218_s13   ;;  %s3447_s12 = sphi %s3491_s12, %s5217_s12  }
   0x3   : > { %p27_p1 = scmp.ge.s32.totalorder %s25_s15, 2  ;;  %p151_p2 = scmp.lt.s32.totalorder %s3455_s14, 3 }
   0x5   : > { %s5220_s15 = smov (%p27_p1, %s25_s15), 0  ;;  %p152_p3 = pnand %p3326_p0, %p151_p2 }
   0x6   : > { %p180_p4 = scmp.lt.s32.totalorder (!%p152_p3), %s3447_s12, 1  ;;  %s3457_s20 = smov (!%p152_p3), 12  }
   0x7   : > { %155 = sbr.rel (%p152_p3) target bundleno = 1199 (0x4af), region = 32  ;;  %s3458_s21 = smov (!%p152_p3), 24  }
   0x8   : > { %s3459_s22 = smov (!%p152_p3), 36   ;;  %s3460_s23 = smov (!%p152_p3), 48  }
   0x9   : > { %s3461_s24 = smov (!%p152_p3), 4   ;;  %s3462_s25 = smov (!%p152_p3), 16  }
   0xa   : > { %s3463_s26 = smov (!%p152_p3), 28   ;;  %s3464_s27 = smov (!%p152_p3), 40  }
   0xb   : > { %s3465_s28 = smov (!%p152_p3), 52   ;;  %s3466_s29 = smov (!%p152_p3), 8  }
   0xc   : > { %s5222_s12 = smov (!%p180_p4, %s3447_s12), 1  ;;  %vm257_vm0 = vcmask 1042432   ;;  %vm258_vm1 = vcmask 1046532   ;;  %vm344_vm3 = vcmask 27648   ;;  %vm346_vm4 = vcmask 26624   ;;  %s3467_s30 = smov 20  }
   0xd   : > { %s3375_s16 = sshll.u32 %s5222_s12, 7  ;;  %vm3517_vm2 = vmor %vm257_vm0, %vm258_vm1  ;;  %vm449_vm5 = vcmask 126048   ;;  %vm451_vm6 = vcmask 125024   ;;  %vm554_vm7 = vcmask 224448   ;;  %vm556_vm8 = vcmask 223424   ;;  %s3468_s4 = smov 32  }
   0xe   : > { %s3515_s19 = scalar_lea.vmem %s5209_s0, %s3375_s16  ;;  %vm659_vm9 = vcmask 322848   ;;  %vm661_vm10 = vcmask 321824   ;;  %vm822_vm11 = vsmask.f32 3328  ;;  %vm823_vm12 = vsmask.f32 7440 }
   0xf   : > { %v209_v1 = vld [vmem:[%s3515_s19 + $0x20] sm:$0xe]  ;;  %v210_v2 = vld [vmem:[%s3515_s19 + $0x24] sm:$0xf]  ;;  %v207_v3 = vld [vmem:[%s3515_s19 + $0x18] sm:$0xe] }
  0x10   : > { %v3330_v4 = vrot.slane %v209_v1, 9  ;;  %v262_v5 = vrot.slane %v210_v2, 5  ;;  %v208_v6 = vld [vmem:[%s3515_s19 + $0x1c] sm:$0xf]  ;;  %v3342_v7 = vrot.slane %v207_v3, 9  ;;  %vm3931_vm13 = vmor %vm822_vm11, %vm823_vm12  ;;  %vm764_vm14 = vcmask 421248  }
  0x11   : > { %v374_v8 = vrot.slane %v208_v6, 5  ;;  %v211_v11 = vld [vmem:[%s3515_s19 + $0x28] sm:$0xe]  ;;  %v212_v12 = vld [vmem:[%s3515_s19 + $0x2c] sm:$0xf]  ;;  %vm766_vm15 = vcmask 420224  }
  0x12   : > { %v3527_v9 = vsel %vm3517_vm2, %v3330_v4, %v262_v5  ;;  %v3331_v13 = vrot.slane %v211_v11, 9  ;;  %v267_v14 = vrot.slane %v212_v12, 5  ;;  %v3539_v15 = vrot.slane %v262_v5, 4  ;;  %v214_v17 = vld [vmem:[%s3515_s19 + $0x34] sm:$0xf]  ;;  %s3469_s5 = smov 44  }
  0x13   : > { %381 = vrot.lane.b32.xlu1 %v3527_v9, %s3457_s20  ;;  %v3533_v10 = vsel %vm3517_vm2, %v3342_v7, %v374_v8  ;;  %v3541_v16 = vrot.slane %v374_v8, 4  ;;  %v213_v19 = vld [vmem:[%s3515_s19 + $0x30] sm:$0xe]  ;;  %v272_v20 = vrot.slane %v214_v17, 5  ;;  %v217_v23 = vld [vmem:[%s3515_s19 + $0x40] sm:$0xe] }
  0x14   : > { %377 = vrot.lane.b32.xlu0 %v3533_v10, %s3457_s20  ;;  %v3546_v18 = vsel %vm3517_vm2, %v3331_v13, %v267_v14  ;;  %v3332_v21 = vrot.slane %v213_v19, 9  ;;  %v3555_v22 = vrot.slane %v267_v14, 4  ;;  %v216_v25 = vld [vmem:[%s3515_s19 + $0x3c] sm:$0xf]  ;;  %v215_v26 = vld [vmem:[%s3515_s19 + $0x38] sm:$0xe] }
  0x15   : > { %385 = vrot.lane.b32.xlu2 %v3546_v18, %s3457_s20  ;;  %v3558_v24 = vrot.slane %v272_v20, 4  ;;  %v218_v28 = vld [vmem:[%s3515_s19 + $0x44] sm:$0xf]  ;;  %v3334_v29 = vrot.slane %v217_v23, 9  ;;  %v277_v30 = vrot.slane %v216_v25, 5  ;;  %v3333_v33 = vrot.slane %v215_v26, 9 }
  0x16   : > { %v3564_v27 = vsel %vm3517_vm2, %v3332_v21, %v272_v20  ;;  %v220_v31 = vld [vmem:[%s3515_s19 + $0x4c] sm:$0xf]  ;;  %v219_v32 = vld [vmem:[%s3515_s19 + $0x48] sm:$0xe]  ;;  %v223_v34 = vld [vmem:[%s3515_s19 + $0x58] sm:$0xe] }
  0x17   : > { %v224_v35 = vld [vmem:[%s3515_s19 + $0x5c] sm:$0xf]  ;;  %v226_v36 = vld [vmem:[%s3515_s19 + $0x64] sm:$0xf]  ;;  %v282_v37 = vrot.slane %v218_v28, 5  ;;  %v287_v43 = vrot.slane %v220_v31, 5  ;;  %v3588_v45 = vsel %vm3517_vm2, %v3333_v33, %v277_v30 }
  0x18   : > { %v229_v38 = vld [vmem:[%s3515_s19 + $0x70] sm:$0xe]  ;;  %v3580_v39 = vld [vmem:[%s3515_s19 + $0x74] sm:$0xf]  ;;  %v225_v40 = vld [vmem:[%s3515_s19 + $0x60] sm:$0xe] }
  0x19   : > { %v3340_v41 = vrot.slane %v229_v38, 9  ;;  %v312_v42 = vrot.slane %v3580_v39, 5  ;;  %345 = vst.msk [vmem:[#allocation2] sm:$0xf] %vm344_vm3, %v3527_v9  ;;  %v3335_v44 = vrot.slane %v219_v32, 9  ;;  %v3592_v46 = vrot.slane %v277_v30, 4 }
  0x1a   : > { %348 = vst.msk [vmem:[#allocation2 + $0x8] sm:$0xf] %vm344_vm3, %v3546_v18  ;;  %v3337_v47 = vrot.slane %v223_v34, 9  ;;  %v297_v48 = vrot.slane %v224_v35, 5  ;;  %v3600_v50 = vsel %vm3517_vm2, %v3334_v29, %v282_v37  ;;  %v222_v51 = vld [vmem:[%s3515_s19 + $0x54] sm:$0xf] }
  0x1b   : > { %383 = vrot.lane.b32.xlu1 %v3539_v15, %s3457_s20  ;;  %v313_v49 = vsel %vm3517_vm2, %v3340_v41, %v312_v42  ;;  %350 = vst.msk [vmem:[#allocation2 + $0x10] sm:$0xf] %vm344_vm3, %v3564_v27  ;;  %v302_v52 = vrot.slane %v226_v36, 5  ;;  %v3338_v53 = vrot.slane %v225_v40, 9  ;;  %v221_v54 = vld [vmem:[%s3515_s19 + $0x50] sm:$0xe]  ;;  %v3611_v55 = vsel %vm3517_vm2, %v3335_v44, %v287_v43 }
  0x1c   : > { %379 = vrot.lane.b32.xlu0 %v3541_v16, %s3457_s20  ;;  %366 = vst.msk [vmem:[#allocation2 + $0x50] sm:$0xf] %vm344_vm3, %v313_v49  ;;  %v3336_v56 = vrot.slane %v221_v54, 9  ;;  %v3619_v57 = vsel %vm3517_vm2, %v3337_v47, %v297_v48  ;;  %v292_v58 = vrot.slane %v222_v51, 5  ;;  %v3631_v60 = vrot.slane %v282_v37, 4  ;;  %s3470_s6 = smov 56  }
  0x1d   : > { %387 = vrot.lane.b32.xlu2 %v3555_v22, %s3457_s20  ;;  %352 = vst.msk [vmem:[#allocation2 + $0x18] sm:$0xf] %vm344_vm3, %v3588_v45  ;;  %v3627_v59 = vsel %vm3517_vm2, %v3338_v53, %v302_v52  ;;  %v3641_v62 = vrot.slane %v287_v43, 4  ;;  %v228_v63 = vld [vmem:[%s3515_s19 + $0x6c] sm:$0xf]  ;;  %v3663_v6 = vrot.slane %v297_v48, 4 }
  0x1e   : > { %354 = vst.msk [vmem:[#allocation2 + $0x20] sm:$0xf] %vm344_vm3, %v3600_v50  ;;  %v3637_v61 = vsel %vm3517_vm2, %v3336_v56, %v292_v58  ;;  %v3650_v1 = vrot.slane %v292_v58, 4  ;;  %v227_v2 = vld [vmem:[%s3515_s19 + $0x68] sm:$0xe]  ;;  %v307_v3 = vrot.slane %v228_v63, 5 }
  0x1f   : > { %356 = vst.msk [vmem:[#allocation2 + $0x28] sm:$0xf] %vm344_vm3, %v3611_v55  ;;  %v3339_v4 = vrot.slane %v227_v2, 9  ;;  %v3667_v7 = vrot.slane %v302_v52, 4  ;;  %v206_v11 = vld [vmem:[%s3515_s19 + $0x14] sm:$0xf] }
  0x20   : > { %360 = vst.msk [vmem:[#allocation2 + $0x38] sm:$0xf] %vm344_vm3, %v3619_v57  ;;  %v3675_v8 = vrot.slane %v307_v3, 4  ;;  %v205_v12 = vld [vmem:[%s3515_s19 + $0x10] sm:$0xe]  ;;  %v479_v13 = vrot.slane %v206_v11, 5 }
  0x21   : > { %362 = vst.msk [vmem:[#allocation2 + $0x40] sm:$0xf] %vm344_vm3, %v3627_v59  ;;  %v3661_v5 = vsel %vm3517_vm2, %v3339_v4, %v307_v3  ;;  %v3343_v14 = vrot.slane %v205_v12, 9  ;;  %v314_v17 = vrot.slane %v312_v42, 4  ;;  %v204_v29 = vld [vmem:[%s3515_s19 + $0xc] sm:$0xf] }
  0x22   : > { %358 = vst.msk [vmem:[#allocation2 + $0x30] sm:$0xf] %vm344_vm3, %v3637_v61  ;;  %v3684_v19 = vrot.slane %v479_v13, 4  ;;  %v203_v30 = vld [vmem:[%s3515_s19 + $0x8] sm:$0xe]  ;;  %v584_v31 = vrot.slane %v204_v29, 5 }
  0x23   : > { %391 = vrot.lane.b32.xlu1 %v3558_v24, %s3457_s20  ;;  %364 = vst.msk [vmem:[#allocation2 + $0x48] sm:$0xf] %vm344_vm3, %v3661_v5  ;;  %v3688_v20 = vsel %vm3517_vm2, %v3343_v14, %v479_v13  ;;  %v3344_v34 = vrot.slane %v203_v30, 9  ;;  %v231_v42 = vld [vmem:[%s3515_s19 + $0x78] sm:$0xe]  ;;  %vm1125_vm0 = vcmask 60448  }
  0x24   : > { %389 = vrot.lane.b32.xlu0 %v3564_v27, %s3457_s20  ;;  %349 = vst.msk [vmem:[#allocation2 + $0xc] sm:$0x7] %vm346_vm4, %v3555_v22  ;;  %v3768_v36 = vrot.slane %v584_v31, 4  ;;  %v232_v43 = vld [vmem:[%s3515_s19 + $0x7c] sm:$0xf]  ;;  %v3341_v47 = vrot.slane %v231_v42, 9 }
  0x25   : > { %393 = vrot.lane.b32.xlu2 %v3588_v45, %s3457_s20  ;;  %347 = vst.msk [vmem:[#allocation2 + $0x4] sm:$0x7] %vm346_vm4, %v3539_v15  ;;  %v3772_v37 = vsel %vm3517_vm2, %v3344_v34, %v584_v31  ;;  %v317_v48 = vrot.slane %v232_v43, 5  ;;  %v800_v42 = vld [vmem:[%s3515_s19 + $0x28] sm:$0xf]  ;;  %vm1127_vm1 = vcmask 59424  }
  0x26   : > { %351 = vst.msk [vmem:[#allocation2 + $0x14] sm:$0x7] %vm346_vm4, %v3558_v24  ;;  %vm1749_vm11 = vcmask 92224   ;;  %vm1847_vm12 = vcmask 191648  }
  0x27   : > { %353 = vst.msk [vmem:[#allocation2 + $0x1c] sm:$0x7] %vm346_vm4, %v3592_v46  ;;  %v318_v51 = vsel %vm3517_vm2, %v3341_v47, %v317_v48  ;;  %v319_v52 = vrot.slane %v317_v48, 4  ;;  %v802_v48 = vld [vmem:[%s3515_s19 + $0x30] sm:$0xf] }
  0x28   : > { %355 = vst.msk [vmem:[#allocation2 + $0x24] sm:$0x7] %vm346_vm4, %v3631_v60 }
  0x29   : > { %357 = vst.msk [vmem:[#allocation2 + $0x2c] sm:$0x7] %vm346_vm4, %v3641_v62 }
  0x2a   : > { %359 = vst.msk [vmem:[#allocation2 + $0x34] sm:$0x7] %vm346_vm4, %v3650_v1 }
  0x2b   : > { %397 = vrot.lane.b32.xlu1 %v3600_v50, %s3457_s20  ;;  %361 = vst.msk [vmem:[#allocation2 + $0x3c] sm:$0x7] %vm346_vm4, %v3663_v6 }
  0x2c   : > { %395 = vrot.lane.b32.xlu0 %v3592_v46, %s3457_s20  ;;  %363 = vst.msk [vmem:[#allocation2 + $0x44] sm:$0x7] %vm346_vm4, %v3667_v7 }
  0x2d   : > { %399 = vrot.lane.b32.xlu2 %v3631_v60, %s3457_s20  ;;  %365 = vst.msk [vmem:[#allocation2 + $0x4c] sm:$0x7] %vm346_vm4, %v3675_v8 }
  0x2e   : > { %367 = vst.msk [vmem:[#allocation2 + $0x54] sm:$0x7] %vm346_vm4, %v314_v17 }
  0x2f   : > { %368 = vst.msk [vmem:[#allocation2 + $0x58] sm:$0xf] %vm344_vm3, %v318_v51  ;;  %v848_v51 = vshll.u32 %v800_v42, 16  ;;  %vm1244_vm3 = vcmask 157824  }
  0x30   : > { %369 = vst.msk [vmem:[#allocation2 + $0x5c] sm:$0x7] %vm346_vm4, %v319_v52  ;;  %vm1359_vm4 = vcmask 257248  }
  0x33   : > { %403 = vrot.lane.b32.xlu1 %v3641_v62, %s3457_s20 }
  0x34   : > { %401 = vrot.lane.b32.xlu0 %v3611_v55, %s3457_s20 }
  0x35   : > { %405 = vrot.lane.b32.xlu2 %v3637_v61, %s3457_s20 }
  0x3b   : > { %409 = vrot.lane.b32.xlu1 %v3619_v57, %s3457_s20 }
  0x3c   : > { %407 = vrot.lane.b32.xlu0 %v3650_v1, %s3457_s20 }
  0x3d   : > { %411 = vrot.lane.b32.xlu2 %v3663_v6, %s3457_s20 }
  0x43   : > { %415 = vrot.lane.b32.xlu1 %v3667_v7, %s3457_s20 }
  0x44   : > { %413 = vrot.lane.b32.xlu0 %v3627_v59, %s3457_s20 }
  0x45   : > { %417 = vrot.lane.b32.xlu2 %v3661_v5, %s3457_s20 }
  0x4b   : > { %421 = vrot.lane.b32.xlu1 %v313_v49, %s3457_s20 }
  0x4c   : > { %419 = vrot.lane.b32.xlu0 %v3675_v8, %s3457_s20 }
  0x4d   : > { %423 = vrot.lane.b32.xlu2 %v314_v17, %s3457_s20 }
  0x53   : > { %484 = vrot.lane.b32.xlu1 %v3684_v19, %s3458_s21 }
  0x54   : > { %482 = vrot.lane.b32.xlu0 %v3688_v20, %s3458_s21 }
  0x55   : > { %486 = vrot.lane.b32.xlu2 %v3533_v10, %s3458_s21 }
  0x5b   : > { %490 = vrot.lane.b32.xlu1 %v3527_v9, %s3458_s21 }
  0x5c   : > { %488 = vrot.lane.b32.xlu0 %v3541_v16, %s3458_s21 }
  0x5d   : > { %492 = vrot.lane.b32.xlu2 %v3539_v15, %s3458_s21 }
  0x63   : > { %496 = vrot.lane.b32.xlu1 %v3555_v22, %s3458_s21 }
  0x64   : > { %494 = vrot.lane.b32.xlu0 %v3546_v18, %s3458_s21 }
  0x65   : > { %498 = vrot.lane.b32.xlu2 %v3564_v27, %s3458_s21 }
  0x6b   : > { %502 = vrot.lane.b32.xlu1 %v3588_v45, %s3458_s21 }
  0x6c   : > { %500 = vrot.lane.b32.xlu0 %v3558_v24, %s3458_s21 }
  0x6d   : > { %504 = vrot.lane.b32.xlu2 %v3592_v46, %s3458_s21 }
  0x6f   : > { %v386_v21 = vpop.permute.xlu2 %385 }
  0x70   : > { %455 = vst.msk [vmem:[#allocation2 + $0x10] sm:$0xf] %vm449_vm5, %v386_v21  ;;  %v202_v21 = vld [vmem:[%s3515_s19 + $0x4] sm:$0xf] }
  0x73   : > { %508 = vrot.lane.b32.xlu1 %v3631_v60, %s3458_s21 }
  0x74   : > { %506 = vrot.lane.b32.xlu0 %v3600_v50, %s3458_s21 }
  0x75   : > { %510 = vrot.lane.b32.xlu2 %v3611_v55, %s3458_s21 }
  0x77   : > { %v388_v23 = vpop.permute.xlu2 %387 }
  0x78   : > { %456 = vst.msk [vmem:[#allocation2 + $0x14] sm:$0x7] %vm451_vm6, %v388_v23  ;;  %v201_v23 = vld [vmem:[%s3515_s19] sm:$0xe] }
  0x79   : > { %v3345_v29 = vrot.slane %v201_v23, 9 }
  0x7b   : > { %514 = vrot.lane.b32.xlu1 %v3637_v61, %s3458_s21 }
  0x7c   : > { %512 = vrot.lane.b32.xlu0 %v3641_v62, %s3458_s21 }
  0x7d   : > { %516 = vrot.lane.b32.xlu2 %v3650_v1, %s3458_s21 }
  0x7f   : > { %v394_v25 = vpop.permute.xlu2 %393 }
  0x80   : > { %459 = vst.msk [vmem:[#allocation2 + $0x20] sm:$0xf] %vm449_vm5, %v394_v25  ;;  %v689_v25 = vrot.slane %v202_v21, 5 }
  0x82   : > { %v691_v31 = vrot.slane %v689_v25, 4 }
  0x83   : > { %520 = vrot.lane.b32.xlu1 %v3663_v6, %s3458_s21 }
  0x84   : > { %518 = vrot.lane.b32.xlu0 %v3619_v57, %s3458_s21 }
  0x85   : > { %v382_v26 = vpop.permute.xlu1 %381  ;;  %522 = vrot.lane.b32.xlu2 %v3627_v59, %s3458_s21 }
  0x86   : > { %453 = vst.msk [vmem:[#allocation2 + $0x8] sm:$0xf] %vm449_vm5, %v382_v26  ;;  %v378_v28 = vpop.permute.xlu0 %377 }
  0x87   : > { %450 = vst.msk [vmem:[#allocation2] sm:$0xf] %vm449_vm5, %v378_v28  ;;  %v400_v32 = vpop.permute.xlu2 %399 }
  0x88   : > { %462 = vst.msk [vmem:[#allocation2 + $0x2c] sm:$0x7] %vm451_vm6, %v400_v32  ;;  %v690_v32 = vsel %vm3517_vm2, %v3345_v29, %v689_v25  ;;  %v805_v29 = vld [vmem:[%s3515_s19 + $0x3c] sm:$0xf]  ;;  %vm1242_vm2 = vcmask 158848  }
  0x8b   : > { %526 = vrot.lane.b32.xlu1 %v3661_v5, %s3458_s21 }
  0x8c   : > { %524 = vrot.lane.b32.xlu0 %v3667_v7, %s3458_s21 }
  0x8d   : > { %v384_v33 = vpop.permute.xlu1 %383  ;;  %528 = vrot.lane.b32.xlu2 %v3675_v8, %s3458_s21 }
  0x8e   : > { %454 = vst.msk [vmem:[#allocation2 + $0xc] sm:$0x7] %vm451_vm6, %v384_v33  ;;  %v380_v35 = vpop.permute.xlu0 %379 }
  0x8f   : > { %452 = vst.msk [vmem:[#allocation2 + $0x4] sm:$0x7] %vm451_vm6, %v380_v35  ;;  %v406_v38 = vpop.permute.xlu2 %405 }
  0x90   : > { %465 = vst.msk [vmem:[#allocation2 + $0x38] sm:$0xf] %vm449_vm5, %v406_v38  ;;  %v798_v38 = vld [vmem:[%s3515_s19 + $0x20] sm:$0xf] }
  0x93   : > { %589 = vrot.lane.b32.xlu1 %v3768_v36, %s3459_s22 }
  0x94   : > { %587 = vrot.lane.b32.xlu0 %v3772_v37, %s3459_s22 }
  0x95   : > { %v392_v39 = vpop.permute.xlu1 %391  ;;  %591 = vrot.lane.b32.xlu2 %v3688_v20, %s3459_s22 }
  0x96   : > { %458 = vst.msk [vmem:[#allocation2 + $0x1c] sm:$0x7] %vm451_vm6, %v392_v39  ;;  %v390_v40 = vpop.permute.xlu0 %389  ;;  %v826_v39 = vshrl.u32 %v798_v38, 16 }
  0x97   : > { %457 = vst.msk [vmem:[#allocation2 + $0x18] sm:$0xf] %vm449_vm5, %v390_v40  ;;  %v412_v41 = vpop.permute.xlu2 %411  ;;  %v829_v40 = vshll.u32 %v798_v38, 16 }
  0x98   : > { %468 = vst.msk [vmem:[#allocation2 + $0x44] sm:$0x7] %vm451_vm6, %v412_v41 }
  0x99   : > { %v831_v47 = vrot.slane %v829_v40, 5 }
  0x9b   : > { %595 = vrot.lane.b32.xlu1 %v3533_v10, %s3459_s22 }
  0x9c   : > { %593 = vrot.lane.b32.xlu0 %v3684_v19, %s3459_s22 }
  0x9d   : > { %v398_v44 = vpop.permute.xlu1 %397  ;;  %597 = vrot.lane.b32.xlu2 %v3541_v16, %s3459_s22 }
  0x9e   : > { %461 = vst.msk [vmem:[#allocation2 + $0x28] sm:$0xf] %vm449_vm5, %v398_v44  ;;  %v396_v49 = vpop.permute.xlu0 %395  ;;  %v828_v44 = vrot.slane %v826_v39, 4 }
  0x9f   : > { %460 = vst.msk [vmem:[#allocation2 + $0x24] sm:$0x7] %vm451_vm6, %v396_v49  ;;  %v418_v53 = vpop.permute.xlu2 %417  ;;  %v845_v49 = vshrl.u32 %v800_v42, 16 }
  0xa0   : > { %471 = vst.msk [vmem:[#allocation2 + $0x50] sm:$0xf] %vm449_vm5, %v418_v53  ;;  %v864_v53 = vshrl.u32 %v802_v48, 16 }
  0xa3   : > { %601 = vrot.lane.b32.xlu1 %v3539_v15, %s3459_s22 }
  0xa4   : > { %599 = vrot.lane.b32.xlu0 %v3527_v9, %s3459_s22 }
  0xa5   : > { %v404_v54 = vpop.permute.xlu1 %403  ;;  %603 = vrot.lane.b32.xlu2 %v3546_v18, %s3459_s22 }
  0xa6   : > { %464 = vst.msk [vmem:[#allocation2 + $0x34] sm:$0x7] %vm451_vm6, %v404_v54  ;;  %v402_v56 = vpop.permute.xlu0 %401  ;;  %v867_v54 = vshll.u32 %v802_v48, 16 }
  0xa7   : > { %463 = vst.msk [vmem:[#allocation2 + $0x30] sm:$0xf] %vm449_vm5, %v402_v56  ;;  %v424_v58 = vpop.permute.xlu2 %423  ;;  %v832_v56 = vor.u32 %v831_v47, %v828_v44 }
  0xa8   : > { %474 = vst.msk [vmem:[#allocation2 + $0x5c] sm:$0x7] %vm451_vm6, %v424_v58  ;;  %v847_v58 = vrot.slane %v845_v49, 4 }
  0xab   : > { %607 = vrot.lane.b32.xlu1 %v3564_v27, %s3459_s22 }
  0xac   : > { %605 = vrot.lane.b32.xlu0 %v3555_v22, %s3459_s22 }
  0xad   : > { %v410_v63 = vpop.permute.xlu1 %409  ;;  %609 = vrot.lane.b32.xlu2 %v3558_v24, %s3459_s22 }
  0xae   : > { %467 = vst.msk [vmem:[#allocation2 + $0x40] sm:$0xf] %vm449_vm5, %v410_v63  ;;  %v408_v2 = vpop.permute.xlu0 %407  ;;  %v850_v63 = vrot.slane %v848_v51, 5 }
  0xaf   : > { %466 = vst.msk [vmem:[#allocation2 + $0x3c] sm:$0x7] %vm451_vm6, %v408_v2  ;;  %v487_v3 = vpop.permute.xlu2 %486 }
  0xb0   : > { %558 = vst.msk [vmem:[#allocation2 + $0x8] sm:$0xf] %vm554_vm7, %v487_v3  ;;  %v851_v21 = vor.u32 %v850_v63, %v847_v58  ;;  %v810_v58 = vld [vmem:[%s3515_s19 + $0x50] sm:$0xf] }
  0xb3   : > { %613 = vrot.lane.b32.xlu1 %v3592_v46, %s3459_s22 }
  0xb4   : > { %611 = vrot.lane.b32.xlu0 %v3588_v45, %s3459_s22 }
  0xb5   : > { %v416_v4 = vpop.permute.xlu1 %415  ;;  %615 = vrot.lane.b32.xlu2 %v3600_v50, %s3459_s22 }
  0xb6   : > { %470 = vst.msk [vmem:[#allocation2 + $0x4c] sm:$0x7] %vm451_vm6, %v416_v4  ;;  %v414_v5 = vpop.permute.xlu0 %413  ;;  %v866_v4 = vrot.slane %v864_v53, 4 }
  0xb7   : > { %469 = vst.msk [vmem:[#allocation2 + $0x48] sm:$0xf] %vm449_vm5, %v414_v5  ;;  %v493_v8 = vpop.permute.xlu2 %492  ;;  %v869_v5 = vrot.slane %v867_v54, 5  ;;  %v809_v54 = vld [vmem:[%s3515_s19 + $0x4c] sm:$0xf] }
  0xb8   : > { %561 = vst.msk [vmem:[#allocation2 + $0x14] sm:$0x7] %vm556_vm8, %v493_v8 }
  0xb9   : > { %v870_v23 = vor.u32 %v869_v5, %v866_v4 }
  0xbb   : > { %619 = vrot.lane.b32.xlu1 %v3611_v55, %s3459_s22 }
  0xbc   : > { %617 = vrot.lane.b32.xlu0 %v3631_v60, %s3459_s22 }
  0xbd   : > { %v422_v11 = vpop.permute.xlu1 %421  ;;  %621 = vrot.lane.b32.xlu2 %v3641_v62, %s3459_s22 }
  0xbe   : > { %473 = vst.msk [vmem:[#allocation2 + $0x58] sm:$0xf] %vm449_vm5, %v422_v11  ;;  %v420_v12 = vpop.permute.xlu0 %419  ;;  %vm1361_vm5 = vcmask 256224  }
  0xbf   : > { %472 = vst.msk [vmem:[#allocation2 + $0x54] sm:$0x7] %vm451_vm6, %v420_v12  ;;  %v499_v13 = vpop.permute.xlu2 %498  ;;  %v833_v12 = vrot.slane %v832_v56, 4  ;;  %vm1476_vm6 = vcmask 355648  }
  0xc0   : > { %564 = vst.msk [vmem:[#allocation2 + $0x20] sm:$0xf] %vm554_vm7, %v499_v13  ;;  %v803_v13 = vld [vmem:[%s3515_s19 + $0x34] sm:$0xf] }
  0xc1   : > { %v873_v25 = vshll.u32 %v803_v13, 16 }
  0xc3   : > { %625 = vrot.lane.b32.xlu1 %v3650_v1, %s3459_s22 }
  0xc4   : > { %623 = vrot.lane.b32.xlu0 %v3637_v61, %s3459_s22 }
  0xc5   : > { %v485_v14 = vpop.permute.xlu1 %484  ;;  %627 = vrot.lane.b32.xlu2 %v3619_v57, %s3459_s22 }
  0xc6   : > { %557 = vst.msk [vmem:[#allocation2 + $0x4] sm:$0x7] %vm556_vm8, %v485_v14  ;;  %v483_v17 = vpop.permute.xlu0 %482 }
  0xc7   : > { %555 = vst.msk [vmem:[#allocation2] sm:$0xf] %vm554_vm7, %v483_v17  ;;  %v505_v26 = vpop.permute.xlu2 %504  ;;  %v804_v17 = vld [vmem:[%s3515_s19 + $0x38] sm:$0xf] }
  0xc8   : > { %567 = vst.msk [vmem:[#allocation2 + $0x2c] sm:$0x7] %vm556_vm8, %v505_v26 }
  0xcb   : > { %631 = vrot.lane.b32.xlu1 %v3627_v59, %s3459_s22 }
  0xcc   : > { %629 = vrot.lane.b32.xlu0 %v3663_v6, %s3459_s22 }
  0xcd   : > { %v491_v28 = vpop.permute.xlu1 %490  ;;  %633 = vrot.lane.b32.xlu2 %v3667_v7, %s3459_s22 }
  0xce   : > { %560 = vst.msk [vmem:[#allocation2 + $0x10] sm:$0xf] %vm554_vm7, %v491_v28  ;;  %v489_v30 = vpop.permute.xlu0 %488 }
  0xcf   : > { %559 = vst.msk [vmem:[#allocation2 + $0xc] sm:$0x7] %vm556_vm8, %v489_v30  ;;  %v511_v59 = vpop.permute.xlu2 %510 }
  0xd0   : > { %570 = vst.msk [vmem:[#allocation2 + $0x38] sm:$0xf] %vm554_vm7, %v511_v59  ;;  %v886_v59 = vshll.u32 %v804_v17, 16 }
  0xd3   : > { %694 = vrot.lane.b32.xlu1 %v691_v31, %s3460_s23  ;;  %v877_v31 = vshrl.u32 %v803_v13, 16  ;;  %v940_v13 = vshrl.u32 %v810_v58, 16 }
  0xd4   : > { %692 = vrot.lane.b32.xlu0 %v690_v32, %s3460_s23  ;;  %v883_v32 = vshrl.u32 %v804_v17, 16 }
  0xd5   : > { %v497_v33 = vpop.permute.xlu1 %496  ;;  %696 = vrot.lane.b32.xlu2 %v3772_v37, %s3460_s23 }
  0xd6   : > { %563 = vst.msk [vmem:[#allocation2 + $0x1c] sm:$0x7] %vm556_vm8, %v497_v33  ;;  %v495_v34 = vpop.permute.xlu0 %494  ;;  %v852_v33 = vrot.slane %v851_v21, 4 }
  0xd7   : > { %562 = vst.msk [vmem:[#allocation2 + $0x18] sm:$0xf] %vm554_vm7, %v495_v34  ;;  %v517_v0 = vpop.permute.xlu2 %516  ;;  %v892_v34 = vshll.u32 %v805_v29, 16 }
  0xd8   : > { %573 = vst.msk [vmem:[#allocation2 + $0x44] sm:$0x7] %vm556_vm8, %v517_v0  ;;  %v896_v0 = vshrl.u32 %v805_v29, 16 }
  0xda   : > { %v898_v38 = vrot.slane %v896_v0, 4  ;;  %v812_v0 = vld [vmem:[%s3515_s19 + $0x58] sm:$0xf] }
  0xdb   : > { %700 = vrot.lane.b32.xlu1 %v3688_v20, %s3460_s23 }
  0xdc   : > { %698 = vrot.lane.b32.xlu0 %v3768_v36, %s3460_s23 }
  0xdd   : > { %v503_v7 = vpop.permute.xlu1 %502  ;;  %702 = vrot.lane.b32.xlu2 %v3684_v19, %s3460_s23 }
  0xde   : > { %566 = vst.msk [vmem:[#allocation2 + $0x28] sm:$0xf] %vm554_vm7, %v503_v7  ;;  %v501_v35 = vpop.permute.xlu0 %500 }
  0xdf   : > { %565 = vst.msk [vmem:[#allocation2 + $0x24] sm:$0x7] %vm556_vm8, %v501_v35  ;;  %v523_v37 = vpop.permute.xlu2 %522  ;;  %v871_v35 = vrot.slane %v870_v23, 4 }
  0xe0   : > { %576 = vst.msk [vmem:[#allocation2 + $0x50] sm:$0xf] %vm554_vm7, %v523_v37  ;;  %v875_v37 = vrot.slane %v873_v25, 5 }
  0xe3   : > { %706 = vrot.lane.b32.xlu1 %v3541_v16, %s3460_s23 }
  0xe4   : > { %704 = vrot.lane.b32.xlu0 %v3533_v10, %s3460_s23 }
  0xe5   : > { %v509_v20 = vpop.permute.xlu1 %508  ;;  %708 = vrot.lane.b32.xlu2 %v3527_v9, %s3460_s23 }
  0xe6   : > { %569 = vst.msk [vmem:[#allocation2 + $0x34] sm:$0x7] %vm556_vm8, %v509_v20  ;;  %v507_v36 = vpop.permute.xlu0 %506 }
  0xe7   : > { %568 = vst.msk [vmem:[#allocation2 + $0x30] sm:$0xf] %vm554_vm7, %v507_v36  ;;  %v529_v19 = vpop.permute.xlu2 %528  ;;  %v806_v36 = vld [vmem:[%s3515_s19 + $0x40] sm:$0xf] }
  0xe8   : > { %579 = vst.msk [vmem:[#allocation2 + $0x5c] sm:$0x7] %vm556_vm8, %v529_v19 }
  0xeb   : > { %712 = vrot.lane.b32.xlu1 %v3546_v18, %s3460_s23 }
  0xec   : > { %710 = vrot.lane.b32.xlu0 %v3539_v15, %s3460_s23 }
  0xed   : > { %v515_v10 = vpop.permute.xlu1 %514  ;;  %714 = vrot.lane.b32.xlu2 %v3555_v22, %s3460_s23 }
  0xee   : > { %572 = vst.msk [vmem:[#allocation2 + $0x40] sm:$0xf] %vm554_vm7, %v515_v10  ;;  %v513_v16 = vpop.permute.xlu0 %512  ;;  %v885_v10 = vrot.slane %v883_v32, 4 }
  0xef   : > { %571 = vst.msk [vmem:[#allocation2 + $0x3c] sm:$0x7] %vm556_vm8, %v513_v16  ;;  %v592_v9 = vpop.permute.xlu2 %591  ;;  %v888_v16 = vrot.slane %v886_v59, 5  ;;  %v942_v59 = vrot.slane %v940_v13, 4 }
  0xf0   : > { %663 = vst.msk [vmem:[#allocation2 + $0x8] sm:$0xf] %vm659_vm9, %v592_v9  ;;  %v808_v9 = vld [vmem:[%s3515_s19 + $0x48] sm:$0xf] }
  0xf1   : > { %v921_v40 = vshrl.u32 %v808_v9, 16  ;;  %v889_v42 = vor.u32 %v888_v16, %v885_v10 }
  0xf3   : > { %718 = vrot.lane.b32.xlu1 %v3558_v24, %s3460_s23  ;;  %v923_v51 = vrot.slane %v921_v40, 4  ;;  %v890_v53 = vrot.slane %v889_v42, 4 }
  0xf4   : > { %716 = vrot.lane.b32.xlu0 %v3564_v27, %s3460_s23 }
  0xf5   : > { %v521_v15 = vpop.permute.xlu1 %520  ;;  %720 = vrot.lane.b32.xlu2 %v3588_v45, %s3460_s23  ;;  %v799_v45 = vld [vmem:[%s3515_s19 + $0x24] sm:$0xf] }
  0xf6   : > { %575 = vst.msk [vmem:[#allocation2 + $0x4c] sm:$0x7] %vm556_vm8, %v521_v15  ;;  %v519_v18 = vpop.permute.xlu0 %518 }
  0xf7   : > { %574 = vst.msk [vmem:[#allocation2 + $0x48] sm:$0xf] %vm554_vm7, %v519_v18  ;;  %v598_v22 = vpop.permute.xlu2 %597 }
  0xf8   : > { %666 = vst.msk [vmem:[#allocation2 + $0x14] sm:$0x7] %vm661_vm10, %v598_v22  ;;  %v902_v22 = vshrl.u32 %v806_v36, 16 }
  0xfb   : > { %724 = vrot.lane.b32.xlu1 %v3600_v50, %s3460_s23  ;;  %v839_v50 = vshrl.u32 %v799_v45, 16 }
  0xfc   : > { %722 = vrot.lane.b32.xlu0 %v3592_v46, %s3460_s23  ;;  %v835_v46 = vshll.u32 %v799_v45, 16  ;;  %v3961_v45 = vsel %vm3931_vm13, %v871_v35, %v875_v37 }
  0xfd   : > { %v527_v24 = vpop.permute.xlu1 %526  ;;  %726 = vrot.lane.b32.xlu2 %v3631_v60, %s3460_s23  ;;  %v841_v52 = vrot.slane %v839_v50, 4  ;;  %v807_v50 = vld [vmem:[%s3515_s19 + $0x44] sm:$0xf] }
  0xfe   : > { %578 = vst.msk [vmem:[#allocation2 + $0x58] sm:$0xf] %vm554_vm7, %v527_v24  ;;  %v525_v27 = vpop.permute.xlu0 %524  ;;  %v905_v24 = vshll.u32 %v806_v36, 16  ;;  %v911_v48 = vshll.u32 %v807_v50, 16  ;;  %vm1478_vm7 = vcmask 354624  }
  0xff   : > { %577 = vst.msk [vmem:[#allocation2 + $0x54] sm:$0x7] %vm556_vm8, %v525_v27  ;;  %v604_v41 = vpop.permute.xlu2 %603  ;;  %v894_v27 = vrot.slane %v892_v34, 5  ;;  %v814_v34 = vld [vmem:[%s3515_s19 + $0x60] sm:$0xf]  ;;  %vm1593_vm8 = vcmask 454048  }
 0x100   : > { %669 = vst.msk [vmem:[#allocation2 + $0x20] sm:$0xf] %vm659_vm9, %v604_v41  ;;  %v907_v44 = vrot.slane %v905_v24, 5  ;;  %v978_v10 = vshrl.u32 %v814_v34, 16  ;;  %v981_v16 = vshll.u32 %v814_v34, 16 }
 0x101   : > { %v899_v47 = vor.u32 %v898_v38, %v894_v27  ;;  %v813_v24 = vld [vmem:[%s3515_s19 + $0x5c] sm:$0xf] }
 0x102   : > { %v968_v42 = vshll.u32 %v813_v24, 16 }
 0x103   : > { %730 = vrot.lane.b32.xlu1 %v3641_v62, %s3460_s23  ;;  %v837_v62 = vrot.slane %v835_v46, 5  ;;  %v924_v46 = vshll.u32 %v808_v9, 16  ;;  %v962_v9 = vshll.u32 %v812_v0, 16 }
 0x104   : > { %728 = vrot.lane.b32.xlu0 %v3611_v55, %s3460_s23  ;;  %v801_v55 = vld [vmem:[%s3515_s19 + $0x2c] sm:$0xf] }
 0x105   : > { %v590_v43 = vpop.permute.xlu1 %589  ;;  %732 = vrot.lane.b32.xlu2 %v3637_v61, %s3460_s23  ;;  %v842_v2 = vor.u32 %v841_v52, %v837_v62  ;;  %v854_v8 = vshll.u32 %v801_v55, 16  ;;  %v858_v11 = vshrl.u32 %v801_v55, 16  ;;  %v3942_v30 = vsel %vm3931_vm13, %v833_v12, %v837_v62 }
 0x106   : > { %662 = vst.msk [vmem:[#allocation2 + $0x4] sm:$0x7] %vm661_vm10, %v590_v43  ;;  %v588_v60 = vpop.permute.xlu0 %587  ;;  %v904_v43 = vrot.slane %v902_v22, 4  ;;  %v926_v62 = vrot.slane %v924_v46, 5  ;;  %v3984_v12 = vsel %vm3931_vm13, %v890_v53, %v894_v27  ;;  %v964_v38 = vrot.slane %v962_v9, 5 }
 0x107   : > { %660 = vst.msk [vmem:[#allocation2] sm:$0xf] %vm659_vm9, %v588_v60  ;;  %v610_v3 = vpop.permute.xlu2 %609  ;;  %v856_v26 = vrot.slane %v854_v8, 5  ;;  %v860_v28 = vrot.slane %v858_v11, 4  ;;  %v915_v60 = vshrl.u32 %v807_v50, 16  ;;  %v930_v8 = vshll.u32 %v809_v54, 16 }
 0x108   : > { %672 = vst.msk [vmem:[#allocation2 + $0x2c] sm:$0x7] %vm661_vm10, %v610_v3  ;;  %v908_v63 = vor.u32 %v907_v44, %v904_v43  ;;  %v913_v3 = vrot.slane %v911_v48, 5  ;;  %v927_v5 = vor.u32 %v926_v62, %v923_v51  ;;  %v934_v11 = vshrl.u32 %v809_v54, 16  ;;  %v815_v48 = vld [vmem:[%s3515_s19 + $0x64] sm:$0xf] }
 0x109   : > { %v861_v20 = vor.u32 %v860_v28, %v856_v26  ;;  %v3956_v18 = vsel %vm3931_vm13, %v852_v33, %v856_v26  ;;  %v917_v4 = vrot.slane %v915_v60, 4  ;;  %v932_v29 = vrot.slane %v930_v8, 5  ;;  %v816_v51 = vld [vmem:[%s3515_s19 + $0x68] sm:$0xf] }
 0x10a   : > { %v909_v17 = vrot.slane %v908_v63, 4  ;;  %v928_v28 = vrot.slane %v927_v5, 4  ;;  %v980_v50 = vrot.slane %v978_v10, 4  ;;  %v972_v43 = vshrl.u32 %v813_v24, 16  ;;  %v817_v63 = vld [vmem:[%s3515_s19 + $0x6c] sm:$0xf] }
 0x10b   : > { %736 = vrot.lane.b32.xlu1 %v3619_v57, %s3460_s23  ;;  %v3963_v39 = vrot.slane %v861_v20, 4  ;;  %v918_v21 = vor.u32 %v917_v4, %v913_v3  ;;  %v987_v54 = vshll.u32 %v815_v48, 16  ;;  %v997_v4 = vshrl.u32 %v816_v51, 16 }
 0x10c   : > { %734 = vrot.lane.b32.xlu0 %v3650_v1, %s3460_s23  ;;  %v3937_v1 = vrot.slane %v842_v2, 4  ;;  %v3979_v2 = vrot.slane %v899_v47, 4  ;;  %v3998_v35 = vsel %vm3931_vm13, %v909_v17, %v913_v3  ;;  %v1000_v5 = vshll.u32 %v816_v51, 16  ;;  %v818_v17 = vld [vmem:[%s3515_s19 + $0x70] sm:$0xf] }
 0x10d   : > { %v596_v61 = vpop.permute.xlu1 %595  ;;  %738 = vrot.lane.b32.xlu2 %v3663_v6, %s3460_s23  ;;  %v879_v6 = vrot.slane %v877_v31, 4  ;;  %v936_v31 = vrot.slane %v934_v11, 4  ;;  %v991_v8 = vshrl.u32 %v815_v48, 16  ;;  %v1010_v13 = vshrl.u32 %v817_v63, 16  ;;  %v796_v51 = vld [vmem:[%s3515_s19 + $0x18] sm:$0xf] }
 0x10e   : > { %665 = vst.msk [vmem:[#allocation2 + $0x10] sm:$0xf] %vm659_vm9, %v596_v61  ;;  %v594_v57 = vpop.permute.xlu0 %593  ;;  %v811_v61 = vld [vmem:[%s3515_s19 + $0x54] sm:$0xf]  ;;  %v1016_v34 = vshrl.u32 %v818_v17, 16 }
 0x10f   : > { %664 = vst.msk [vmem:[#allocation2 + $0xc] sm:$0x7] %vm661_vm10, %v594_v57  ;;  %v616_v7 = vpop.permute.xlu2 %615  ;;  %v880_v41 = vor.u32 %v879_v6, %v875_v37  ;;  %v943_v57 = vshll.u32 %v810_v58, 16  ;;  %v949_v23 = vshll.u32 %v811_v61, 16  ;;  %v953_v25 = vshrl.u32 %v811_v61, 16 }
 0x110   : > { %675 = vst.msk [vmem:[#allocation2 + $0x38] sm:$0xf] %vm659_vm9, %v616_v7  ;;  %v4001_v37 = vrot.slane %v918_v21, 4  ;;  %v4005_v6 = vsel %vm3931_vm13, %v928_v28, %v932_v29  ;;  %v974_v58 = vrot.slane %v972_v43, 4  ;;  %v1006_v61 = vshll.u32 %v817_v63, 16 }
 0x111   : > { %v3974_v56 = vrot.slane %v880_v41, 4  ;;  %v945_v33 = vrot.slane %v943_v57, 5  ;;  %v951_v20 = vrot.slane %v949_v23, 5  ;;  %v955_v36 = vrot.slane %v953_v25, 4 }
 0x112   : > { %v983_v41 = vrot.slane %v981_v16, 5  ;;  %v989_v23 = vrot.slane %v987_v54, 5  ;;  %v999_v28 = vrot.slane %v997_v4, 4  ;;  %v1018_v24 = vrot.slane %v1016_v34, 4  ;;  %v797_v4 = vld [vmem:[%s3515_s19 + $0x1c] sm:$0xf] }
 0x113   : > { %1055 = vrot.lane.b32.xlu1 %v3937_v1, %s3461_s24  ;;  %v946_v22 = vor.u32 %v945_v33, %v942_v59  ;;  %v956_v40 = vor.u32 %v955_v36, %v951_v20 }
 0x114   : > { %1053 = vrot.lane.b32.xlu0 %v3942_v30, %s3461_s24  ;;  %v984_v53 = vor.u32 %v983_v41, %v980_v50 }
 0x115   : > { %v602_v19 = vpop.permute.xlu1 %601  ;;  %1057 = vrot.lane.b32.xlu2 %v3956_v18, %s3461_s24  ;;  %v947_v47 = vrot.slane %v946_v22, 4 }
 0x116   : > { %668 = vst.msk [vmem:[#allocation2 + $0x1c] sm:$0x7] %vm661_vm10, %v602_v19  ;;  %v600_v15 = vpop.permute.xlu0 %599  ;;  %v959_v19 = vshrl.u32 %v812_v0, 16  ;;  %v985_v21 = vrot.slane %v984_v53, 4  ;;  %v1019_v0 = vshll.u32 %v818_v17, 16  ;;  %v1165_v17 = vshrl.u32 %v797_v4, 16 }
 0x117   : > { %667 = vst.msk [vmem:[#allocation2 + $0x18] sm:$0xf] %vm659_vm9, %v600_v15  ;;  %v622_v49 = vpop.permute.xlu2 %621  ;;  %v937_v15 = vor.u32 %v936_v31, %v932_v29  ;;  %v4026_v3 = vsel %vm3931_vm13, %v947_v47, %v951_v20  ;;  %v1002_v29 = vrot.slane %v1000_v5, 5  ;;  %v820_v31 = vld [vmem:[%s3515_s19 + $0x78] sm:$0xf]  ;;  %v1012_v20 = vrot.slane %v1010_v13, 4 }
 0x118   : > { %678 = vst.msk [vmem:[#allocation2 + $0x44] sm:$0x7] %vm661_vm10, %v622_v49  ;;  %v961_v27 = vrot.slane %v959_v19, 4  ;;  %v4045_v36 = vsel %vm3931_vm13, %v985_v21, %v989_v23  ;;  %v1035_v10 = vshrl.u32 %v820_v31, 16  ;;  %v1038_v16 = vshll.u32 %v820_v31, 16 }
 0x119   : > { %v4016_v60 = vrot.slane %v937_v15, 4  ;;  %v1003_v9 = vor.u32 %v1002_v29, %v999_v28  ;;  %v819_v15 = vld [vmem:[%s3515_s19 + $0x74] sm:$0xf]  ;;  %v821_v47 = vld [vmem:[%s3515_s19 + $0x7c] sm:$0xf] }
 0x11a   : > { %v965_v62 = vor.u32 %v964_v38, %v961_v27  ;;  %v1021_v27 = vrot.slane %v1019_v0, 5  ;;  %v1040_v50 = vrot.slane %v1038_v16, 5  ;;  %v1025_v41 = vshll.u32 %v819_v15, 16 }
 0x11b   : > { %1061 = vrot.lane.b32.xlu1 %v3961_v45, %s3461_s24 }
 0x11c   : > { %1059 = vrot.lane.b32.xlu0 %v3963_v39, %s3461_s24  ;;  %v966_v11 = vrot.slane %v965_v62, 4  ;;  %v1022_v62 = vor.u32 %v1021_v27, %v1018_v24 }
 0x11d   : > { %v608_v52 = vpop.permute.xlu1 %607  ;;  %1063 = vrot.lane.b32.xlu2 %v3974_v56, %s3461_s24 }
 0x11e   : > { %671 = vst.msk [vmem:[#allocation2 + $0x28] sm:$0xf] %vm659_vm9, %v608_v52  ;;  %v606_v55 = vpop.permute.xlu0 %605  ;;  %v4021_v52 = vrot.slane %v956_v40, 4  ;;  %v1023_v13 = vrot.slane %v1022_v62, 4 }
 0x11f   : > { %670 = vst.msk [vmem:[#allocation2 + $0x24] sm:$0x7] %vm661_vm10, %v606_v55  ;;  %v628_v26 = vpop.permute.xlu2 %627  ;;  %v970_v55 = vrot.slane %v968_v42, 5  ;;  %v1029_v42 = vshrl.u32 %v819_v15, 16 }
 0x120   : > { %681 = vst.msk [vmem:[#allocation2 + $0x50] sm:$0xf] %vm659_vm9, %v628_v26 }
 0x121   : > { %v975_v25 = vor.u32 %v974_v58, %v970_v55  ;;  %v4040_v33 = vsel %vm3931_vm13, %v966_v11, %v970_v55  ;;  %v1044_v55 = vshll.u32 %v821_v47, 16  ;;  %v1027_v58 = vrot.slane %v1025_v41, 5 }
 0x122   : > { %v1031_v63 = vrot.slane %v1029_v42, 4  ;;  %v1155_v11 = vshll.u32 %v796_v51, 16 }
 0x123   : > { %1067 = vrot.lane.b32.xlu1 %v3979_v2, %s3461_s24  ;;  %v4047_v19 = vrot.slane %v975_v25, 4  ;;  %v1046_v25 = vrot.slane %v1044_v55, 5  ;;  %v4080_v34 = vsel %vm3931_vm13, %v1023_v13, %v1027_v58 }
 0x124   : > { %1065 = vrot.lane.b32.xlu0 %v3984_v12, %s3461_s24  ;;  %v1157_v31 = vrot.slane %v1155_v11, 5 }
 0x125   : > { %v614_v32 = vpop.permute.xlu1 %613  ;;  %1069 = vrot.lane.b32.xlu2 %v3998_v35, %s3461_s24 }
 0x126   : > { %674 = vst.msk [vmem:[#allocation2 + $0x34] sm:$0x7] %vm661_vm10, %v614_v32  ;;  %v612_v7 = vpop.permute.xlu0 %611  ;;  %v993_v32 = vrot.slane %v991_v8, 4  ;;  %v1152_v8 = vshrl.u32 %v796_v51, 16 }
 0x127   : > { %673 = vst.msk [vmem:[#allocation2 + $0x30] sm:$0xf] %vm659_vm9, %v612_v7  ;;  %v634_v46 = vpop.permute.xlu2 %633  ;;  %v1008_v7 = vrot.slane %v1006_v61, 5  ;;  %v1048_v61 = vshrl.u32 %v821_v47, 16 }
 0x128   : > { %684 = vst.msk [vmem:[#allocation2 + $0x5c] sm:$0x7] %vm661_vm10, %v634_v46  ;;  %v994_v22 = vor.u32 %v993_v32, %v989_v23  ;;  %v1037_v46 = vrot.slane %v1035_v10, 4  ;;  %v1154_v29 = vrot.slane %v1152_v8, 4 }
 0x129   : > { %v1013_v38 = vor.u32 %v1012_v20, %v1008_v7  ;;  %v1050_v32 = vrot.slane %v1048_v61, 4 }
 0x12a   : > { %v4058_v48 = vrot.slane %v994_v22, 4  ;;  %v1041_v54 = vor.u32 %v1040_v50, %v1037_v46  ;;  %v1158_v16 = vor.u32 %v1157_v31, %v1154_v29 }
 0x12b   : > { %1073 = vrot.lane.b32.xlu1 %v4005_v6, %s3461_s24  ;;  %v4063_v53 = vrot.slane %v1013_v38, 4 }
 0x12c   : > { %1071 = vrot.lane.b32.xlu0 %v4001_v37, %s3461_s24  ;;  %v1042_v23 = vrot.slane %v1041_v54, 4  ;;  %v1159_v27 = vrot.slane %v1158_v16, 4 }
 0x12d   : > { %v620_v44 = vpop.permute.xlu1 %619  ;;  %1075 = vrot.lane.b32.xlu2 %v4016_v60, %s3461_s24 }
 0x12e   : > { %677 = vst.msk [vmem:[#allocation2 + $0x40] sm:$0xf] %vm659_vm9, %v620_v44  ;;  %v618_v49 = vpop.permute.xlu0 %617  ;;  %v1004_v44 = vrot.slane %v1003_v9, 4  ;;  %v1047_v20 = vsel %vm3931_vm13, %v1042_v23, %v1046_v25  ;;  %v1051_v9 = vor.u32 %v1050_v32, %v1046_v25 }
 0x12f   : > { %676 = vst.msk [vmem:[#allocation2 + $0x3c] sm:$0x7] %vm661_vm10, %v618_v49  ;;  %v697_v57 = vpop.permute.xlu2 %696 }
 0x130   : > { %768 = vst.msk [vmem:[#allocation2 + $0x8] sm:$0xf] %vm764_vm14, %v697_v57  ;;  %v4068_v5 = vsel %vm3931_vm13, %v1004_v44, %v1008_v7  ;;  %v1161_v57 = vshll.u32 %v797_v4, 16  ;;  %v1167_v7 = vrot.slane %v1165_v17, 4  ;;  %v1052_v38 = vrot.slane %v1051_v9, 4 }
 0x131   : > { %v794_v17 = vld [vmem:[%s3515_s19 + $0x10] sm:$0xf] }
 0x132   : > { %v1163_v0 = vrot.slane %v1161_v57, 5  ;;  %v1269_v23 = vshrl.u32 %v794_v17, 16  ;;  %v1272_v25 = vshll.u32 %v794_v17, 16 }
 0x133   : > { %1079 = vrot.lane.b32.xlu1 %v4021_v52, %s3461_s24 }
 0x134   : > { %1077 = vrot.lane.b32.xlu0 %v4026_v3, %s3461_s24  ;;  %v1168_v15 = vor.u32 %v1167_v7, %v1163_v0  ;;  %v4099_v50 = vsel %vm3931_vm13, %v1159_v27, %v1163_v0  ;;  %v1271_v32 = vrot.slane %v1269_v23, 4 }
 0x135   : > { %v626_v26 = vpop.permute.xlu1 %625  ;;  %1081 = vrot.lane.b32.xlu2 %v4040_v33, %s3461_s24 }
 0x136   : > { %680 = vst.msk [vmem:[#allocation2 + $0x4c] sm:$0x7] %vm661_vm10, %v626_v26  ;;  %v624_v59 = vpop.permute.xlu0 %623  ;;  %v1032_v26 = vor.u32 %v1031_v63, %v1027_v58  ;;  %v4095_v46 = vrot.slane %v1168_v15, 4 }
 0x137   : > { %679 = vst.msk [vmem:[#allocation2 + $0x48] sm:$0xf] %vm659_vm9, %v624_v59  ;;  %v703_v40 = vpop.permute.xlu2 %702 }
 0x138   : > { %771 = vst.msk [vmem:[#allocation2 + $0x14] sm:$0x7] %vm766_vm15, %v703_v40  ;;  %v4085_v10 = vrot.slane %v1032_v26, 4 }
 0x13b   : > { %1085 = vrot.lane.b32.xlu1 %v4045_v36, %s3461_s24 }
 0x13c   : > { %1083 = vrot.lane.b32.xlu0 %v4047_v19, %s3461_s24 }
 0x13d   : > { %v632_v43 = vpop.permute.xlu1 %631  ;;  %1087 = vrot.lane.b32.xlu2 %v4058_v48, %s3461_s24 }
 0x13e   : > { %683 = vst.msk [vmem:[#allocation2 + $0x58] sm:$0xf] %vm659_vm9, %v632_v43  ;;  %v630_v49 = vpop.permute.xlu0 %629  ;;  %vm1595_vm9 = vcmask 453024  }
 0x13f   : > { %682 = vst.msk [vmem:[#allocation2 + $0x54] sm:$0x7] %vm661_vm10, %v630_v49  ;;  %v709_v21 = vpop.permute.xlu2 %708  ;;  %vm1747_vm10 = vcmask 93248  }
 0x140   : > { %774 = vst.msk [vmem:[#allocation2 + $0x20] sm:$0xf] %vm764_vm14, %v709_v21  ;;  %v795_v21 = vld [vmem:[%s3515_s19 + $0x14] sm:$0xf] }
 0x141   : > { %v1278_v26 = vshll.u32 %v795_v21, 16 }
 0x143   : > { %1091 = vrot.lane.b32.xlu1 %v4063_v53, %s3461_s24  ;;  %v1280_v7 = vrot.slane %v1278_v26, 5 }
 0x144   : > { %1089 = vrot.lane.b32.xlu0 %v4068_v5, %s3461_s24 }
 0x145   : > { %v695_v28 = vpop.permute.xlu1 %694  ;;  %1093 = vrot.lane.b32.xlu2 %v4080_v34, %s3461_s24 }
 0x146   : > { %767 = vst.msk [vmem:[#allocation2 + $0x4] sm:$0x7] %vm766_vm15, %v695_v28  ;;  %v693_v59 = vpop.permute.xlu0 %692  ;;  %v1282_v28 = vshrl.u32 %v795_v21, 16 }
 0x147   : > { %765 = vst.msk [vmem:[#allocation2] sm:$0xf] %vm764_vm14, %v693_v59  ;;  %v715_v22 = vpop.permute.xlu2 %714  ;;  %v1274_v59 = vrot.slane %v1272_v25, 5 }
 0x148   : > { %777 = vst.msk [vmem:[#allocation2 + $0x2c] sm:$0x7] %vm766_vm15, %v715_v22 }
 0x149   : > { %v1275_v16 = vor.u32 %v1274_v59, %v1271_v32 }
 0x14b   : > { %1097 = vrot.lane.b32.xlu1 %v1047_v20, %s3461_s24  ;;  %v1284_v20 = vrot.slane %v1282_v28, 4 }
 0x14c   : > { %1095 = vrot.lane.b32.xlu0 %v4085_v10, %s3461_s24 }
 0x14d   : > { %v701_v24 = vpop.permute.xlu1 %700  ;;  %1099 = vrot.lane.b32.xlu2 %v1052_v38, %s3461_s24  ;;  %v1285_v9 = vor.u32 %v1284_v20, %v1280_v7 }
 0x14e   : > { %770 = vst.msk [vmem:[#allocation2 + $0x10] sm:$0xf] %vm764_vm14, %v701_v24  ;;  %v699_v40 = vpop.permute.xlu0 %698  ;;  %v1276_v24 = vrot.slane %v1275_v16, 4 }
 0x14f   : > { %769 = vst.msk [vmem:[#allocation2 + $0xc] sm:$0x7] %vm766_vm15, %v699_v40  ;;  %v721_v41 = vpop.permute.xlu2 %720  ;;  %v4174_v38 = vrot.slane %v1285_v9, 4 }
 0x150   : > { %780 = vst.msk [vmem:[#allocation2 + $0x38] sm:$0xf] %vm764_vm14, %v721_v41  ;;  %v4178_v40 = vsel %vm3931_vm13, %v1276_v24, %v1280_v7 }
 0x153   : > { %1172 = vrot.lane.b32.xlu1 %v4095_v46, %s3462_s25 }
 0x154   : > { %1170 = vrot.lane.b32.xlu0 %v4099_v50, %s3462_s25 }
 0x155   : > { %v707_v42 = vpop.permute.xlu1 %706  ;;  %1174 = vrot.lane.b32.xlu2 %v3942_v30, %s3462_s25 }
 0x156   : > { %773 = vst.msk [vmem:[#allocation2 + $0x1c] sm:$0x7] %vm766_vm15, %v707_v42  ;;  %v705_v43 = vpop.permute.xlu0 %704 }
 0x157   : > { %772 = vst.msk [vmem:[#allocation2 + $0x18] sm:$0xf] %vm764_vm14, %v705_v43  ;;  %v727_v44 = vpop.permute.xlu2 %726 }
 0x158   : > { %783 = vst.msk [vmem:[#allocation2 + $0x44] sm:$0x7] %vm766_vm15, %v727_v44 }
 0x15b   : > { %1178 = vrot.lane.b32.xlu1 %v3956_v18, %s3462_s25 }
 0x15c   : > { %1176 = vrot.lane.b32.xlu0 %v3937_v1, %s3462_s25 }
 0x15d   : > { %v713_v47 = vpop.permute.xlu1 %712  ;;  %1180 = vrot.lane.b32.xlu2 %v3963_v39, %s3462_s25 }
 0x15e   : > { %776 = vst.msk [vmem:[#allocation2 + $0x28] sm:$0xf] %vm764_vm14, %v713_v47  ;;  %v711_v49 = vpop.permute.xlu0 %710 }
 0x15f   : > { %775 = vst.msk [vmem:[#allocation2 + $0x24] sm:$0x7] %vm766_vm15, %v711_v49  ;;  %v733_v51 = vpop.permute.xlu2 %732 }
 0x160   : > { %786 = vst.msk [vmem:[#allocation2 + $0x50] sm:$0xf] %vm764_vm14, %v733_v51 }
 0x163   : > { %1184 = vrot.lane.b32.xlu1 %v3974_v56, %s3462_s25 }
 0x164   : > { %1182 = vrot.lane.b32.xlu0 %v3961_v45, %s3462_s25 }
 0x165   : > { %v719_v62 = vpop.permute.xlu1 %718  ;;  %1186 = vrot.lane.b32.xlu2 %v3984_v12, %s3462_s25 }
 0x166   : > { %779 = vst.msk [vmem:[#allocation2 + $0x34] sm:$0x7] %vm766_vm15, %v719_v62  ;;  %v717_v54 = vpop.permute.xlu0 %716 }
 0x167   : > { %778 = vst.msk [vmem:[#allocation2 + $0x30] sm:$0xf] %vm764_vm14, %v717_v54  ;;  %v739_v55 = vpop.permute.xlu2 %738 }
 0x168   : > { %789 = vst.msk [vmem:[#allocation2 + $0x5c] sm:$0x7] %vm766_vm15, %v739_v55 }
 0x16b   : > { %1190 = vrot.lane.b32.xlu1 %v3998_v35, %s3462_s25 }
 0x16c   : > { %1188 = vrot.lane.b32.xlu0 %v3979_v2, %s3462_s25 }
 0x16d   : > { %v725_v58 = vpop.permute.xlu1 %724  ;;  %1192 = vrot.lane.b32.xlu2 %v4001_v37, %s3462_s25 }
 0x16e   : > { %782 = vst.msk [vmem:[#allocation2 + $0x40] sm:$0xf] %vm764_vm14, %v725_v58  ;;  %v723_v63 = vpop.permute.xlu0 %722 }
 0x16f   : > { %781 = vst.msk [vmem:[#allocation2 + $0x3c] sm:$0x7] %vm766_vm15, %v723_v63  ;;  %v1058_v4 = vpop.permute.xlu2 %1057 }
 0x170   : > { %1129 = vst.msk [vmem:[#allocation2 + $0x8] sm:$0xf] %vm1125_vm0, %v1058_v4 }
 0x173   : > { %1196 = vrot.lane.b32.xlu1 %v4016_v60, %s3462_s25 }
 0x174   : > { %1194 = vrot.lane.b32.xlu0 %v4005_v6, %s3462_s25 }
 0x175   : > { %v731_v8 = vpop.permute.xlu1 %730  ;;  %1198 = vrot.lane.b32.xlu2 %v4026_v3, %s3462_s25 }
 0x176   : > { %785 = vst.msk [vmem:[#allocation2 + $0x4c] sm:$0x7] %vm766_vm15, %v731_v8  ;;  %v729_v11 = vpop.permute.xlu0 %728 }
 0x177   : > { %784 = vst.msk [vmem:[#allocation2 + $0x48] sm:$0xf] %vm764_vm14, %v729_v11  ;;  %v1064_v61 = vpop.permute.xlu2 %1063 }
 0x178   : > { %1132 = vst.msk [vmem:[#allocation2 + $0x14] sm:$0x7] %vm1127_vm1, %v1064_v61 }
 0x17b   : > { %1202 = vrot.lane.b32.xlu1 %v4040_v33, %s3462_s25 }
 0x17c   : > { %1200 = vrot.lane.b32.xlu0 %v4021_v52, %s3462_s25 }
 0x17d   : > { %v737_v13 = vpop.permute.xlu1 %736  ;;  %1204 = vrot.lane.b32.xlu2 %v4047_v19, %s3462_s25 }
 0x17e   : > { %788 = vst.msk [vmem:[#allocation2 + $0x58] sm:$0xf] %vm764_vm14, %v737_v13  ;;  %v735_v57 = vpop.permute.xlu0 %734  ;;  %v792_v13 = vld [vmem:[%s3515_s19 + $0x8] sm:$0xf]  ;;  %vm1849_vm14 = vcmask 190624  }
 0x17f   : > { %787 = vst.msk [vmem:[#allocation2 + $0x54] sm:$0x7] %vm766_vm15, %v735_v57  ;;  %v1070_v29 = vpop.permute.xlu2 %1069  ;;  %v793_v57 = vld [vmem:[%s3515_s19 + $0xc] sm:$0xf]  ;;  %v1386_v17 = vshrl.u32 %v792_v13, 16  ;;  %v1389_v21 = vshll.u32 %v792_v13, 16 }
 0x180   : > { %1135 = vst.msk [vmem:[#allocation2 + $0x20] sm:$0xf] %vm1125_vm0, %v1070_v29  ;;  %v1395_v23 = vshll.u32 %v793_v57, 16  ;;  %v1399_v25 = vshrl.u32 %v793_v57, 16  ;;  %vm2717_vm15 = vcmask 1045504  }
 0x181   : > { %v1388_v29 = vrot.slane %v1386_v17, 4 }
 0x182   : > { %v1397_v59 = vrot.slane %v1395_v23, 5 }
 0x183   : > { %1208 = vrot.lane.b32.xlu1 %v4058_v48, %s3462_s25 }
 0x184   : > { %1206 = vrot.lane.b32.xlu0 %v4045_v36, %s3462_s25 }
 0x185   : > { %v1056_v31 = vpop.permute.xlu1 %1055  ;;  %1210 = vrot.lane.b32.xlu2 %v4068_v5, %s3462_s25 }
 0x186   : > { %1128 = vst.msk [vmem:[#allocation2 + $0x4] sm:$0x7] %vm1127_vm1, %v1056_v31  ;;  %v1054_v0 = vpop.permute.xlu0 %1053  ;;  %v1391_v31 = vrot.slane %v1389_v21, 5 }
 0x187   : > { %1126 = vst.msk [vmem:[#allocation2] sm:$0xf] %vm1125_vm0, %v1054_v0  ;;  %v1076_v15 = vpop.permute.xlu2 %1075  ;;  %v1401_v0 = vrot.slane %v1399_v25, 4 }
 0x188   : > { %1138 = vst.msk [vmem:[#allocation2 + $0x2c] sm:$0x7] %vm1127_vm1, %v1076_v15  ;;  %v1392_v7 = vor.u32 %v1391_v31, %v1388_v29 }
 0x189   : > { %v1402_v20 = vor.u32 %v1401_v0, %v1397_v59 }
 0x18a   : > { %v1393_v15 = vrot.slane %v1392_v7, 4 }
 0x18b   : > { %1214 = vrot.lane.b32.xlu1 %v4080_v34, %s3462_s25  ;;  %v4254_v24 = vrot.slane %v1402_v20, 4 }
 0x18c   : > { %1212 = vrot.lane.b32.xlu0 %v4063_v53, %s3462_s25 }
 0x18d   : > { %v1062_v22 = vpop.permute.xlu1 %1061  ;;  %1216 = vrot.lane.b32.xlu2 %v4085_v10, %s3462_s25 }
 0x18e   : > { %1131 = vst.msk [vmem:[#allocation2 + $0x10] sm:$0xf] %vm1125_vm0, %v1062_v22  ;;  %v1060_v27 = vpop.permute.xlu0 %1059 }
 0x18f   : > { %1130 = vst.msk [vmem:[#allocation2 + $0xc] sm:$0x7] %vm1127_vm1, %v1060_v27  ;;  %v1082_v34 = vpop.permute.xlu2 %1081  ;;  %v4258_v27 = vsel %vm3931_vm13, %v1393_v15, %v1397_v59 }
 0x190   : > { %1141 = vst.msk [vmem:[#allocation2 + $0x38] sm:$0xf] %vm1125_vm0, %v1082_v34 }
 0x193   : > { %1289 = vrot.lane.b32.xlu1 %v4174_v38, %s3463_s26 }
 0x194   : > { %1287 = vrot.lane.b32.xlu0 %v4178_v40, %s3463_s26 }
 0x195   : > { %v1068_v41 = vpop.permute.xlu1 %1067  ;;  %1291 = vrot.lane.b32.xlu2 %v4099_v50, %s3463_s26 }
 0x196   : > { %1134 = vst.msk [vmem:[#allocation2 + $0x1c] sm:$0x7] %vm1127_vm1, %v1068_v41  ;;  %v1066_v42 = vpop.permute.xlu0 %1065 }
 0x197   : > { %1133 = vst.msk [vmem:[#allocation2 + $0x18] sm:$0xf] %vm1125_vm0, %v1066_v42  ;;  %v1088_v10 = vpop.permute.xlu2 %1087 }
 0x198   : > { %1144 = vst.msk [vmem:[#allocation2 + $0x44] sm:$0x7] %vm1127_vm1, %v1088_v10 }
 0x19b   : > { %1295 = vrot.lane.b32.xlu1 %v3942_v30, %s3463_s26 }
 0x19c   : > { %1293 = vrot.lane.b32.xlu0 %v4095_v46, %s3463_s26 }
 0x19d   : > { %v1074_v43 = vpop.permute.xlu1 %1073  ;;  %1297 = vrot.lane.b32.xlu2 %v3937_v1, %s3463_s26 }
 0x19e   : > { %1137 = vst.msk [vmem:[#allocation2 + $0x28] sm:$0xf] %vm1125_vm0, %v1074_v43  ;;  %v1072_v44 = vpop.permute.xlu0 %1071 }
 0x19f   : > { %1136 = vst.msk [vmem:[#allocation2 + $0x24] sm:$0x7] %vm1127_vm1, %v1072_v44  ;;  %v1094_v47 = vpop.permute.xlu2 %1093 }
 0x1a0   : > { %1147 = vst.msk [vmem:[#allocation2 + $0x50] sm:$0xf] %vm1125_vm0, %v1094_v47 }
 0x1a3   : > { %1301 = vrot.lane.b32.xlu1 %v3963_v39, %s3463_s26 }
 0x1a4   : > { %1299 = vrot.lane.b32.xlu0 %v3956_v18, %s3463_s26 }
 0x1a5   : > { %v1080_v49 = vpop.permute.xlu1 %1079  ;;  %1303 = vrot.lane.b32.xlu2 %v3961_v45, %s3463_s26 }
 0x1a6   : > { %1140 = vst.msk [vmem:[#allocation2 + $0x34] sm:$0x7] %vm1127_vm1, %v1080_v49  ;;  %v1078_v51 = vpop.permute.xlu0 %1077 }
 0x1a7   : > { %1139 = vst.msk [vmem:[#allocation2 + $0x30] sm:$0xf] %vm1125_vm0, %v1078_v51  ;;  %v1100_v62 = vpop.permute.xlu2 %1099 }
 0x1a8   : > { %1150 = vst.msk [vmem:[#allocation2 + $0x5c] sm:$0x7] %vm1127_vm1, %v1100_v62 }
 0x1ab   : > { %1307 = vrot.lane.b32.xlu1 %v3984_v12, %s3463_s26 }
 0x1ac   : > { %1305 = vrot.lane.b32.xlu0 %v3974_v56, %s3463_s26 }
 0x1ad   : > { %v1086_v54 = vpop.permute.xlu1 %1085  ;;  %1309 = vrot.lane.b32.xlu2 %v3979_v2, %s3463_s26 }
 0x1ae   : > { %1143 = vst.msk [vmem:[#allocation2 + $0x40] sm:$0xf] %vm1125_vm0, %v1086_v54  ;;  %v1084_v55 = vpop.permute.xlu0 %1083 }
 0x1af   : > { %1142 = vst.msk [vmem:[#allocation2 + $0x3c] sm:$0x7] %vm1127_vm1, %v1084_v55  ;;  %v1175_v58 = vpop.permute.xlu2 %1174 }
 0x1b0   : > { %1246 = vst.msk [vmem:[#allocation2 + $0x8] sm:$0xf] %vm1242_vm2, %v1175_v58 }
 0x1b3   : > { %1313 = vrot.lane.b32.xlu1 %v4001_v37, %s3463_s26 }
 0x1b4   : > { %1311 = vrot.lane.b32.xlu0 %v3998_v35, %s3463_s26 }
 0x1b5   : > { %v1092_v63 = vpop.permute.xlu1 %1091  ;;  %1315 = vrot.lane.b32.xlu2 %v4005_v6, %s3463_s26 }
 0x1b6   : > { %1146 = vst.msk [vmem:[#allocation2 + $0x4c] sm:$0x7] %vm1127_vm1, %v1092_v63  ;;  %v1090_v4 = vpop.permute.xlu0 %1089 }
 0x1b7   : > { %1145 = vst.msk [vmem:[#allocation2 + $0x48] sm:$0xf] %vm1125_vm0, %v1090_v4  ;;  %v1181_v8 = vpop.permute.xlu2 %1180 }
 0x1b8   : > { %1249 = vst.msk [vmem:[#allocation2 + $0x14] sm:$0x7] %vm1244_vm3, %v1181_v8 }
 0x1bb   : > { %1319 = vrot.lane.b32.xlu1 %v4026_v3, %s3463_s26 }
 0x1bc   : > { %1317 = vrot.lane.b32.xlu0 %v4016_v60, %s3463_s26 }
 0x1bd   : > { %v1098_v11 = vpop.permute.xlu1 %1097  ;;  %1321 = vrot.lane.b32.xlu2 %v4021_v52, %s3463_s26 }
 0x1be   : > { %1149 = vst.msk [vmem:[#allocation2 + $0x58] sm:$0xf] %vm1125_vm0, %v1098_v11  ;;  %v1096_v61 = vpop.permute.xlu0 %1095  ;;  %v790_v11 = vld [vmem:[%s3515_s19] sm:$0xf]  ;;  %vm1949_vm0 = vcmask 289024  }
 0x1bf   : > { %1148 = vst.msk [vmem:[#allocation2 + $0x54] sm:$0x7] %vm1127_vm1, %v1096_v61  ;;  %v1187_v26 = vpop.permute.xlu2 %1186  ;;  %v791_v61 = vld [vmem:[%s3515_s19 + $0x4] sm:$0xf]  ;;  %v1503_v13 = vshrl.u32 %v790_v11, 16  ;;  %v1506_v57 = vshll.u32 %v790_v11, 16 }
 0x1c0   : > { %1252 = vst.msk [vmem:[#allocation2 + $0x20] sm:$0xf] %vm1242_vm2, %v1187_v26  ;;  %v1512_v17 = vshll.u32 %v791_v61, 16  ;;  %v1516_v21 = vshrl.u32 %v791_v61, 16  ;;  %v4464_v11 = vld [vmem:[%s3515_s19 + $0x44] sm:$0x7] }
 0x1c1   : > { %v1505_v26 = vrot.slane %v1503_v13, 4  ;;  %vm2049_vm1 = vcmask 387424  }
 0x1c2   : > { %v1514_v31 = vrot.slane %v1512_v17, 5  ;;  %v4475_v17 = vld [vmem:[%s3515_s19 + $0x4c] sm:$0x7] }
 0x1c3   : > { %1325 = vrot.lane.b32.xlu1 %v4047_v19, %s3463_s26 }
 0x1c4   : > { %1323 = vrot.lane.b32.xlu0 %v4040_v33, %s3463_s26 }
 0x1c5   : > { %v1173_v28 = vpop.permute.xlu1 %1172  ;;  %1327 = vrot.lane.b32.xlu2 %v4045_v36, %s3463_s26 }
 0x1c6   : > { %1245 = vst.msk [vmem:[#allocation2 + $0x4] sm:$0x7] %vm1244_vm3, %v1173_v28  ;;  %v1171_v32 = vpop.permute.xlu0 %1170  ;;  %v1508_v28 = vrot.slane %v1506_v57, 5 }
 0x1c7   : > { %1243 = vst.msk [vmem:[#allocation2] sm:$0xf] %vm1242_vm2, %v1171_v32  ;;  %v1193_v16 = vpop.permute.xlu2 %1192  ;;  %v1518_v32 = vrot.slane %v1516_v21, 4  ;;  %v4479_v21 = vld [vmem:[%s3515_s19 + $0x54] sm:$0x7] }
 0x1c8   : > { %1255 = vst.msk [vmem:[#allocation2 + $0x2c] sm:$0x7] %vm1244_vm3, %v1193_v16  ;;  %v1509_v59 = vor.u32 %v1508_v28, %v1505_v26 }
 0x1c9   : > { %v1519_v0 = vor.u32 %v1518_v32, %v1514_v31  ;;  %v4500_v32 = vld [vmem:[%s3515_s19 + $0x5c] sm:$0x7] }
 0x1ca   : > { %v1510_v16 = vrot.slane %v1509_v59, 4 }
 0x1cb   : > { %1331 = vrot.lane.b32.xlu1 %v4068_v5, %s3463_s26  ;;  %v1520_v15 = vrot.slane %v1519_v0, 4 }
 0x1cc   : > { %1329 = vrot.lane.b32.xlu0 %v4058_v48, %s3463_s26 }
 0x1cd   : > { %v1179_v9 = vpop.permute.xlu1 %1178  ;;  %1333 = vrot.lane.b32.xlu2 %v4063_v53, %s3463_s26 }
 0x1ce   : > { %1248 = vst.msk [vmem:[#allocation2 + $0x10] sm:$0xf] %vm1242_vm2, %v1179_v9  ;;  %v1177_v22 = vpop.permute.xlu0 %1176 }
 0x1cf   : > { %1247 = vst.msk [vmem:[#allocation2 + $0xc] sm:$0x7] %vm1244_vm3, %v1177_v22  ;;  %v1199_v5 = vpop.permute.xlu2 %1198  ;;  %v1515_v22 = vsel %vm3931_vm13, %v1510_v16, %v1514_v31  ;;  %v4497_v31 = vld [vmem:[%s3515_s19 + $0x60] sm:$0xf]  ;;  %v4515_v16 = vld [vmem:[%s3515_s19 + $0x10] sm:$0xf] }
 0x1d0   : > { %1258 = vst.msk [vmem:[#allocation2 + $0x38] sm:$0xf] %vm1242_vm2, %v1199_v5  ;;  %vm1947_vm13 = vcmask 290048  }
 0x1d3   : > { %1406 = vrot.lane.b32.xlu1 %v4254_v24, %s3464_s27 }
 0x1d4   : > { %1404 = vrot.lane.b32.xlu0 %v4258_v27, %s3464_s27 }
 0x1d5   : > { %v1185_v34 = vpop.permute.xlu1 %1184  ;;  %1408 = vrot.lane.b32.xlu2 %v4178_v40, %s3464_s27 }
 0x1d6   : > { %1251 = vst.msk [vmem:[#allocation2 + $0x1c] sm:$0x7] %vm1244_vm3, %v1185_v34  ;;  %v1183_v41 = vpop.permute.xlu0 %1182 }
 0x1d7   : > { %1250 = vst.msk [vmem:[#allocation2 + $0x18] sm:$0xf] %vm1242_vm2, %v1183_v41  ;;  %v1205_v53 = vpop.permute.xlu2 %1204 }
 0x1d8   : > { %1261 = vst.msk [vmem:[#allocation2 + $0x44] sm:$0x7] %vm1244_vm3, %v1205_v53  ;;  %v4407_v53 = vld [vmem:[%s3515_s19 + $0x24] sm:$0x7] }
 0x1db   : > { %1412 = vrot.lane.b32.xlu1 %v4099_v50, %s3464_s27 }
 0x1dc   : > { %1410 = vrot.lane.b32.xlu0 %v4174_v38, %s3464_s27 }
 0x1dd   : > { %v1191_v42 = vpop.permute.xlu1 %1190  ;;  %1414 = vrot.lane.b32.xlu2 %v4095_v46, %s3464_s27 }
 0x1de   : > { %1254 = vst.msk [vmem:[#allocation2 + $0x28] sm:$0xf] %vm1242_vm2, %v1191_v42  ;;  %v1189_v10 = vpop.permute.xlu0 %1188 }
 0x1df   : > { %1253 = vst.msk [vmem:[#allocation2 + $0x24] sm:$0x7] %vm1244_vm3, %v1189_v10  ;;  %v1211_v43 = vpop.permute.xlu2 %1210  ;;  %v4421_v10 = vld [vmem:[%s3515_s19 + $0x28] sm:$0xf] }
 0x1e0   : > { %1264 = vst.msk [vmem:[#allocation2 + $0x50] sm:$0xf] %vm1242_vm2, %v1211_v43  ;;  %v4428_v43 = vld [vmem:[%s3515_s19 + $0x2c] sm:$0x7] }
 0x1e3   : > { %1418 = vrot.lane.b32.xlu1 %v3937_v1, %s3464_s27 }
 0x1e4   : > { %1416 = vrot.lane.b32.xlu0 %v3942_v30, %s3464_s27 }
 0x1e5   : > { %v1197_v44 = vpop.permute.xlu1 %1196  ;;  %1420 = vrot.lane.b32.xlu2 %v3956_v18, %s3464_s27 }
 0x1e6   : > { %1257 = vst.msk [vmem:[#allocation2 + $0x34] sm:$0x7] %vm1244_vm3, %v1197_v44  ;;  %v1195_v47 = vpop.permute.xlu0 %1194 }
 0x1e7   : > { %1256 = vst.msk [vmem:[#allocation2 + $0x30] sm:$0xf] %vm1242_vm2, %v1195_v47  ;;  %v1217_v49 = vpop.permute.xlu2 %1216 }
 0x1e8   : > { %1267 = vst.msk [vmem:[#allocation2 + $0x5c] sm:$0x7] %vm1244_vm3, %v1217_v49 }
 0x1eb   : > { %1424 = vrot.lane.b32.xlu1 %v3961_v45, %s3464_s27 }
 0x1ec   : > { %1422 = vrot.lane.b32.xlu0 %v3963_v39, %s3464_s27 }
 0x1ed   : > { %v1203_v51 = vpop.permute.xlu1 %1202  ;;  %1426 = vrot.lane.b32.xlu2 %v3974_v56, %s3464_s27 }
 0x1ee   : > { %1260 = vst.msk [vmem:[#allocation2 + $0x40] sm:$0xf] %vm1242_vm2, %v1203_v51  ;;  %v1201_v62 = vpop.permute.xlu0 %1200  ;;  %v4439_v51 = vld [vmem:[%s3515_s19 + $0x34] sm:$0x7] }
 0x1ef   : > { %1259 = vst.msk [vmem:[#allocation2 + $0x3c] sm:$0x7] %vm1244_vm3, %v1201_v62  ;;  %v1292_v54 = vpop.permute.xlu2 %1291  ;;  %v4443_v62 = vld [vmem:[%s3515_s19 + $0x3c] sm:$0x7] }
 0x1f0   : > { %1363 = vst.msk [vmem:[#allocation2 + $0x8] sm:$0xf] %vm1359_vm4, %v1292_v54  ;;  %v4446_v54 = vld [vmem:[%s3515_s19 + $0x38] sm:$0xf] }
 0x1f3   : > { %1430 = vrot.lane.b32.xlu1 %v3979_v2, %s3464_s27 }
 0x1f4   : > { %1428 = vrot.lane.b32.xlu0 %v3984_v12, %s3464_s27 }
 0x1f5   : > { %v1209_v55 = vpop.permute.xlu1 %1208  ;;  %1432 = vrot.lane.b32.xlu2 %v3998_v35, %s3464_s27 }
 0x1f6   : > { %1263 = vst.msk [vmem:[#allocation2 + $0x4c] sm:$0x7] %vm1244_vm3, %v1209_v55  ;;  %v1207_v58 = vpop.permute.xlu0 %1206 }
 0x1f7   : > { %1262 = vst.msk [vmem:[#allocation2 + $0x48] sm:$0xf] %vm1242_vm2, %v1207_v58  ;;  %v1298_v63 = vpop.permute.xlu2 %1297 }
 0x1f8   : > { %1366 = vst.msk [vmem:[#allocation2 + $0x14] sm:$0x7] %vm1361_vm5, %v1298_v63 }
 0x1fb   : > { %1436 = vrot.lane.b32.xlu1 %v4005_v6, %s3464_s27 }
 0x1fc   : > { %1434 = vrot.lane.b32.xlu0 %v4001_v37, %s3464_s27 }
 0x1fd   : > { %v1215_v4 = vpop.permute.xlu1 %1214  ;;  %1438 = vrot.lane.b32.xlu2 %v4016_v60, %s3464_s27 }
 0x1fe   : > { %1266 = vst.msk [vmem:[#allocation2 + $0x58] sm:$0xf] %vm1242_vm2, %v1215_v4  ;;  %v1213_v8 = vpop.permute.xlu0 %1212  ;;  %v4457_v4 = vld [vmem:[%s3515_s19 + $0x40] sm:$0xf]  ;;  %vm2149_vm2 = vcmask 485824  }
 0x1ff   : > { %1265 = vst.msk [vmem:[#allocation2 + $0x54] sm:$0x7] %vm1244_vm3, %v1213_v8  ;;  %v1304_v23 = vpop.permute.xlu2 %1303  ;;  %v4461_v8 = vld [vmem:[%s3515_s19 + $0x48] sm:$0xf]  ;;  %vm2047_vm3 = vcmask 388448  }
 0x200   : > { %1369 = vst.msk [vmem:[#allocation2 + $0x20] sm:$0xf] %vm1359_vm4, %v1304_v23  ;;  %v4482_v23 = vld [vmem:[%s3515_s19 + $0x50] sm:$0xf] }
 0x203   : > { %1442 = vrot.lane.b32.xlu1 %v4021_v52, %s3464_s27 }
 0x204   : > { %1440 = vrot.lane.b32.xlu0 %v4026_v3, %s3464_s27 }
 0x205   : > { %v1290_v25 = vpop.permute.xlu1 %1289  ;;  %1444 = vrot.lane.b32.xlu2 %v4040_v33, %s3464_s27 }
 0x206   : > { %1362 = vst.msk [vmem:[#allocation2 + $0x4] sm:$0x7] %vm1361_vm5, %v1290_v25  ;;  %v1288_v29 = vpop.permute.xlu0 %1287 }
 0x207   : > { %1360 = vst.msk [vmem:[#allocation2] sm:$0xf] %vm1359_vm4, %v1288_v29  ;;  %v1310_v7 = vpop.permute.xlu2 %1309  ;;  %v4493_v29 = vld [vmem:[%s3515_s19 + $0x58] sm:$0xf] }
 0x208   : > { %1372 = vst.msk [vmem:[#allocation2 + $0x2c] sm:$0x7] %vm1361_vm5, %v1310_v7 }
 0x20b   : > { %1448 = vrot.lane.b32.xlu1 %v4045_v36, %s3464_s27 }
 0x20c   : > { %1446 = vrot.lane.b32.xlu0 %v4047_v19, %s3464_s27 }
 0x20d   : > { %v1296_v20 = vpop.permute.xlu1 %1295  ;;  %1450 = vrot.lane.b32.xlu2 %v4058_v48, %s3464_s27 }
 0x20e   : > { %1365 = vst.msk [vmem:[#allocation2 + $0x10] sm:$0xf] %vm1359_vm4, %v1296_v20  ;;  %v1294_v9 = vpop.permute.xlu0 %1293  ;;  %v4511_v20 = vld [vmem:[%s3515_s19 + $0x18] sm:$0xf] }
 0x20f   : > { %1364 = vst.msk [vmem:[#allocation2 + $0xc] sm:$0x7] %vm1361_vm5, %v1294_v9  ;;  %v1316_v36 = vpop.permute.xlu2 %1315  ;;  %v4518_v9 = vld [vmem:[%s3515_s19 + $0x1c] sm:$0x7] }
 0x210   : > { %1375 = vst.msk [vmem:[#allocation2 + $0x38] sm:$0xf] %vm1359_vm4, %v1316_v36 }
 0x213   : > { %1523 = vrot.lane.b32.xlu1 %v1520_v15, %s3465_s28 }
 0x214   : > { %1521 = vrot.lane.b32.xlu0 %v1515_v22, %s3465_s28 }
 0x215   : > { %v1302_v5 = vpop.permute.xlu1 %1301  ;;  %1525 = vrot.lane.b32.xlu2 %v4258_v27, %s3465_s28 }
 0x216   : > { %1368 = vst.msk [vmem:[#allocation2 + $0x1c] sm:$0x7] %vm1361_vm5, %v1302_v5  ;;  %v1300_v34 = vpop.permute.xlu0 %1299  ;;  %v4529_v5 = vld [vmem:[%s3515_s19 + $0x14] sm:$0x7] }
 0x217   : > { %1367 = vst.msk [vmem:[#allocation2 + $0x18] sm:$0xf] %vm1359_vm4, %v1300_v34  ;;  %v1322_v14 = vpop.permute.xlu2 %1321  ;;  %v1621_v34 = vld [vmem:[%s3515_s19 + $0x8] sm:$0xf] }
 0x218   : > { %1378 = vst.msk [vmem:[#allocation2 + $0x44] sm:$0x7] %vm1361_vm5, %v1322_v14 }
 0x21b   : > { %1529 = vrot.lane.b32.xlu1 %v4178_v40, %s3465_s28 }
 0x21c   : > { %1527 = vrot.lane.b32.xlu0 %v4254_v24, %s3465_s28 }
 0x21d   : > { %v1308_v48 = vpop.permute.xlu1 %1307  ;;  %1531 = vrot.lane.b32.xlu2 %v4174_v38, %s3465_s28 }
 0x21e   : > { %1371 = vst.msk [vmem:[#allocation2 + $0x28] sm:$0xf] %vm1359_vm4, %v1308_v48  ;;  %v1306_v41 = vpop.permute.xlu0 %1305 }
 0x21f   : > { %1370 = vst.msk [vmem:[#allocation2 + $0x24] sm:$0x7] %vm1361_vm5, %v1306_v41  ;;  %v1328_v27 = vpop.permute.xlu2 %1327 }
 0x220   : > { %1381 = vst.msk [vmem:[#allocation2 + $0x50] sm:$0xf] %vm1359_vm4, %v1328_v27  ;;  %v1622_v27 = vld [vmem:[%s3515_s19 + $0xc] sm:$0x7] }
 0x223   : > { %1535 = vrot.lane.b32.xlu1 %v4095_v46, %s3465_s28 }
 0x224   : > { %1533 = vrot.lane.b32.xlu0 %v4099_v50, %s3465_s28 }
 0x225   : > { %v1314_v40 = vpop.permute.xlu1 %1313  ;;  %1537 = vrot.lane.b32.xlu2 %v3942_v30, %s3465_s28 }
 0x226   : > { %1374 = vst.msk [vmem:[#allocation2 + $0x34] sm:$0x7] %vm1361_vm5, %v1314_v40  ;;  %v1312_v24 = vpop.permute.xlu0 %1311  ;;  %v1619_v40 = vld [vmem:[%s3515_s19] sm:$0xf] }
 0x227   : > { %1373 = vst.msk [vmem:[#allocation2 + $0x30] sm:$0xf] %vm1359_vm4, %v1312_v24  ;;  %v1334_v38 = vpop.permute.xlu2 %1333 }
 0x228   : > { %1384 = vst.msk [vmem:[#allocation2 + $0x5c] sm:$0x7] %vm1361_vm5, %v1334_v38 }
 0x22b   : > { %1541 = vrot.lane.b32.xlu1 %v3956_v18, %s3465_s28 }
 0x22c   : > { %1539 = vrot.lane.b32.xlu0 %v3937_v1, %s3465_s28 }
 0x22d   : > { %v1320_v46 = vpop.permute.xlu1 %1319  ;;  %1543 = vrot.lane.b32.xlu2 %v3963_v39, %s3465_s28 }
 0x22e   : > { %1377 = vst.msk [vmem:[#allocation2 + $0x40] sm:$0xf] %vm1359_vm4, %v1320_v46  ;;  %v1318_v50 = vpop.permute.xlu0 %1317 }
 0x22f   : > { %1376 = vst.msk [vmem:[#allocation2 + $0x3c] sm:$0x7] %vm1361_vm5, %v1318_v50  ;;  %v1409_v30 = vpop.permute.xlu2 %1408  ;;  %v1620_v50 = vld [vmem:[%s3515_s19 + $0x4] sm:$0x7] }
 0x230   : > { %1480 = vst.msk [vmem:[#allocation2 + $0x8] sm:$0xf] %vm1476_vm6, %v1409_v30 }
 0x233   : > { %1547 = vrot.lane.b32.xlu1 %v3974_v56, %s3465_s28 }
 0x234   : > { %1545 = vrot.lane.b32.xlu0 %v3961_v45, %s3465_s28 }
 0x235   : > { %v1326_v1 = vpop.permute.xlu1 %1325  ;;  %1549 = vrot.lane.b32.xlu2 %v3984_v12, %s3465_s28 }
 0x236   : > { %1380 = vst.msk [vmem:[#allocation2 + $0x4c] sm:$0x7] %vm1361_vm5, %v1326_v1  ;;  %v1324_v18 = vpop.permute.xlu0 %1323 }
 0x237   : > { %1379 = vst.msk [vmem:[#allocation2 + $0x48] sm:$0xf] %vm1359_vm4, %v1324_v18  ;;  %v1415_v39 = vpop.permute.xlu2 %1414 }
 0x238   : > { %1483 = vst.msk [vmem:[#allocation2 + $0x14] sm:$0x7] %vm1478_vm7, %v1415_v39 }
 0x23b   : > { %1553 = vrot.lane.b32.xlu1 %v3998_v35, %s3465_s28 }
 0x23c   : > { %1551 = vrot.lane.b32.xlu0 %v3979_v2, %s3465_s28 }
 0x23d   : > { %v1332_v45 = vpop.permute.xlu1 %1331  ;;  %1555 = vrot.lane.b32.xlu2 %v4001_v37, %s3465_s28 }
 0x23e   : > { %1383 = vst.msk [vmem:[#allocation2 + $0x58] sm:$0xf] %vm1359_vm4, %v1332_v45  ;;  %v1330_v56 = vpop.permute.xlu0 %1329  ;;  %vm2253_vm4 = vcmask 1040384  }
 0x23f   : > { %1382 = vst.msk [vmem:[#allocation2 + $0x54] sm:$0x7] %vm1361_vm5, %v1330_v56  ;;  %v1421_v12 = vpop.permute.xlu2 %1420  ;;  %vm2257_vm5 = vcmask 1041409  }
 0x240   : > { %1486 = vst.msk [vmem:[#allocation2 + $0x20] sm:$0xf] %vm1476_vm6, %v1421_v12 }
 0x243   : > { %1559 = vrot.lane.b32.xlu1 %v4016_v60, %s3465_s28 }
 0x244   : > { %1557 = vrot.lane.b32.xlu0 %v4005_v6, %s3465_s28 }
 0x245   : > { %v1407_v2 = vpop.permute.xlu1 %1406  ;;  %1561 = vrot.lane.b32.xlu2 %v4026_v3, %s3465_s28  ;;  %v4410_v3 = vld [vmem:[%s3515_s19 + $0x20] sm:$0xf] }
 0x246   : > { %1479 = vst.msk [vmem:[#allocation2 + $0x4] sm:$0x7] %vm1478_vm7, %v1407_v2  ;;  %v1405_v35 = vpop.permute.xlu0 %1404 }
 0x247   : > { %1477 = vst.msk [vmem:[#allocation2] sm:$0xf] %vm1476_vm6, %v1405_v35  ;;  %v1427_v37 = vpop.permute.xlu2 %1426 }
 0x248   : > { %1489 = vst.msk [vmem:[#allocation2 + $0x2c] sm:$0x7] %vm1478_vm7, %v1427_v37 }
 0x24b   : > { %1565 = vrot.lane.b32.xlu1 %v4040_v33, %s3465_s28 }
 0x24c   : > { %1563 = vrot.lane.b32.xlu0 %v4021_v52, %s3465_s28 }
 0x24d   : > { %v1413_v6 = vpop.permute.xlu1 %1412  ;;  %1567 = vrot.lane.b32.xlu2 %v4047_v19, %s3465_s28  ;;  %v4425_v19 = vld [vmem:[%s3515_s19 + $0x30] sm:$0xf] }
 0x24e   : > { %1482 = vst.msk [vmem:[#allocation2 + $0x10] sm:$0xf] %vm1476_vm6, %v1413_v6  ;;  %v1411_v60 = vpop.permute.xlu0 %1410 }
 0x24f   : > { %1481 = vst.msk [vmem:[#allocation2 + $0xc] sm:$0x7] %vm1478_vm7, %v1411_v60  ;;  %v1433_v52 = vpop.permute.xlu2 %1432 }
 0x250   : > { %1492 = vst.msk [vmem:[#allocation2 + $0x38] sm:$0xf] %vm1476_vm6, %v1433_v52 }
 0x253   : > { %1677 = vrot.lane.b32.xlu1 %v4407_v53, %s3466_s29 }
 0x254   : > { %1675 = vrot.lane.b32.xlu0 %v4410_v3, %s3466_s29 }
 0x255   : > { %v1419_v33 = vpop.permute.xlu1 %1418  ;;  %1679 = vrot.lane.b32.xlu2 %v4421_v10, %s3466_s29 }
 0x256   : > { %1485 = vst.msk [vmem:[#allocation2 + $0x1c] sm:$0x7] %vm1478_vm7, %v1419_v33  ;;  %v1417_v42 = vpop.permute.xlu0 %1416 }
 0x257   : > { %1484 = vst.msk [vmem:[#allocation2 + $0x18] sm:$0xf] %vm1476_vm6, %v1417_v42  ;;  %v1439_v44 = vpop.permute.xlu2 %1438 }
 0x258   : > { %1495 = vst.msk [vmem:[#allocation2 + $0x44] sm:$0x7] %vm1478_vm7, %v1439_v44 }
 0x25b   : > { %1683 = vrot.lane.b32.xlu1 %v4425_v19, %s3466_s29 }
 0x25c   : > { %1681 = vrot.lane.b32.xlu0 %v4428_v43, %s3466_s29 }
 0x25d   : > { %v1425_v47 = vpop.permute.xlu1 %1424  ;;  %1685 = vrot.lane.b32.xlu2 %v4439_v51, %s3466_s29 }
 0x25e   : > { %1488 = vst.msk [vmem:[#allocation2 + $0x28] sm:$0xf] %vm1476_vm6, %v1425_v47  ;;  %v1423_v49 = vpop.permute.xlu0 %1422 }
 0x25f   : > { %1487 = vst.msk [vmem:[#allocation2 + $0x24] sm:$0x7] %vm1478_vm7, %v1423_v49  ;;  %v1445_v55 = vpop.permute.xlu2 %1444 }
 0x260   : > { %1498 = vst.msk [vmem:[#allocation2 + $0x50] sm:$0xf] %vm1476_vm6, %v1445_v55 }
 0x263   : > { %1689 = vrot.lane.b32.xlu1 %v4443_v62, %s3466_s29 }
 0x264   : > { %1687 = vrot.lane.b32.xlu0 %v4446_v54, %s3466_s29 }
 0x265   : > { %v1431_v58 = vpop.permute.xlu1 %1430  ;;  %1691 = vrot.lane.b32.xlu2 %v4457_v4, %s3466_s29 }
 0x266   : > { %1491 = vst.msk [vmem:[#allocation2 + $0x34] sm:$0x7] %vm1478_vm7, %v1431_v58  ;;  %v1429_v63 = vpop.permute.xlu0 %1428 }
 0x267   : > { %1490 = vst.msk [vmem:[#allocation2 + $0x30] sm:$0xf] %vm1476_vm6, %v1429_v63  ;;  %v1451_v61 = vpop.permute.xlu2 %1450 }
 0x268   : > { %1501 = vst.msk [vmem:[#allocation2 + $0x5c] sm:$0x7] %vm1478_vm7, %v1451_v61 }
 0x26b   : > { %1695 = vrot.lane.b32.xlu1 %v4461_v8, %s3466_s29 }
 0x26c   : > { %1693 = vrot.lane.b32.xlu0 %v4464_v11, %s3466_s29 }
 0x26d   : > { %v1437_v13 = vpop.permute.xlu1 %1436  ;;  %1697 = vrot.lane.b32.xlu2 %v4475_v17, %s3466_s29 }
 0x26e   : > { %1494 = vst.msk [vmem:[#allocation2 + $0x40] sm:$0xf] %vm1476_vm6, %v1437_v13  ;;  %v1435_v57 = vpop.permute.xlu0 %1434 }
 0x26f   : > { %1493 = vst.msk [vmem:[#allocation2 + $0x3c] sm:$0x7] %vm1478_vm7, %v1435_v57  ;;  %v1526_v25 = vpop.permute.xlu2 %1525 }
 0x270   : > { %1597 = vst.msk [vmem:[#allocation2 + $0x8] sm:$0xf] %vm1593_vm8, %v1526_v25 }
 0x273   : > { %1701 = vrot.lane.b32.xlu1 %v4479_v21, %s3466_s29 }
 0x274   : > { %1699 = vrot.lane.b32.xlu0 %v4482_v23, %s3466_s29 }
 0x275   : > { %v1443_v26 = vpop.permute.xlu1 %1442  ;;  %1703 = vrot.lane.b32.xlu2 %v4493_v29, %s3466_s29 }
 0x276   : > { %1497 = vst.msk [vmem:[#allocation2 + $0x4c] sm:$0x7] %vm1478_vm7, %v1443_v26  ;;  %v1441_v28 = vpop.permute.xlu0 %1440 }
 0x277   : > { %1496 = vst.msk [vmem:[#allocation2 + $0x48] sm:$0xf] %vm1476_vm6, %v1441_v28  ;;  %v1532_v59 = vpop.permute.xlu2 %1531 }
 0x278   : > { %1600 = vst.msk [vmem:[#allocation2 + $0x14] sm:$0x7] %vm1595_vm9, %v1532_v59 }
 0x27b   : > { %1707 = vrot.lane.b32.xlu1 %v4497_v31, %s3466_s29 }
 0x27c   : > { %1705 = vrot.lane.b32.xlu0 %v4500_v32, %s3466_s29 }
 0x27d   : > { %v1449_v0 = vpop.permute.xlu1 %1448  ;;  %1775 = vrot.lane.b32.xlu2 %v4511_v20, %s3467_s30 }
 0x27e   : > { %1500 = vst.msk [vmem:[#allocation2 + $0x58] sm:$0xf] %vm1476_vm6, %v1449_v0  ;;  %v1447_v7 = vpop.permute.xlu0 %1446  ;;  %vm2261_vm6 = vcmask 1042434  }
 0x27f   : > { %1499 = vst.msk [vmem:[#allocation2 + $0x54] sm:$0x7] %vm1478_vm7, %v1447_v7  ;;  %v1538_v15 = vpop.permute.xlu2 %1537  ;;  %vm2147_vm7 = vcmask 486848  }
 0x280   : > { %1603 = vst.msk [vmem:[#allocation2 + $0x20] sm:$0xf] %vm1593_vm8, %v1538_v15  ;;  %v3379_v15 = vld [vmem:[%s5210_s1 + $0x18] sm:$0x30] }
 0x283   : > { %1875 = vrot.lane.b32.xlu1 %v4515_v16, %s3468_s4 }
 0x284   : > { %1777 = vrot.lane.b32.xlu0 %v4518_v9, %s3467_s30 }
 0x285   : > { %v1524_v22 = vpop.permute.xlu1 %1523  ;;  %1877 = vrot.lane.b32.xlu2 %v4529_v5, %s3468_s4 }
 0x286   : > { %1596 = vst.msk [vmem:[#allocation2 + $0x4] sm:$0x7] %vm1595_vm9, %v1524_v22  ;;  %v1522_v36 = vpop.permute.xlu0 %1521 }
 0x287   : > { %1594 = vst.msk [vmem:[#allocation2] sm:$0xf] %vm1593_vm8, %v1522_v36  ;;  %v1544_v14 = vpop.permute.xlu2 %1543 }
 0x288   : > { %1606 = vst.msk [vmem:[#allocation2 + $0x2c] sm:$0x7] %vm1595_vm9, %v1544_v14 }
 0x28b   : > { %1975 = vrot.lane.b32.xlu1 %v1621_v34, %s3469_s5 }
 0x28c   : > { %1779 = vrot.lane.b32.xlu0 %v4410_v3, %s3467_s30 }
 0x28d   : > { %v1530_v48 = vpop.permute.xlu1 %1529  ;;  %1977 = vrot.lane.b32.xlu2 %v1622_v27, %s3469_s5 }
 0x28e   : > { %1599 = vst.msk [vmem:[#allocation2 + $0x10] sm:$0xf] %vm1593_vm8, %v1530_v48  ;;  %v1528_v41 = vpop.permute.xlu0 %1527 }
 0x28f   : > { %1598 = vst.msk [vmem:[#allocation2 + $0xc] sm:$0x7] %vm1595_vm9, %v1528_v41  ;;  %v1550_v24 = vpop.permute.xlu2 %1549  ;;  %v3377_v41 = vld [vmem:[%s5210_s1 + $0x8] sm:$0xff] }
 0x290   : > { %1609 = vst.msk [vmem:[#allocation2 + $0x38] sm:$0xf] %vm1593_vm8, %v1550_v24 }
 0x293   : > { %2075 = vrot.lane.b32.xlu1 %v1619_v40, %s3470_s6 }
 0x294   : > { %1879 = vrot.lane.b32.xlu0 %v4511_v20, %s3468_s4 }
 0x295   : > { %v1536_v38 = vpop.permute.xlu1 %1535  ;;  %2077 = vrot.lane.b32.xlu2 %v1620_v50, %s3470_s6 }
 0x296   : > { %1602 = vst.msk [vmem:[#allocation2 + $0x1c] sm:$0x7] %vm1595_vm9, %v1536_v38  ;;  %v1534_v46 = vpop.permute.xlu0 %1533 }
 0x297   : > { %1601 = vst.msk [vmem:[#allocation2 + $0x18] sm:$0xf] %vm1593_vm8, %v1534_v46  ;;  %v1556_v30 = vpop.permute.xlu2 %1555 }
 0x298   : > { %1612 = vst.msk [vmem:[#allocation2 + $0x44] sm:$0x7] %vm1595_vm9, %v1556_v30 }
 0x29b   : > { %2079 = vrot.lane.b32.xlu1 %v1621_v34, %s3470_s6 }
 0x29c   : > { %1979 = vrot.lane.b32.xlu0 %v4515_v16, %s3469_s5 }
 0x29d   : > { %v1542_v1 = vpop.permute.xlu1 %1541  ;;  %1781 = vrot.lane.b32.xlu2 %v4407_v53, %s3467_s30 }
 0x29e   : > { %1605 = vst.msk [vmem:[#allocation2 + $0x28] sm:$0xf] %vm1593_vm8, %v1542_v1  ;;  %v1540_v18 = vpop.permute.xlu0 %1539 }
 0x29f   : > { %1604 = vst.msk [vmem:[#allocation2 + $0x24] sm:$0x7] %vm1595_vm9, %v1540_v18  ;;  %v1562_v39 = vpop.permute.xlu2 %1561 }
 0x2a0   : > { %1615 = vst.msk [vmem:[#allocation2 + $0x50] sm:$0xf] %vm1593_vm8, %v1562_v39 }
 0x2a3   : > { %1881 = vrot.lane.b32.xlu1 %v4518_v9, %s3468_s4 }
 0x2a4   : > { %1783 = vrot.lane.b32.xlu0 %v4421_v10, %s3467_s30 }
 0x2a5   : > { %v1548_v45 = vpop.permute.xlu1 %1547  ;;  %1883 = vrot.lane.b32.xlu2 %v4410_v3, %s3468_s4 }
 0x2a6   : > { %1608 = vst.msk [vmem:[#allocation2 + $0x34] sm:$0x7] %vm1595_vm9, %v1548_v45  ;;  %v1546_v56 = vpop.permute.xlu0 %1545 }
 0x2a7   : > { %1607 = vst.msk [vmem:[#allocation2 + $0x30] sm:$0xf] %vm1593_vm8, %v1546_v56  ;;  %v1568_v12 = vpop.permute.xlu2 %1567 }
 0x2a8   : > { %1618 = vst.msk [vmem:[#allocation2 + $0x5c] sm:$0x7] %vm1595_vm9, %v1568_v12 }
 0x2ab   : > { %1983 = vrot.lane.b32.xlu1 %v4511_v20, %s3469_s5 }
 0x2ac   : > { %1981 = vrot.lane.b32.xlu0 %v4529_v5, %s3469_s5 }
 0x2ad   : > { %v1554_v2 = vpop.permute.xlu1 %1553  ;;  %2081 = vrot.lane.b32.xlu2 %v1622_v27, %s3470_s6 }
 0x2ae   : > { %1611 = vst.msk [vmem:[#allocation2 + $0x40] sm:$0xf] %vm1593_vm8, %v1554_v2  ;;  %v1552_v35 = vpop.permute.xlu0 %1551 }
 0x2af   : > { %1610 = vst.msk [vmem:[#allocation2 + $0x3c] sm:$0x7] %vm1595_vm9, %v1552_v35  ;;  %v1680_v37 = vpop.permute.xlu2 %1679 }
 0x2b0   : > { %1751 = vst.msk [vmem:[#allocation2 + $0x8] sm:$0xf] %vm1747_vm10, %v1680_v37 }
 0x2b3   : > { %1785 = vrot.lane.b32.xlu1 %v4428_v43, %s3467_s30 }
 0x2b4   : > { %2083 = vrot.lane.b32.xlu0 %v4515_v16, %s3470_s6 }
 0x2b5   : > { %v1560_v6 = vpop.permute.xlu1 %1559  ;;  %1787 = vrot.lane.b32.xlu2 %v4425_v19, %s3467_s30 }
 0x2b6   : > { %1614 = vst.msk [vmem:[#allocation2 + $0x4c] sm:$0x7] %vm1595_vm9, %v1560_v6  ;;  %v1558_v60 = vpop.permute.xlu0 %1557 }
 0x2b7   : > { %1613 = vst.msk [vmem:[#allocation2 + $0x48] sm:$0xf] %vm1593_vm8, %v1558_v60  ;;  %v1686_v52 = vpop.permute.xlu2 %1685 }
 0x2b8   : > { %1754 = vst.msk [vmem:[#allocation2 + $0x14] sm:$0x7] %vm1749_vm11, %v1686_v52 }
 0x2bb   : > { %1887 = vrot.lane.b32.xlu1 %v4421_v10, %s3468_s4 }
 0x2bc   : > { %1885 = vrot.lane.b32.xlu0 %v4407_v53, %s3468_s4 }
 0x2bd   : > { %v1566_v33 = vpop.permute.xlu1 %1565  ;;  %1985 = vrot.lane.b32.xlu2 %v4518_v9, %s3469_s5 }
 0x2be   : > { %1617 = vst.msk [vmem:[#allocation2 + $0x58] sm:$0xf] %vm1593_vm8, %v1566_v33  ;;  %v1564_v42 = vpop.permute.xlu0 %1563  ;;  %vm2265_vm8 = vcmask 1043459  }
 0x2bf   : > { %1616 = vst.msk [vmem:[#allocation2 + $0x54] sm:$0x7] %vm1595_vm9, %v1564_v42  ;;  %v1692_v44 = vpop.permute.xlu2 %1691  ;;  %vm2694_vm9 = vcmask 490496  }
 0x2c0   : > { %1757 = vst.msk [vmem:[#allocation2 + $0x20] sm:$0xf] %vm1747_vm10, %v1692_v44 }
 0x2c3   : > { %2085 = vrot.lane.b32.xlu1 %v4529_v5, %s3470_s6 }
 0x2c4   : > { %1987 = vrot.lane.b32.xlu0 %v4410_v3, %s3469_s5 }
 0x2c5   : > { %v1678_v47 = vpop.permute.xlu1 %1677  ;;  %2087 = vrot.lane.b32.xlu2 %v4511_v20, %s3470_s6 }
 0x2c6   : > { %1750 = vst.msk [vmem:[#allocation2 + $0x4] sm:$0x7] %vm1749_vm11, %v1678_v47  ;;  %v1676_v49 = vpop.permute.xlu0 %1675 }
 0x2c7   : > { %1748 = vst.msk [vmem:[#allocation2] sm:$0xf] %vm1747_vm10, %v1676_v49  ;;  %v1698_v55 = vpop.permute.xlu2 %1697 }
 0x2c8   : > { %1760 = vst.msk [vmem:[#allocation2 + $0x2c] sm:$0x7] %vm1749_vm11, %v1698_v55 }
 0x2cb   : > { %1791 = vrot.lane.b32.xlu1 %v4446_v54, %s3467_s30 }
 0x2cc   : > { %1789 = vrot.lane.b32.xlu0 %v4439_v51, %s3467_s30 }
 0x2cd   : > { %v1684_v58 = vpop.permute.xlu1 %1683  ;;  %1889 = vrot.lane.b32.xlu2 %v4428_v43, %s3468_s4 }
 0x2ce   : > { %1753 = vst.msk [vmem:[#allocation2 + $0x10] sm:$0xf] %vm1747_vm10, %v1684_v58  ;;  %v1682_v63 = vpop.permute.xlu0 %1681 }
 0x2cf   : > { %1752 = vst.msk [vmem:[#allocation2 + $0xc] sm:$0x7] %vm1749_vm11, %v1682_v63  ;;  %v1704_v61 = vpop.permute.xlu2 %1703 }
 0x2d0   : > { %1763 = vst.msk [vmem:[#allocation2 + $0x38] sm:$0xf] %vm1747_vm10, %v1704_v61 }
 0x2d3   : > { %1989 = vrot.lane.b32.xlu1 %v4407_v53, %s3469_s5 }
 0x2d4   : > { %1891 = vrot.lane.b32.xlu0 %v4425_v19, %s3468_s4 }
 0x2d5   : > { %v1690_v13 = vpop.permute.xlu1 %1689  ;;  %1991 = vrot.lane.b32.xlu2 %v4421_v10, %s3469_s5 }
 0x2d6   : > { %1756 = vst.msk [vmem:[#allocation2 + $0x1c] sm:$0x7] %vm1749_vm11, %v1690_v13  ;;  %v1688_v57 = vpop.permute.xlu0 %1687 }
 0x2d7   : > { %1755 = vst.msk [vmem:[#allocation2 + $0x18] sm:$0xf] %vm1747_vm10, %v1688_v57  ;;  %v1776_v25 = vpop.permute.xlu2 %1775 }
 0x2d8   : > { %1848 = vst.msk [vmem:[#allocation2] sm:$0xf] %vm1847_vm12, %v1776_v25 }
 0x2db   : > { %2091 = vrot.lane.b32.xlu1 %v4410_v3, %s3470_s6 }
 0x2dc   : > { %2089 = vrot.lane.b32.xlu0 %v4518_v9, %s3470_s6  ;;  %v3360_v9 = vld [vmem:[%s5210_s1 + $0x18] sm:$0xf] }
 0x2dd   : > { %v1696_v26 = vpop.permute.xlu1 %1695  ;;  %1793 = vrot.lane.b32.xlu2 %v4443_v62, %s3467_s30  ;;  %v3361_v36 = vor.u32 %v3379_v15, %v3360_v9 }
 0x2de   : > { %1759 = vst.msk [vmem:[#allocation2 + $0x28] sm:$0xf] %vm1747_vm10, %v1696_v26  ;;  %v1694_v28 = vpop.permute.xlu0 %1693 }
 0x2df   : > { %1758 = vst.msk [vmem:[#allocation2 + $0x24] sm:$0x7] %vm1749_vm11, %v1694_v28  ;;  %v1878_v59 = vpop.permute.xlu2 %1877  ;;  %v2719_v34 = vsel %vm2717_vm15, %v3361_v36, 0  ;;  %v4736_v36 = vld [vmem:[%s3515_s19 + $0x64] sm:$0x7] }
 0x2e0   : > { %2725 = vmatpush.bf16.msra.mxu0 %v2719_v34  ;;  %3380 = vmatpush.bf16.msra.mxu1 %v2719_v34 }
 0x2e1   : > { %3381 = vmatpush.bf16.msra.mxu2 %v2719_v34  ;;  %3382 = vmatpush.bf16.msra.mxu3 %v2719_v34 }
 0x2e3   : > { %1893 = vrot.lane.b32.xlu1 %v4439_v51, %s3468_s4 }
 0x2e4   : > { %1795 = vrot.lane.b32.xlu0 %v4457_v4, %s3467_s30 }
 0x2e5   : > { %v1702_v3 = vpop.permute.xlu1 %1701  ;;  %1895 = vrot.lane.b32.xlu2 %v4446_v54, %s3468_s4 }
 0x2e6   : > { %1762 = vst.msk [vmem:[#allocation2 + $0x34] sm:$0x7] %vm1749_vm11, %v1702_v3  ;;  %v1700_v0 = vpop.permute.xlu0 %1699 }
 0x2e7   : > { %1761 = vst.msk [vmem:[#allocation2 + $0x30] sm:$0xf] %vm1747_vm10, %v1700_v0  ;;  %v1978_v7 = vpop.permute.xlu2 %1977 }
 0x2eb   : > { %1993 = vrot.lane.b32.xlu1 %v4428_v43, %s3469_s5 }
 0x2ec   : > { %1797 = vrot.lane.b32.xlu0 %v4464_v11, %s3467_s30 }
 0x2ed   : > { %v1708_v20 = vpop.permute.xlu1 %1707  ;;  %1995 = vrot.lane.b32.xlu2 %v4425_v19, %s3469_s5 }
 0x2ee   : > { %1765 = vst.msk [vmem:[#allocation2 + $0x40] sm:$0xf] %vm1747_vm10, %v1708_v20  ;;  %v1706_v16 = vpop.permute.xlu0 %1705 }
 0x2ef   : > { %1764 = vst.msk [vmem:[#allocation2 + $0x3c] sm:$0x7] %vm1749_vm11, %v1706_v16  ;;  %v2078_v22 = vpop.permute.xlu2 %2077 }
 0x2f3   : > { %2093 = vrot.lane.b32.xlu1 %v4407_v53, %s3470_s6  ;;  %v3378_v53 = vld [vmem:[%s5210_s1 + $0x10] sm:$0xff] }
 0x2f4   : > { %1897 = vrot.lane.b32.xlu0 %v4443_v62, %s3468_s4  ;;  %2726 = vmatpush.bf16.msra.mxu0 %v3378_v53 }
 0x2f5   : > { %v1876_v5 = vpop.permute.xlu1 %1875  ;;  %2095 = vrot.lane.b32.xlu2 %v4421_v10, %s3470_s6  ;;  %3383 = vmatpush.bf16.msra.mxu1 %v3378_v53 }
 0x2f6   : > { %1948 = vst.msk [vmem:[#allocation2] sm:$0xf] %vm1947_vm13, %v1876_v5  ;;  %v1778_v14 = vpop.permute.xlu0 %1777  ;;  %3384 = vmatpush.bf16.msra.mxu2 %v3378_v53  ;;  %3385 = vmatpush.bf16.msra.mxu3 %v3378_v53 }
 0x2f7   : > { %1850 = vst.msk [vmem:[#allocation2 + $0x4] sm:$0x7] %vm1849_vm14, %v1778_v14  ;;  %v1782_v48 = vpop.permute.xlu2 %1781 }
 0x2f8   : > { %1950 = vst.msk [vmem:[#allocation2 + $0x4] sm:$0x7] %vm1949_vm0, %v1878_v59  ;;  %2727 = vmatpush.bf16.msra.mxu0 %v3377_v41 }
 0x2f9   : > { %2050 = vst.msk [vmem:[#allocation2 + $0x4] sm:$0x7] %vm2049_vm1, %v1978_v7  ;;  %3386 = vmatpush.bf16.msra.mxu1 %v3377_v41 }
 0x2fa   : > { %2150 = vst.msk [vmem:[#allocation2 + $0x4] sm:$0x7] %vm2149_vm2, %v2078_v22  ;;  %3387 = vmatpush.bf16.msra.mxu2 %v3377_v41  ;;  %3388 = vmatpush.bf16.msra.mxu3 %v3377_v41 }
 0x2fb   : > { %2097 = vrot.lane.b32.xlu1 %v4428_v43, %s3470_s6  ;;  %1852 = vst.msk [vmem:[#allocation2 + $0xc] sm:$0x7] %vm1849_vm14, %v1782_v48  ;;  %v3376_v43 = vld [vmem:[%s5210_s1] sm:$0xff] }
 0x2fc   : > { %1997 = vrot.lane.b32.xlu0 %v4439_v51, %s3469_s5  ;;  %2728 = vmatpush.bf16.msra.mxu0 %v3376_v43 }
 0x2fd   : > { %v1976_v10 = vpop.permute.xlu1 %1975  ;;  %1799 = vrot.lane.b32.xlu2 %v4461_v8, %s3467_s30  ;;  %3389 = vmatpush.bf16.msra.mxu1 %v3376_v43 }
 0x2fe   : > { %2048 = vst.msk [vmem:[#allocation2] sm:$0xf] %vm2047_vm3, %v1976_v10  ;;  %v1780_v27 = vpop.permute.xlu0 %1779  ;;  %3390 = vmatpush.bf16.msra.mxu2 %v3376_v43  ;;  %3391 = vmatpush.bf16.msra.mxu3 %v3376_v43 }
 0x2ff   : > { %1851 = vst.msk [vmem:[#allocation2 + $0x8] sm:$0xf] %vm1847_vm12, %v1780_v27  ;;  %v1884_v38 = vpop.permute.xlu2 %1883 }
 0x301   : > { %v2174_v40 = vld [vmem:[#allocation2 + $0x4] sm:$0x7] }
 0x302   : > { %v2230_v24 = vrot.slane %v2174_v40, 3 }
 0x303   : > { %1899 = vrot.lane.b32.xlu1 %v4457_v4, %s3468_s4 }
 0x304   : > { %1801 = vrot.lane.b32.xlu0 %v4475_v17, %s3467_s30  ;;  %v2271_v46 = vsel %vm2253_vm4, %v2174_v40, %v2230_v24  ;;  %v2272_v50 = vsel %vm2257_vm5, %v2174_v40, %v2230_v24  ;;  %v2275_v30 = vsel %vm2261_vm6, %v2174_v40, %v2230_v24  ;;  %v4753_v24 = vld [vmem:[%s3515_s19 + $0x68] sm:$0xf] }
 0x305   : > { %v2076_v1 = vpop.permute.xlu1 %2075  ;;  %v2274_v18 = vrot.slane %v2272_v50, 1  ;;  %v2277_v39 = vrot.slane %v2275_v30, 2  ;;  %2520 = vst [vmem:[#allocation1 + $0x4] ss:$9 sm:$0xff] %v2271_v46  ;;  %1901 = vrot.lane.b32.xlu2 %v4464_v11, %s3468_s4 }
 0x306   : > { %2148 = vst.msk [vmem:[#allocation2] sm:$0xf] %vm2147_vm7, %v2076_v1  ;;  %v1880_v45 = vpop.permute.xlu0 %1879 }
 0x307   : > { %1951 = vst.msk [vmem:[#allocation2 + $0x8] sm:$0xf] %vm1947_vm13, %v1880_v45  ;;  %v2082_v56 = vpop.permute.xlu2 %2081 }
 0x308   : > { %2523 = vst [vmem:[#allocation1 + $0x5] ss:$9 sm:$0xff] %v2274_v18 }
 0x309   : > { %2526 = vst [vmem:[#allocation1 + $0x6] ss:$9 sm:$0xff] %v2277_v39 }
 0x30b   : > { %2001 = vrot.lane.b32.xlu1 %v4443_v62, %s3469_s5 }
 0x30c   : > { %1999 = vrot.lane.b32.xlu0 %v4446_v54, %s3469_s5 }
 0x30d   : > { %v2173_v12 = vld [vmem:[#allocation2] sm:$0xf]  ;;  %v2080_v2 = vpop.permute.xlu1 %2079  ;;  %2099 = vrot.lane.b32.xlu2 %v4425_v19, %s3470_s6 }
 0x30e   : > { %v2229_v35 = vrot.slane %v2173_v12, 3  ;;  %v1980_v37 = vpop.permute.xlu0 %1979 }
 0x30f   : > { %2051 = vst.msk [vmem:[#allocation2 + $0x8] sm:$0xf] %vm2047_vm3, %v1980_v37  ;;  %v1788_v49 = vpop.permute.xlu2 %1787 }
 0x310   : > { %v2256_v6 = vsel %vm2253_vm4, %v2173_v12, %v2229_v35  ;;  %v2258_v60 = vsel %vm2257_vm5, %v2173_v12, %v2229_v35  ;;  %v2262_v52 = vsel %vm2261_vm6, %v2173_v12, %v2229_v35  ;;  %v2266_v33 = vsel %vm2265_vm8, %v2173_v12, %v2229_v35  ;;  %2151 = vst.msk [vmem:[#allocation2 + $0x8] sm:$0xf] %vm2147_vm7, %v2080_v2 }
 0x311   : > { %v2260_v42 = vrot.slane %v2258_v60, 1  ;;  %v2264_v44 = vrot.slane %v2262_v52, 2  ;;  %v2268_v47 = vrot.slane %v2266_v33, 3  ;;  %2509 = vst [vmem:[#allocation1] ss:$9 sm:$0xff] %v2256_v6 }
 0x312   : > { %1855 = vst.msk [vmem:[#allocation2 + $0x18] sm:$0xf] %vm1847_vm12, %v1788_v49 }
 0x313   : > { %2512 = vst [vmem:[#allocation1 + $0x1] ss:$9 sm:$0xff] %v2260_v42  ;;  %1803 = vrot.lane.b32.xlu1 %v4482_v23, %s3467_s30 }
 0x314   : > { %2515 = vst [vmem:[#allocation1 + $0x2] ss:$9 sm:$0xff] %v2264_v44  ;;  %2101 = vrot.lane.b32.xlu0 %v4439_v51, %s3470_s6 }
 0x315   : > { %2518 = vst [vmem:[#allocation1 + $0x3] ss:$9 sm:$0xff] %v2268_v47  ;;  %v1882_v55 = vpop.permute.xlu1 %1881  ;;  %1805 = vrot.lane.b32.xlu2 %v4479_v21, %s3467_s30 }
 0x316   : > { %1952 = vst.msk [vmem:[#allocation2 + $0xc] sm:$0x7] %vm1949_vm0, %v1882_v55  ;;  %v1784_v58 = vpop.permute.xlu0 %1783 }
 0x317   : > { %v2175_v63 = vld [vmem:[#allocation2 + $0x8] sm:$0xf]  ;;  %1853 = vst.msk [vmem:[#allocation2 + $0x10] sm:$0xf] %vm1847_vm12, %v1784_v58  ;;  %v1986_v51 = vpop.permute.xlu2 %1985 }
 0x318   : > { %v2231_v61 = vrot.slane %v2175_v63, 3  ;;  %1953 = vst.msk [vmem:[#allocation2 + $0x10] sm:$0xf] %vm1947_vm13, %v1884_v38 }
 0x31a   : > { %v2280_v19 = vsel %vm2253_vm4, %v2175_v63, %v2231_v61  ;;  %v2281_v57 = vsel %vm2257_vm5, %v2175_v63, %v2231_v61  ;;  %v2284_v26 = vsel %vm2261_vm6, %v2175_v63, %v2231_v61  ;;  %v2287_v28 = vsel %vm2265_vm8, %v2175_v63, %v2231_v61 }
 0x31b   : > { %2528 = vst [vmem:[#allocation1 + $0x7] ss:$9 sm:$0xff] %v2280_v19  ;;  %1905 = vrot.lane.b32.xlu1 %v4475_v17, %s3468_s4  ;;  %v2283_v59 = vrot.slane %v2281_v57, 1  ;;  %v2286_v3 = vrot.slane %v2284_v26, 2  ;;  %v2289_v7 = vrot.slane %v2287_v28, 3 }
 0x31c   : > { %1903 = vrot.lane.b32.xlu0 %v4461_v8, %s3468_s4 }
 0x31d   : > { %v1984_v13 = vpop.permute.xlu1 %1983  ;;  %2003 = vrot.lane.b32.xlu2 %v4457_v4, %s3469_s5 }
 0x31e   : > { %2053 = vst.msk [vmem:[#allocation2 + $0x10] sm:$0xf] %vm2047_vm3, %v1984_v13  ;;  %v1982_v25 = vpop.permute.xlu0 %1981 }
 0x31f   : > { %2052 = vst.msk [vmem:[#allocation2 + $0xc] sm:$0x7] %vm2049_vm1, %v1982_v25  ;;  %v2088_v20 = vpop.permute.xlu2 %2087 }
 0x320   : > { %2152 = vst.msk [vmem:[#allocation2 + $0xc] sm:$0x7] %vm2149_vm2, %v2082_v56 }
 0x322   : > { %v2529_v0 = vld [vmem:[#allocation1] sm:$0xff] }
 0x323   : > { %2531 = vst [vmem:[#allocation1] ss:$9 sm:$0xff] %v2283_v59  ;;  %3362 = vmatmul.msk.bf16.vlgmr.msra.gmra.mxu0 %vm2694_vm9, %v2529_v0  ;;  %2103 = vrot.lane.b32.xlu1 %v4446_v54, %s3470_s6  ;;  %v4803_v0 = vld [vmem:[%s3515_s19 + $0x6c] sm:$0x7] }
 0x324   : > { %2533 = vst [vmem:[#allocation1 + $0x1] ss:$9 sm:$0xff] %v2286_v3  ;;  %2005 = vrot.lane.b32.xlu0 %v4464_v11, %s3469_s5 }
 0x325   : > { %2535 = vst [vmem:[#allocation1 + $0x2] ss:$9 sm:$0xff] %v2289_v7  ;;  %v1786_v16 = vpop.permute.xlu1 %1785  ;;  %2105 = vrot.lane.b32.xlu2 %v4443_v62, %s3470_s6 }
 0x326   : > { %1854 = vst.msk [vmem:[#allocation2 + $0x14] sm:$0x7] %vm1849_vm14, %v1786_v16  ;;  %v2084_v9 = vpop.permute.xlu0 %2083 }
 0x327   : > { %v2176_v15 = vld [vmem:[#allocation2 + $0xc] sm:$0x7]  ;;  %2153 = vst.msk [vmem:[#allocation2 + $0x10] sm:$0xf] %vm2147_vm7, %v2084_v9  ;;  %v1890_v48 = vpop.permute.xlu2 %1889 }
 0x328   : > { %v2232_v22 = vrot.slane %v2176_v15, 3 }
 0x32a   : > { %v2292_v54 = vsel %vm2253_vm4, %v2176_v15, %v2232_v22  ;;  %v2293_v5 = vsel %vm2257_vm5, %v2176_v15, %v2232_v22  ;;  %v2296_v34 = vsel %vm2261_vm6, %v2176_v15, %v2232_v22 }
 0x32b   : > { %v2295_v14 = vrot.slane %v2293_v5, 1  ;;  %v2298_v53 = vrot.slane %v2296_v34, 2  ;;  %2536 = vst [vmem:[#allocation1 + $0x3] ss:$9 sm:$0xff] %v2292_v54  ;;  %1807 = vrot.lane.b32.xlu1 %v4493_v29, %s3467_s30 }
 0x32c   : > { %1709 = vrot.lane.b32.xlu0 %v4736_v36, %s3466_s29 }
 0x32d   : > { %2538 = vst [vmem:[#allocation1 + $0x4] ss:$9 sm:$0xff] %v2295_v14  ;;  %v1888_v41 = vpop.permute.xlu1 %1887  ;;  %1809 = vrot.lane.b32.xlu2 %v4500_v32, %s3467_s30 }
 0x32e   : > { %2540 = vst [vmem:[#allocation1 + $0x5] ss:$9 sm:$0xff] %v2298_v53  ;;  %v2177_v62 = vld [vmem:[#allocation2 + $0x10] sm:$0xf]  ;;  %v1886_v10 = vpop.permute.xlu0 %1885 }
 0x32f   : > { %v2233_v27 = vrot.slane %v2177_v62, 3  ;;  %1955 = vst.msk [vmem:[#allocation2 + $0x18] sm:$0xf] %vm1947_vm13, %v1888_v41  ;;  %v1992_v46 = vpop.permute.xlu2 %1991 }
 0x330   : > { %1954 = vst.msk [vmem:[#allocation2 + $0x14] sm:$0x7] %vm1949_vm0, %v1886_v10 }
 0x331   : > { %v2301_v43 = vsel %vm2253_vm4, %v2177_v62, %v2233_v27  ;;  %v2302_v40 = vsel %vm2257_vm5, %v2177_v62, %v2233_v27  ;;  %2054 = vst.msk [vmem:[#allocation2 + $0x14] sm:$0x7] %vm2049_vm1, %v1986_v51  ;;  %v2305_v1 = vsel %vm2261_vm6, %v2177_v62, %v2233_v27  ;;  %v2308_v18 = vsel %vm2265_vm8, %v2177_v62, %v2233_v27 }
 0x332   : > { %v2304_v38 = vrot.slane %v2302_v40, 1  ;;  %2541 = vst [vmem:[#allocation1 + $0x6] ss:$9 sm:$0xff] %v2301_v43  ;;  %v2307_v39 = vrot.slane %v2305_v1, 2  ;;  %v2310_v45 = vrot.slane %v2308_v18, 3 }
 0x333   : > { %1907 = vrot.lane.b32.xlu1 %v4482_v23, %s3468_s4 }
 0x334   : > { %2543 = vst [vmem:[#allocation1 + $0x7] ss:$9 sm:$0xff] %v2304_v38  ;;  %1711 = vrot.lane.b32.xlu0 %v4753_v24, %s3466_s29 }
 0x335   : > { %v2086_v50 = vpop.permute.xlu1 %2085  ;;  %1909 = vrot.lane.b32.xlu2 %v4479_v21, %s3468_s4 }
 0x336   : > { %2154 = vst.msk [vmem:[#allocation2 + $0x14] sm:$0x7] %vm2149_vm2, %v2086_v50  ;;  %v1988_v30 = vpop.permute.xlu0 %1987 }
 0x337   : > { %2055 = vst.msk [vmem:[#allocation2 + $0x18] sm:$0xf] %vm2047_vm3, %v1988_v30  ;;  %v1794_v12 = vpop.permute.xlu2 %1793 }
 0x338   : > { %2155 = vst.msk [vmem:[#allocation2 + $0x18] sm:$0xf] %vm2147_vm7, %v2088_v20 }
 0x339   : > { %1858 = vst.msk [vmem:[#allocation2 + $0x24] sm:$0x7] %vm1849_vm14, %v1794_v12 }
 0x33b   : > { %v2544_v56 = vld [vmem:[#allocation1] sm:$0xff]  ;;  %2007 = vrot.lane.b32.xlu1 %v4461_v8, %s3469_s5 }
 0x33c   : > { %2546 = vst [vmem:[#allocation1] ss:$9 sm:$0xff] %v2307_v39  ;;  %1811 = vrot.lane.b32.xlu0 %v4497_v31, %s3467_s30  ;;  %3363 = vmatmul.msk.bf16.gmra.mxu0 %vm2694_vm9, %v2544_v56 }
 0x33d   : > { %2548 = vst [vmem:[#allocation1 + $0x1] ss:$9 sm:$0xff] %v2310_v45  ;;  %v2178_v2 = vld [vmem:[#allocation2 + $0x14] sm:$0x7]  ;;  %v1792_v35 = vpop.permute.xlu1 %1791  ;;  %2009 = vrot.lane.b32.xlu2 %v4475_v17, %s3469_s5  ;;  %v4846_v45 = vld [vmem:[%s3515_s19 + $0x74] sm:$0x7] }
 0x33e   : > { %v2234_v37 = vrot.slane %v2178_v2, 3  ;;  %1857 = vst.msk [vmem:[#allocation2 + $0x20] sm:$0xf] %vm1847_vm12, %v1792_v35  ;;  %v1790_v6 = vpop.permute.xlu0 %1789 }
 0x33f   : > { %v2179_v60 = vld [vmem:[#allocation2 + $0x18] sm:$0xf]  ;;  %1856 = vst.msk [vmem:[#allocation2 + $0x1c] sm:$0x7] %vm1849_vm14, %v1790_v6  ;;  %v1896_v51 = vpop.permute.xlu2 %1895 }
 0x340   : > { %v2313_v52 = vsel %vm2253_vm4, %v2178_v2, %v2234_v37  ;;  %v2314_v33 = vsel %vm2257_vm5, %v2178_v2, %v2234_v37  ;;  %v2317_v42 = vsel %vm2261_vm6, %v2178_v2, %v2234_v37  ;;  %v2235_v44 = vrot.slane %v2179_v60, 3  ;;  %1956 = vst.msk [vmem:[#allocation2 + $0x1c] sm:$0x7] %vm1949_vm0, %v1890_v48 }
 0x341   : > { %v2316_v47 = vrot.slane %v2314_v33, 1  ;;  %v2319_v49 = vrot.slane %v2317_v42, 2  ;;  %2549 = vst [vmem:[#allocation1 + $0x2] ss:$9 sm:$0xff] %v2313_v52 }
 0x342   : > { %v2322_v55 = vsel %vm2253_vm4, %v2179_v60, %v2235_v44  ;;  %v2323_v58 = vsel %vm2257_vm5, %v2179_v60, %v2235_v44  ;;  %v2326_v63 = vsel %vm2261_vm6, %v2179_v60, %v2235_v44 }
 0x343   : > { %2551 = vst [vmem:[#allocation1 + $0x3] ss:$9 sm:$0xff] %v2316_v47  ;;  %v2325_v61 = vrot.slane %v2323_v58, 1  ;;  %v2328_v19 = vrot.slane %v2326_v63, 2  ;;  %2107 = vrot.lane.b32.xlu1 %v4457_v4, %s3470_s6  ;;  %v2329_v4 = vsel %vm2265_vm8, %v2179_v60, %v2235_v44 }
 0x344   : > { %2553 = vst [vmem:[#allocation1 + $0x4] ss:$9 sm:$0xff] %v2319_v49  ;;  %1911 = vrot.lane.b32.xlu0 %v4493_v29, %s3468_s4  ;;  %v2331_v26 = vrot.slane %v2329_v4, 3 }
 0x345   : > { %2554 = vst [vmem:[#allocation1 + $0x5] ss:$9 sm:$0xff] %v2322_v55  ;;  %v1990_v13 = vpop.permute.xlu1 %1989  ;;  %2109 = vrot.lane.b32.xlu2 %v4464_v11, %s3470_s6 }
 0x346   : > { %2556 = vst [vmem:[#allocation1 + $0x6] ss:$9 sm:$0xff] %v2325_v61  ;;  %v1892_v57 = vpop.permute.xlu0 %1891 }
 0x347   : > { %2558 = vst [vmem:[#allocation1 + $0x7] ss:$9 sm:$0xff] %v2328_v19  ;;  %v1996_v25 = vpop.permute.xlu2 %1995 }
 0x348   : > { %2056 = vst.msk [vmem:[#allocation2 + $0x1c] sm:$0x7] %vm2049_vm1, %v1990_v13 }
 0x349   : > { %1957 = vst.msk [vmem:[#allocation2 + $0x20] sm:$0xf] %vm1947_vm13, %v1892_v57 }
 0x34a   : > { %2057 = vst.msk [vmem:[#allocation2 + $0x20] sm:$0xf] %vm2047_vm3, %v1992_v46 }
 0x34b   : > { %2111 = vrot.lane.b32.xlu1 %v4461_v8, %s3470_s6  ;;  %v4806_v8 = vld [vmem:[%s3515_s19 + $0x70] sm:$0xf] }
 0x34c   : > { %2011 = vrot.lane.b32.xlu0 %v4482_v23, %s3469_s5 }
 0x34d   : > { %v2092_v28 = vpop.permute.xlu1 %2091  ;;  %1713 = vrot.lane.b32.xlu2 %v4803_v0, %s3466_s29 }
 0x34e   : > { %v2559_v59 = vld [vmem:[#allocation1] sm:$0xff]  ;;  %2157 = vst.msk [vmem:[#allocation2 + $0x20] sm:$0xf] %vm2147_vm7, %v2092_v28  ;;  %v2090_v3 = vpop.permute.xlu0 %2089 }
 0x34f   : > { %2561 = vst [vmem:[#allocation1] ss:$9 sm:$0xff] %v2331_v26  ;;  %3364 = vmatmul.msk.bf16.gmra.mxu0 %vm2694_vm9, %v2559_v59  ;;  %v2096_v11 = vpop.permute.xlu2 %2095 }
 0x350   : > { %2156 = vst.msk [vmem:[#allocation2 + $0x1c] sm:$0x7] %vm2149_vm2, %v2090_v3 }
 0x353   : > { %1813 = vrot.lane.b32.xlu1 %v4736_v36, %s3467_s30 }
 0x354   : > { %1715 = vrot.lane.b32.xlu0 %v4806_v8, %s3466_s29 }
 0x355   : > { %v2181_v7 = vld [vmem:[#allocation2 + $0x20] sm:$0xf]  ;;  %v1894_v20 = vpop.permute.xlu1 %1893  ;;  %1815 = vrot.lane.b32.xlu2 %v4753_v24, %s3467_s30 }
 0x356   : > { %v2237_v16 = vrot.slane %v2181_v7, 3  ;;  %v1796_v9 = vpop.permute.xlu0 %1795  ;;  %1958 = vst.msk [vmem:[#allocation2 + $0x24] sm:$0x7] %vm1949_vm0, %v1894_v20 }
 0x357   : > { %v2180_v15 = vld [vmem:[#allocation2 + $0x1c] sm:$0x7]  ;;  %1859 = vst.msk [vmem:[#allocation2 + $0x28] sm:$0xf] %vm1847_vm12, %v1796_v9  ;;  %v1800_v43 = vpop.permute.xlu2 %1799 }
 0x358   : > { %v2343_v22 = vsel %vm2253_vm4, %v2181_v7, %v2237_v16  ;;  %v2344_v54 = vsel %vm2257_vm5, %v2181_v7, %v2237_v16  ;;  %v2347_v5 = vsel %vm2261_vm6, %v2181_v7, %v2237_v16  ;;  %v2350_v34 = vsel %vm2265_vm8, %v2181_v7, %v2237_v16  ;;  %1959 = vst.msk [vmem:[#allocation2 + $0x28] sm:$0xf] %vm1947_vm13, %v1896_v51 }
 0x359   : > { %v2346_v14 = vrot.slane %v2344_v54, 1  ;;  %v2349_v53 = vrot.slane %v2347_v5, 2  ;;  %v2352_v48 = vrot.slane %v2350_v34, 3  ;;  %2567 = vst [vmem:[#allocation1 + $0x4] ss:$9 sm:$0xff] %v2343_v22  ;;  %v2236_v41 = vrot.slane %v2180_v15, 3 }
 0x35a   : > { %2059 = vst.msk [vmem:[#allocation2 + $0x28] sm:$0xf] %vm2047_vm3, %v1996_v25 }
 0x35b   : > { %2569 = vst [vmem:[#allocation1 + $0x5] ss:$9 sm:$0xff] %v2346_v14  ;;  %v2334_v62 = vsel %vm2253_vm4, %v2180_v15, %v2236_v41  ;;  %v2335_v10 = vsel %vm2257_vm5, %v2180_v15, %v2236_v41  ;;  %v2338_v27 = vsel %vm2261_vm6, %v2180_v15, %v2236_v41  ;;  %1915 = vrot.lane.b32.xlu1 %v4497_v31, %s3468_s4 }
 0x35c   : > { %2571 = vst [vmem:[#allocation1 + $0x6] ss:$9 sm:$0xff] %v2349_v53  ;;  %v2337_v40 = vrot.slane %v2335_v10, 1  ;;  %v2340_v38 = vrot.slane %v2338_v27, 2  ;;  %1913 = vrot.lane.b32.xlu0 %v4500_v32, %s3468_s4 }
 0x35d   : > { %2573 = vst [vmem:[#allocation1 + $0x7] ss:$9 sm:$0xff] %v2352_v48  ;;  %v1994_v46 = vpop.permute.xlu1 %1993  ;;  %2013 = vrot.lane.b32.xlu2 %v4479_v21, %s3469_s5 }
 0x35e   : > { %2562 = vst [vmem:[#allocation1 + $0x1] ss:$9 sm:$0xff] %v2334_v62  ;;  %v1798_v50 = vpop.permute.xlu0 %1797 }
 0x35f   : > { %2564 = vst [vmem:[#allocation1 + $0x2] ss:$9 sm:$0xff] %v2337_v40  ;;  %v1902_v30 = vpop.permute.xlu2 %1901 }
 0x360   : > { %2566 = vst [vmem:[#allocation1 + $0x3] ss:$9 sm:$0xff] %v2340_v38 }
 0x361   : > { %1860 = vst.msk [vmem:[#allocation2 + $0x2c] sm:$0x7] %vm1849_vm14, %v1798_v50 }
 0x362   : > { %2058 = vst.msk [vmem:[#allocation2 + $0x24] sm:$0x7] %vm2049_vm1, %v1994_v46 }
 0x363   : > { %2113 = vrot.lane.b32.xlu1 %v4475_v17, %s3470_s6  ;;  %2159 = vst.msk [vmem:[#allocation2 + $0x28] sm:$0xf] %vm2147_vm7, %v2096_v11  ;;  %v1649_v17 = vld [vmem:[%s3515_s19 + $0x78] sm:$0xf] }
 0x364   : > { %2015 = vrot.lane.b32.xlu0 %v4493_v29, %s3469_s5  ;;  %1861 = vst.msk [vmem:[#allocation2 + $0x30] sm:$0xf] %vm1847_vm12, %v1800_v43 }
 0x365   : > { %v2094_v1 = vpop.permute.xlu1 %2093  ;;  %2115 = vrot.lane.b32.xlu2 %v4482_v23, %s3470_s6 }
 0x366   : > { %v1898_v18 = vpop.permute.xlu0 %1897  ;;  %2158 = vst.msk [vmem:[#allocation2 + $0x24] sm:$0x7] %vm2149_vm2, %v2094_v1 }
 0x367   : > { %v2574_v39 = vld [vmem:[#allocation1] sm:$0xff]  ;;  %1960 = vst.msk [vmem:[#allocation2 + $0x2c] sm:$0x7] %vm1949_vm0, %v1898_v18  ;;  %v2100_v2 = vpop.permute.xlu2 %2099 }
 0x368   : > { %3365 = vmatmul.msk.bf16.vlgmr.msra.gmra.mxu1 %vm2694_vm9, %v2574_v39 }
 0x36a   : > { %v2183_v56 = vld [vmem:[#allocation2 + $0x28] sm:$0xf] }
 0x36b   : > { %v2239_v12 = vrot.slane %v2183_v56, 3  ;;  %1719 = vrot.lane.b32.xlu1 %v1649_v17, %s3466_s29 }
 0x36c   : > { %1717 = vrot.lane.b32.xlu0 %v4846_v45, %s3466_s29 }
 0x36d   : > { %v2364_v35 = vsel %vm2253_vm4, %v2183_v56, %v2239_v12  ;;  %v2365_v37 = vsel %vm2257_vm5, %v2183_v56, %v2239_v12  ;;  %v2368_v6 = vsel %vm2261_vm6, %v2183_v56, %v2239_v12  ;;  %v2371_v60 = vsel %vm2265_vm8, %v2183_v56, %v2239_v12  ;;  %v2182_v52 = vld [vmem:[#allocation2 + $0x24] sm:$0x7]  ;;  %v2098_v33 = vpop.permute.xlu1 %2097  ;;  %1817 = vrot.lane.b32.xlu2 %v4803_v0, %s3467_s30 }
 0x36e   : > { %v2367_v42 = vrot.slane %v2365_v37, 1  ;;  %v2370_v44 = vrot.slane %v2368_v6, 2  ;;  %v2373_v47 = vrot.slane %v2371_v60, 3  ;;  %2580 = vst [vmem:[#allocation1 + $0x3] ss:$9 sm:$0xff] %v2364_v35  ;;  %v2238_v49 = vrot.slane %v2182_v52, 3  ;;  %v1998_v23 = vpop.permute.xlu0 %1997 }
 0x36f   : > { %2060 = vst.msk [vmem:[#allocation2 + $0x2c] sm:$0x7] %vm2049_vm1, %v1998_v23  ;;  %v1806_v51 = vpop.permute.xlu2 %1805 }
 0x370   : > { %2582 = vst [vmem:[#allocation1 + $0x4] ss:$9 sm:$0xff] %v2367_v42  ;;  %v2355_v55 = vsel %vm2253_vm4, %v2182_v52, %v2238_v49  ;;  %v2356_v58 = vsel %vm2257_vm5, %v2182_v52, %v2238_v49  ;;  %v2359_v63 = vsel %vm2261_vm6, %v2182_v52, %v2238_v49 }
 0x371   : > { %2584 = vst [vmem:[#allocation1 + $0x5] ss:$9 sm:$0xff] %v2370_v44  ;;  %v2358_v61 = vrot.slane %v2356_v58, 1  ;;  %v2361_v19 = vrot.slane %v2359_v63, 2 }
 0x372   : > { %2586 = vst [vmem:[#allocation1 + $0x6] ss:$9 sm:$0xff] %v2373_v47 }
 0x373   : > { %2575 = vst [vmem:[#allocation1] ss:$9 sm:$0xff] %v2355_v55  ;;  %1917 = vrot.lane.b32.xlu1 %v4736_v36, %s3468_s4 }
 0x374   : > { %2577 = vst [vmem:[#allocation1 + $0x1] ss:$9 sm:$0xff] %v2358_v61  ;;  %1819 = vrot.lane.b32.xlu0 %v4806_v8, %s3467_s30 }
 0x375   : > { %2579 = vst [vmem:[#allocation1 + $0x2] ss:$9 sm:$0xff] %v2361_v19  ;;  %v1900_v13 = vpop.permute.xlu1 %1899  ;;  %1919 = vrot.lane.b32.xlu2 %v4753_v24, %s3468_s4 }
 0x376   : > { %2160 = vst.msk [vmem:[#allocation2 + $0x2c] sm:$0x7] %vm2149_vm2, %v2098_v33  ;;  %v1802_v57 = vpop.permute.xlu0 %1801 }
 0x377   : > { %1862 = vst.msk [vmem:[#allocation2 + $0x34] sm:$0x7] %vm1849_vm14, %v1802_v57  ;;  %v2004_v4 = vpop.permute.xlu2 %2003 }
 0x378   : > { %1962 = vst.msk [vmem:[#allocation2 + $0x34] sm:$0x7] %vm1949_vm0, %v1902_v30 }
 0x379   : > { %1961 = vst.msk [vmem:[#allocation2 + $0x30] sm:$0xf] %vm1947_vm13, %v1900_v13 }
 0x37a   : > { %1864 = vst.msk [vmem:[#allocation2 + $0x3c] sm:$0x7] %vm1849_vm14, %v1806_v51 }
 0x37b   : > { %2019 = vrot.lane.b32.xlu1 %v4497_v31, %s3469_s5  ;;  %v1650_v31 = vld [vmem:[%s3515_s19 + $0x7c] sm:$0x7] }
 0x37c   : > { %2017 = vrot.lane.b32.xlu0 %v4500_v32, %s3469_s5 }
 0x37d   : > { %v2184_v25 = vld [vmem:[#allocation2 + $0x2c] sm:$0x7]  ;;  %v2002_v26 = vpop.permute.xlu1 %2001  ;;  %2117 = vrot.lane.b32.xlu2 %v4479_v21, %s3470_s6 }
 0x37e   : > { %v2240_v28 = vrot.slane %v2184_v25, 3  ;;  %v2000_v59 = vpop.permute.xlu0 %1999  ;;  %2062 = vst.msk [vmem:[#allocation2 + $0x34] sm:$0x7] %vm2049_vm1, %v2002_v26 }
 0x37f   : > { %2061 = vst.msk [vmem:[#allocation2 + $0x30] sm:$0xf] %vm2047_vm3, %v2000_v59  ;;  %v2106_v32 = vpop.permute.xlu2 %2105 }
 0x380   : > { %v2376_v3 = vsel %vm2253_vm4, %v2184_v25, %v2240_v28  ;;  %2161 = vst.msk [vmem:[#allocation2 + $0x30] sm:$0xf] %vm2147_vm7, %v2100_v2  ;;  %v2377_v24 = vsel %vm2257_vm5, %v2184_v25, %v2240_v28  ;;  %v2380_v8 = vsel %vm2261_vm6, %v2184_v25, %v2240_v28 }
 0x381   : > { %2587 = vst [vmem:[#allocation1 + $0x7] ss:$9 sm:$0xff] %v2376_v3  ;;  %v2379_v20 = vrot.slane %v2377_v24, 1  ;;  %v2382_v9 = vrot.slane %v2380_v8, 2 }
 0x383   : > { %1721 = vrot.lane.b32.xlu1 %v1650_v31, %s3466_s29 }
 0x384   : > { %2119 = vrot.lane.b32.xlu0 %v4493_v29, %s3470_s6 }
 0x385   : > { %v1804_v11 = vpop.permute.xlu1 %1803  ;;  %1821 = vrot.lane.b32.xlu2 %v4846_v45, %s3467_s30 }
 0x386   : > { %v2102_v7 = vpop.permute.xlu0 %2101  ;;  %1863 = vst.msk [vmem:[#allocation2 + $0x38] sm:$0xf] %vm1847_vm12, %v1804_v11 }
 0x387   : > { %v2185_v16 = vld [vmem:[#allocation2 + $0x30] sm:$0xf]  ;;  %2162 = vst.msk [vmem:[#allocation2 + $0x34] sm:$0x7] %vm2149_vm2, %v2102_v7  ;;  %v1810_v48 = vpop.permute.xlu2 %1809 }
 0x388   : > { %v2588_v15 = vld [vmem:[#allocation1] sm:$0xff]  ;;  %v2241_v22 = vrot.slane %v2185_v16, 3 }
 0x389   : > { %2590 = vst [vmem:[#allocation1] ss:$9 sm:$0xff] %v2379_v20  ;;  %3366 = vmatmul.msk.bf16.gmra.mxu1 %vm2694_vm9, %v2588_v15 }
 0x38a   : > { %2592 = vst [vmem:[#allocation1 + $0x1] ss:$9 sm:$0xff] %v2382_v9  ;;  %v2385_v21 = vsel %vm2253_vm4, %v2185_v16, %v2241_v22  ;;  %v2386_v29 = vsel %vm2257_vm5, %v2185_v16, %v2241_v22  ;;  %v2389_v54 = vsel %vm2261_vm6, %v2185_v16, %v2241_v22  ;;  %v2392_v5 = vsel %vm2265_vm8, %v2185_v16, %v2241_v22 }
 0x38b   : > { %v2388_v34 = vrot.slane %v2386_v29, 1  ;;  %v2391_v14 = vrot.slane %v2389_v54, 2  ;;  %v2394_v53 = vrot.slane %v2392_v5, 3  ;;  %2593 = vst [vmem:[#allocation1 + $0x2] ss:$9 sm:$0xff] %v2385_v21  ;;  %2021 = vrot.lane.b32.xlu1 %v4736_v36, %s3469_s5 }
 0x38c   : > { %1921 = vrot.lane.b32.xlu0 %v4803_v0, %s3468_s4  ;;  %v3432_v0 = vld [vmem:[%s3515_s19 + $0x5c] sm:$0x7]  ;;  %s3392_s19 = smul.u32 192, %s5222_s12 }
 0x38d   : > { %2595 = vst [vmem:[#allocation1 + $0x3] ss:$9 sm:$0xff] %v2388_v34  ;;  %v1906_v41 = vpop.permute.xlu1 %1905  ;;  %2121 = vrot.lane.b32.xlu2 %v3432_v0, %s3470_s6 }
 0x38e   : > { %2597 = vst [vmem:[#allocation1 + $0x4] ss:$9 sm:$0xff] %v2391_v14  ;;  %v2186_v62 = vld [vmem:[#allocation2 + $0x34] sm:$0x7]  ;;  %v1904_v10 = vpop.permute.xlu0 %1903  ;;  %s4944_s12 = scalar_lea.vmem %s5212_s3, %s3392_s19 }
 0x38f   : > { %2599 = vst [vmem:[#allocation1 + $0x5] ss:$9 sm:$0xff] %v2394_v53  ;;  %v2242_v27 = vrot.slane %v2186_v62, 3  ;;  %v1910_v38 = vpop.permute.xlu2 %1909 }
 0x390   : > { %1963 = vst.msk [vmem:[#allocation2 + $0x38] sm:$0xf] %vm1947_vm13, %v1904_v10 }
 0x391   : > { %v2397_v43 = vsel %vm2253_vm4, %v2186_v62, %v2242_v27  ;;  %v2398_v36 = vsel %vm2257_vm5, %v2186_v62, %v2242_v27  ;;  %2063 = vst.msk [vmem:[#allocation2 + $0x38] sm:$0xf] %vm2047_vm3, %v2004_v4  ;;  %v2401_v30 = vsel %vm2261_vm6, %v2186_v62, %v2242_v27  ;;  %v4937_v4 = vld [vmem:[%s5211_s2] ss:$0 sm:$0xff] }
 0x392   : > { %v2400_v40 = vrot.slane %v2398_v36, 1  ;;  %2600 = vst [vmem:[#allocation1 + $0x6] ss:$9 sm:$0xff] %v2397_v43  ;;  %v2403_v1 = vrot.slane %v2401_v30, 2 }
 0x393   : > { %1964 = vst.msk [vmem:[#allocation2 + $0x3c] sm:$0x7] %vm1949_vm0, %v1906_v41 }
 0x394   : > { %2602 = vst [vmem:[#allocation1 + $0x7] ss:$9 sm:$0xff] %v2400_v40 }
 0x395   : > { %v2104_v46 = vpop.permute.xlu1 %2103 }
 0x396   : > { %v2006_v50 = vpop.permute.xlu0 %2005  ;;  %2163 = vst.msk [vmem:[#allocation2 + $0x38] sm:$0xf] %vm2147_vm7, %v2104_v46 }
 0x397   : > { %2064 = vst.msk [vmem:[#allocation2 + $0x3c] sm:$0x7] %vm2049_vm1, %v2006_v50  ;;  %v2010_v45 = vpop.permute.xlu2 %2009 }
 0x398   : > { %2164 = vst.msk [vmem:[#allocation2 + $0x3c] sm:$0x7] %vm2149_vm2, %v2106_v32 }
 0x39b   : > { %v2603_v18 = vld [vmem:[#allocation1] sm:$0xff] }
 0x39c   : > { %2605 = vst [vmem:[#allocation1] ss:$9 sm:$0xff] %v2403_v1  ;;  %3367 = vmatmul.msk.bf16.gmra.mxu1 %vm2694_vm9, %v2603_v18 }
 0x39d   : > { %v2187_v39 = vld [vmem:[#allocation2 + $0x38] sm:$0xf]  ;;  %v1808_v17 = vpop.permute.xlu1 %1807 }
 0x39e   : > { %v2243_v56 = vrot.slane %v2187_v39, 3  ;;  %v1710_v12 = vpop.permute.xlu0 %1709  ;;  %1865 = vst.msk [vmem:[#allocation2 + $0x40] sm:$0xf] %vm1847_vm12, %v1808_v17 }
 0x39f   : > { %v2188_v2 = vld [vmem:[#allocation2 + $0x3c] sm:$0x7]  ;;  %1766 = vst.msk [vmem:[#allocation2 + $0x44] sm:$0x7] %vm1749_vm11, %v1710_v12  ;;  %v2110_v51 = vpop.permute.xlu2 %2109 }
 0x3a0   : > { %v2244_v35 = vrot.slane %v2188_v2, 3  ;;  %v2406_v37 = vsel %vm2253_vm4, %v2187_v39, %v2243_v56  ;;  %v2407_v6 = vsel %vm2257_vm5, %v2187_v39, %v2243_v56  ;;  %v2410_v60 = vsel %vm2261_vm6, %v2187_v39, %v2243_v56  ;;  %1866 = vst.msk [vmem:[#allocation2 + $0x44] sm:$0x7] %vm1849_vm14, %v1810_v48  ;;  %v4921_v52 = vpop.f32.mrf.mxu0 }
 0x3a1   : > { %v2409_v33 = vrot.slane %v2407_v6, 1  ;;  %v2413_v42 = vsel %vm2265_vm8, %v2187_v39, %v2243_v56  ;;  %2606 = vst [vmem:[#allocation1 + $0x1] ss:$9 sm:$0xff] %v2406_v37  ;;  %v2412_v58 = vrot.slane %v2410_v60, 2 }
 0x3a2   : > { %v2418_v44 = vsel %vm2253_vm4, %v2188_v2, %v2244_v35  ;;  %v2419_v47 = vsel %vm2257_vm5, %v2188_v2, %v2244_v35  ;;  %v2422_v49 = vsel %vm2261_vm6, %v2188_v2, %v2244_v35  ;;  %1966 = vst.msk [vmem:[#allocation2 + $0x44] sm:$0x7] %vm1949_vm0, %v1910_v38  ;;  %v2415_v63 = vrot.slane %v2413_v42, 3 }
 0x3a3   : > { %v2421_v23 = vrot.slane %v2419_v47, 1  ;;  %v2424_v55 = vrot.slane %v2422_v49, 2  ;;  %2613 = vst [vmem:[#allocation1 + $0x5] ss:$9 sm:$0xff] %v2418_v44 }
 0x3a4   : > { %2608 = vst [vmem:[#allocation1 + $0x2] ss:$9 sm:$0xff] %v2409_v33 }
 0x3a5   : > { %2615 = vst [vmem:[#allocation1 + $0x6] ss:$9 sm:$0xff] %v2421_v23  ;;  %v1908_v61 = vpop.permute.xlu1 %1907 }
 0x3a6   : > { %2617 = vst [vmem:[#allocation1 + $0x7] ss:$9 sm:$0xff] %v2424_v55  ;;  %v1712_v19 = vpop.permute.xlu0 %1711 }
 0x3a7   : > { %2610 = vst [vmem:[#allocation1 + $0x3] ss:$9 sm:$0xff] %v2412_v58  ;;  %v1714_v31 = vpop.permute.xlu2 %1713 }
 0x3a8   : > { %2612 = vst [vmem:[#allocation1 + $0x4] ss:$9 sm:$0xff] %v2415_v63  ;;  %v4929_v13 = vpop.f32.mrf.mxu0 }
 0x3a9   : > { %1767 = vst.msk [vmem:[#allocation2 + $0x48] sm:$0xf] %vm1747_vm10, %v1712_v19  ;;  %v2809_v57 = vrot.slane %v4929_v13, 4  ;;  %v2810_v36 = vrot.slane %v4929_v13, 6 }
 0x3aa   : > { %1965 = vst.msk [vmem:[#allocation2 + $0x40] sm:$0xf] %vm1947_vm13, %v1908_v61 }
 0x3ab   : > { %v2932_v25 = vadd.f32 %v2809_v57, %v4921_v52  ;;  %2066 = vst.msk [vmem:[#allocation2 + $0x44] sm:$0x7] %vm2049_vm1, %v2010_v45 }
 0x3ac   : > { %2166 = vst.msk [vmem:[#allocation2 + $0x44] sm:$0x7] %vm2149_vm2, %v2110_v51 }
 0x3ad   : > { %v2947_v26 = vadd.f32 %v4937_v4, %v2932_v25  ;;  %v2008_v28 = vpop.permute.xlu1 %2007  ;;  %1768 = vst.msk [vmem:[#allocation2 + $0x4c] sm:$0x7] %vm1749_vm11, %v1714_v31 }
 0x3ae   : > { %v1812_v59 = vpop.permute.xlu0 %1811  ;;  %2065 = vst.msk [vmem:[#allocation2 + $0x40] sm:$0xf] %vm2047_vm3, %v2008_v28 }
 0x3af   : > { %v2618_v3 = vld [vmem:[#allocation1] sm:$0xff]  ;;  %2959 = vst [vmem:[%s4944_s12] sm:$0x3] %v2947_v26  ;;  %v1816_v21 = vpop.permute.xlu2 %1815 }
 0x3b0   : > { %3368 = vmatmul.msk.bf16.vlgmr.msra.gmra.mxu2 %vm2694_vm9, %v2618_v3  ;;  %1867 = vst.msk [vmem:[#allocation2 + $0x48] sm:$0xf] %vm1847_vm12, %v1812_v59 }
 0x3b3   : > { %v2190_v32 = vld [vmem:[#allocation2 + $0x44] sm:$0x7] }
 0x3b4   : > { %v2246_v24 = vrot.slane %v2190_v32, 3 }
 0x3b5   : > { %v2108_v8 = vpop.permute.xlu1 %2107 }
 0x3b6   : > { %v1912_v11 = vpop.permute.xlu0 %1911  ;;  %v2439_v7 = vsel %vm2253_vm4, %v2190_v32, %v2246_v24  ;;  %v2440_v20 = vsel %vm2257_vm5, %v2190_v32, %v2246_v24  ;;  %v2443_v16 = vsel %vm2261_vm6, %v2190_v32, %v2246_v24  ;;  %2165 = vst.msk [vmem:[#allocation2 + $0x40] sm:$0xf] %vm2147_vm7, %v2108_v8 }
 0x3b7   : > { %1967 = vst.msk [vmem:[#allocation2 + $0x48] sm:$0xf] %vm1947_vm13, %v1912_v11  ;;  %v2442_v9 = vrot.slane %v2440_v20, 1  ;;  %v2445_v15 = vrot.slane %v2443_v16, 2  ;;  %v2014_v46 = vpop.permute.xlu2 %2013 }
 0x3b8   : > { %2626 = vst [vmem:[#allocation1 + $0x4] ss:$9 sm:$0xff] %v2439_v7 }
 0x3b9   : > { %2628 = vst [vmem:[#allocation1 + $0x5] ss:$9 sm:$0xff] %v2442_v9  ;;  %v4958_v22 = vpop.f32.mrf.mxu0 }
 0x3ba   : > { %2630 = vst [vmem:[#allocation1 + $0x6] ss:$9 sm:$0xff] %v2445_v15 }
 0x3bd   : > { %v2189_v29 = vld [vmem:[#allocation2 + $0x40] sm:$0xf]  ;;  %v2112_v54 = vpop.permute.xlu1 %2111 }
 0x3be   : > { %v2245_v5 = vrot.slane %v2189_v29, 3  ;;  %v2012_v34 = vpop.permute.xlu0 %2011 }
 0x3bf   : > { %2067 = vst.msk [vmem:[#allocation2 + $0x48] sm:$0xf] %vm2047_vm3, %v2012_v34  ;;  %v2116_v35 = vpop.permute.xlu2 %2115 }
 0x3c0   : > { %v2427_v14 = vsel %vm2253_vm4, %v2189_v29, %v2245_v5  ;;  %v2428_v53 = vsel %vm2257_vm5, %v2189_v29, %v2245_v5  ;;  %v2431_v48 = vsel %vm2261_vm6, %v2189_v29, %v2245_v5  ;;  %v2434_v41 = vsel %vm2265_vm8, %v2189_v29, %v2245_v5  ;;  %2167 = vst.msk [vmem:[#allocation2 + $0x48] sm:$0xf] %vm2147_vm7, %v2112_v54 }
 0x3c1   : > { %v2430_v62 = vrot.slane %v2428_v53, 1  ;;  %v2433_v10 = vrot.slane %v2431_v48, 2  ;;  %v2436_v27 = vrot.slane %v2434_v41, 3  ;;  %2619 = vst [vmem:[#allocation1] ss:$9 sm:$0xff] %v2427_v14  ;;  %v4966_v43 = vpop.f32.mrf.mxu0 }
 0x3c2   : > { %v2814_v40 = vrot.slane %v4966_v43, 2  ;;  %v2815_v44 = vrot.slane %v4966_v43, 4 }
 0x3c3   : > { %2621 = vst [vmem:[#allocation1 + $0x1] ss:$9 sm:$0xff] %v2430_v62 }
 0x3c4   : > { %2623 = vst [vmem:[#allocation1 + $0x2] ss:$9 sm:$0xff] %v2433_v10  ;;  %v2933_v0 = vadd.f32 %v2814_v40, %v2810_v36 }
 0x3c5   : > { %2625 = vst [vmem:[#allocation1 + $0x3] ss:$9 sm:$0xff] %v2436_v27  ;;  %v1814_v38 = vpop.permute.xlu1 %1813 }
 0x3c6   : > { %v2948_v50 = vadd.f32 %v4937_v4, %v2933_v0  ;;  %v1716_v30 = vpop.permute.xlu0 %1715  ;;  %1868 = vst.msk [vmem:[#allocation2 + $0x4c] sm:$0x7] %vm1849_vm14, %v1814_v38 }
 0x3c7   : > { %v2191_v1 = vld [vmem:[#allocation2 + $0x48] sm:$0xf]  ;;  %1769 = vst.msk [vmem:[#allocation2 + $0x50] sm:$0xf] %vm1747_vm10, %v1716_v30  ;;  %v1818_v63 = vpop.permute.xlu2 %1817 }
 0x3c8   : > { %v2247_v18 = vrot.slane %v2191_v1, 3  ;;  %2960 = vst [vmem:[%s4944_s12 + $0x10] sm:$0x3] %v2948_v50 }
 0x3c9   : > { %1869 = vst.msk [vmem:[#allocation2 + $0x50] sm:$0xf] %vm1847_vm12, %v1816_v21 }
 0x3ca   : > { %v2448_v39 = vsel %vm2253_vm4, %v2191_v1, %v2247_v18  ;;  %v2449_v56 = vsel %vm2257_vm5, %v2191_v1, %v2247_v18  ;;  %v2452_v2 = vsel %vm2261_vm6, %v2191_v1, %v2247_v18  ;;  %v2455_v37 = vsel %vm2265_vm8, %v2191_v1, %v2247_v18 }
 0x3cb   : > { %2631 = vst [vmem:[#allocation1 + $0x7] ss:$9 sm:$0xff] %v2448_v39  ;;  %v2451_v6 = vrot.slane %v2449_v56, 1  ;;  %v2454_v60 = vrot.slane %v2452_v2, 2  ;;  %v2457_v42 = vrot.slane %v2455_v37, 3 }
 0x3cc   : > { %v4976_v17 = vpop.f32.mrf.mxu0 }
 0x3cd   : > { %v1916_v45 = vpop.permute.xlu1 %1915 }
 0x3ce   : > { %v1914_v12 = vpop.permute.xlu0 %1913  ;;  %1969 = vst.msk [vmem:[#allocation2 + $0x50] sm:$0xf] %vm1947_vm13, %v1916_v45 }
 0x3cf   : > { %1968 = vst.msk [vmem:[#allocation2 + $0x4c] sm:$0x7] %vm1949_vm0, %v1914_v12  ;;  %v1920_v7 = vpop.permute.xlu2 %1919 }
 0x3d0   : > { %2068 = vst.msk [vmem:[#allocation2 + $0x4c] sm:$0x7] %vm2049_vm1, %v2014_v46 }
 0x3d2   : > { %v2632_v33 = vld [vmem:[#allocation1] sm:$0xff] }
 0x3d3   : > { %2634 = vst [vmem:[#allocation1] ss:$9 sm:$0xff] %v2451_v6  ;;  %3369 = vmatmul.msk.bf16.gmra.mxu2 %vm2694_vm9, %v2632_v33 }
 0x3d4   : > { %2636 = vst [vmem:[#allocation1 + $0x1] ss:$9 sm:$0xff] %v2454_v60  ;;  %v4986_v47 = vpop.f32.mrf.mxu0 }
 0x3d5   : > { %2638 = vst [vmem:[#allocation1 + $0x2] ss:$9 sm:$0xff] %v2457_v42  ;;  %v2934_v49 = vadd.f32 %v2815_v44, %v4986_v47  ;;  %v2114_v23 = vpop.permute.xlu1 %2113  ;;  %v2820_v9 = vrot.slane %v4986_v47, 2 }
 0x3d6   : > { %v2016_v55 = vpop.permute.xlu0 %2015  ;;  %2168 = vst.msk [vmem:[#allocation2 + $0x4c] sm:$0x7] %vm2149_vm2, %v2114_v23 }
 0x3d7   : > { %v2949_v58 = vadd.f32 %v4937_v4, %v2934_v49  ;;  %2069 = vst.msk [vmem:[#allocation2 + $0x50] sm:$0xf] %vm2047_vm3, %v2016_v55  ;;  %v2118_v62 = vpop.permute.xlu2 %2117 }
 0x3d8   : > { %2169 = vst.msk [vmem:[#allocation2 + $0x50] sm:$0xf] %vm2147_vm7, %v2116_v35 }
 0x3d9   : > { %2961 = vst [vmem:[%s4944_s12 + $0x20] sm:$0x3] %v2949_v58 }
 0x3dd   : > { %v2192_v61 = vld [vmem:[#allocation2 + $0x4c] sm:$0x7]  ;;  %v1720_v19 = vpop.permute.xlu1 %1719 }
 0x3de   : > { %v2248_v51 = vrot.slane %v2192_v61, 3  ;;  %v1718_v57 = vpop.permute.xlu0 %1717  ;;  %1771 = vst.msk [vmem:[#allocation2 + $0x58] sm:$0xf] %vm1747_vm10, %v1720_v19 }
 0x3df   : > { %v2193_v25 = vld [vmem:[#allocation2 + $0x50] sm:$0xf]  ;;  %1770 = vst.msk [vmem:[#allocation2 + $0x54] sm:$0x7] %vm1749_vm11, %v1718_v57  ;;  %v1822_v40 = vpop.permute.xlu2 %1821  ;;  %v2808_v57 = vrot.slane %v4929_v13, 2 }
 0x3e0   : > { %v2249_v26 = vrot.slane %v2193_v25, 3  ;;  %v2460_v28 = vsel %vm2253_vm4, %v2192_v61, %v2248_v51  ;;  %v2461_v59 = vsel %vm2257_vm5, %v2192_v61, %v2248_v51  ;;  %v2464_v3 = vsel %vm2261_vm6, %v2192_v61, %v2248_v51  ;;  %1870 = vst.msk [vmem:[#allocation2 + $0x54] sm:$0x7] %vm1849_vm14, %v1818_v63 }
 0x3e1   : > { %v2463_v31 = vrot.slane %v2461_v59, 1  ;;  %2639 = vst [vmem:[#allocation1 + $0x3] ss:$9 sm:$0xff] %v2460_v28  ;;  %v2466_v8 = vrot.slane %v2464_v3, 2 }
 0x3e2   : > { %v2469_v32 = vsel %vm2253_vm4, %v2193_v25, %v2249_v26  ;;  %v2470_v24 = vsel %vm2257_vm5, %v2193_v25, %v2249_v26  ;;  %v2473_v54 = vsel %vm2261_vm6, %v2193_v25, %v2249_v26  ;;  %v2476_v5 = vsel %vm2265_vm8, %v2193_v25, %v2249_v26 }
 0x3e3   : > { %v2472_v11 = vrot.slane %v2470_v24, 1  ;;  %2644 = vst [vmem:[#allocation1 + $0x6] ss:$9 sm:$0xff] %v2469_v32  ;;  %v2475_v14 = vrot.slane %v2473_v54, 2  ;;  %v2478_v53 = vrot.slane %v2476_v5, 3  ;;  %v2981_v32 = vadd.f32 %v4937_v4, %v2808_v57 }
 0x3e4   : > { %2641 = vst [vmem:[#allocation1 + $0x4] ss:$9 sm:$0xff] %v2463_v31  ;;  %v2805_v24 = vrot.slane %v4921_v52, 2 }
 0x3e5   : > { %2646 = vst [vmem:[#allocation1 + $0x7] ss:$9 sm:$0xff] %v2472_v11  ;;  %v5002_v20 = vpop.f32.mrf.mxu1  ;;  %v1918_v16 = vpop.permute.xlu1 %1917  ;;  %v5049_v11 = vrot.slane %v4937_v4, 2 }
 0x3e6   : > { %2643 = vst [vmem:[#allocation1 + $0x5] ss:$9 sm:$0xff] %v2466_v8  ;;  %v2825_v15 = vrot.slane %v5002_v20, 6  ;;  %v1820_v21 = vpop.permute.xlu0 %1819  ;;  %v2806_v8 = vrot.slane %v4921_v52, 4 }
 0x3e7   : > { %1871 = vst.msk [vmem:[#allocation2 + $0x58] sm:$0xf] %vm1847_vm12, %v1820_v21  ;;  %v2122_v42 = vpop.permute.xlu2 %2121  ;;  %v2977_v21 = vadd.f32 %v4937_v4, %v2805_v24 }
 0x3e8   : > { %v2935_v29 = vadd.f32 %v2825_v15, %v2820_v9  ;;  %1970 = vst.msk [vmem:[#allocation2 + $0x54] sm:$0x7] %vm1949_vm0, %v1918_v16  ;;  %v5053_v16 = vrot.slane %v4937_v4, 4  ;;  %v5056_v9 = vrot.slane %v4937_v4, 6  ;;  %v2978_v5 = vadd.f32 %v5049_v11, %v2806_v8 }
 0x3e9   : > { %1971 = vst.msk [vmem:[#allocation2 + $0x58] sm:$0xf] %vm1947_vm13, %v1920_v7  ;;  %v2807_v7 = vrot.slane %v4921_v52, 6 }
 0x3ea   : > { %v2950_v34 = vadd.f32 %v4937_v4, %v2935_v29 }
 0x3eb   : > { %v2979_v52 = vadd.f32 %v5053_v16, %v2807_v7 }
 0x3ec   : > { %2962 = vst [vmem:[%s4944_s12 + $0x30] sm:$0x3] %v2950_v34 }
 0x3ed   : > { %v2647_v48 = vld [vmem:[#allocation1] sm:$0xff]  ;;  %v2020_v41 = vpop.permute.xlu1 %2019  ;;  %v5023_v39 = vpop.f32.mrf.mxu1 }
 0x3ee   : > { %2649 = vst [vmem:[#allocation1] ss:$9 sm:$0xff] %v2475_v14  ;;  %3370 = vmatmul.msk.bf16.gmra.mxu2 %vm2694_vm9, %v2647_v48  ;;  %v2018_v10 = vpop.permute.xlu0 %2017  ;;  %v2826_v8 = vrot.slane %v5023_v39, 2  ;;  %v2828_v7 = vrot.slane %v5023_v39, 6 }
 0x3ef   : > { %2651 = vst [vmem:[#allocation1 + $0x1] ss:$9 sm:$0xff] %v2478_v53  ;;  %v2980_v53 = vadd.f32 %v5056_v9, %v4929_v13  ;;  %v2813_v13 = vrot.slane %v4958_v22, 6 }
 0x3f0   : > { %2070 = vst.msk [vmem:[#allocation2 + $0x54] sm:$0x7] %vm2049_vm1, %v2018_v10  ;;  %v2811_v10 = vrot.slane %v4958_v22, 2 }
 0x3f1   : > { %2071 = vst.msk [vmem:[#allocation2 + $0x58] sm:$0xf] %vm2047_vm3, %v2020_v41  ;;  %v2986_v41 = vadd.f32 %v4937_v4, %v4966_v43 }
 0x3f2   : > { %2170 = vst.msk [vmem:[#allocation2 + $0x54] sm:$0x7] %vm2149_vm2, %v2118_v62 }
 0x3f5   : > { %v1722_v27 = vpop.permute.xlu1 %1721 }
 0x3f6   : > { %v2120_v36 = vpop.permute.xlu0 %2119  ;;  %1772 = vst.msk [vmem:[#allocation2 + $0x5c] sm:$0x7] %vm1749_vm11, %v1722_v27  ;;  %v2812_v27 = vrot.slane %v4958_v22, 4 }
 0x3f7   : > { %2171 = vst.msk [vmem:[#allocation2 + $0x58] sm:$0xf] %vm2147_vm7, %v2120_v36  ;;  %v2982_v36 = vadd.f32 %v4937_v4, %v4958_v22  ;;  %v2817_v22 = vrot.slane %v4976_v17, 2 }
 0x3f8   : > { %1872 = vst.msk [vmem:[#allocation2 + $0x5c] sm:$0x7] %vm1849_vm14, %v1822_v40  ;;  %v2819_v40 = vrot.slane %v4976_v17, 6 }
 0x3f9   : > { %v2194_v0 = vld [vmem:[#allocation2 + $0x54] sm:$0x7] }
 0x3fa   : > { %v2250_v38 = vrot.slane %v2194_v0, 3 }
 0x3fc   : > { %v2481_v46 = vsel %vm2253_vm4, %v2194_v0, %v2250_v38  ;;  %v2482_v50 = vsel %vm2257_vm5, %v2194_v0, %v2250_v38  ;;  %v2485_v30 = vsel %vm2261_vm6, %v2194_v0, %v2250_v38  ;;  %v2983_v0 = vadd.f32 %v5049_v11, %v2811_v10 }
 0x3fd   : > { %v2484_v1 = vrot.slane %v2482_v50, 1  ;;  %v2487_v18 = vrot.slane %v2485_v30, 2  ;;  %2652 = vst [vmem:[#allocation1 + $0x2] ss:$9 sm:$0xff] %v2481_v46  ;;  %v2022_v2 = vpop.permute.xlu1 %2021  ;;  %v2984_v46 = vadd.f32 %v5053_v16, %v2812_v27  ;;  %v2985_v50 = vadd.f32 %v5056_v9, %v2813_v13 }
 0x3fe   : > { %v2195_v45 = vld [vmem:[#allocation2 + $0x58] sm:$0xf]  ;;  %v1922_v56 = vpop.permute.xlu0 %1921 }
 0x3ff   : > { %2654 = vst [vmem:[#allocation1 + $0x3] ss:$9 sm:$0xff] %v2484_v1  ;;  %v2251_v12 = vrot.slane %v2195_v45, 3  ;;  %v2991_v1 = vadd.f32 %v4937_v4, %v2819_v40 }
 0x400   : > { %2656 = vst [vmem:[#allocation1 + $0x4] ss:$9 sm:$0xff] %v2487_v18  ;;  %v2816_v18 = vrot.slane %v4966_v43, 6 }
 0x401   : > { %v2490_v35 = vsel %vm2253_vm4, %v2195_v45, %v2251_v12  ;;  %v2491_v37 = vsel %vm2257_vm5, %v2195_v45, %v2251_v12  ;;  %v2494_v6 = vsel %vm2261_vm6, %v2195_v45, %v2251_v12  ;;  %1972 = vst.msk [vmem:[#allocation2 + $0x5c] sm:$0x7] %vm1949_vm0, %v1922_v56  ;;  %v2497_v23 = vsel %vm2265_vm8, %v2195_v45, %v2251_v12 }
 0x402   : > { %v2493_v60 = vrot.slane %v2491_v37, 1  ;;  %v2496_v33 = vrot.slane %v2494_v6, 2  ;;  %2657 = vst [vmem:[#allocation1 + $0x5] ss:$9 sm:$0xff] %v2490_v35  ;;  %v2499_v58 = vrot.slane %v2497_v23, 3  ;;  %v2818_v45 = vrot.slane %v4976_v17, 4 }
 0x403   : > { %2072 = vst.msk [vmem:[#allocation2 + $0x5c] sm:$0x7] %vm2049_vm1, %v2022_v2  ;;  %v2987_v56 = vadd.f32 %v4937_v4, %v2816_v18  ;;  %v2824_v12 = vrot.slane %v5002_v20, 4  ;;  %v2988_v2 = vadd.f32 %v5049_v11, %v4976_v17  ;;  %v2989_v37 = vadd.f32 %v5053_v16, %v2817_v22 }
 0x404   : > { %2659 = vst [vmem:[#allocation1 + $0x6] ss:$9 sm:$0xff] %v2493_v60  ;;  %v2990_v6 = vadd.f32 %v5056_v9, %v2818_v45  ;;  %v2821_v23 = vrot.slane %v4986_v47, 4 }
 0x405   : > { %2661 = vst [vmem:[#allocation1 + $0x7] ss:$9 sm:$0xff] %v2496_v33 }
 0x406   : > { %2172 = vst.msk [vmem:[#allocation2 + $0x5c] sm:$0x7] %vm2149_vm2, %v2122_v42  ;;  %v5031_v44 = vpop.f32.mrf.mxu1  ;;  %v2996_v42 = vadd.f32 %v4937_v4, %v2824_v12 }
 0x407   : > { %v2830_v49 = vrot.slane %v5031_v44, 4  ;;  %v2831_v29 = vrot.slane %v5031_v44, 6 }
 0x409   : > { %v2936_v55 = vadd.f32 %v2830_v49, %v5023_v39 }
 0x40b   : > { %v2951_v63 = vadd.f32 %v4937_v4, %v2936_v55  ;;  %v2822_v55 = vrot.slane %v4986_v47, 6  ;;  %v2994_v47 = vadd.f32 %v5053_v16, %v5002_v20 }
 0x40c   : > { %v2662_v61 = vld [vmem:[#allocation1] sm:$0xff] }
 0x40d   : > { %v2196_v19 = vld [vmem:[#allocation2 + $0x5c] sm:$0x7]  ;;  %2664 = vst [vmem:[#allocation1] ss:$9 sm:$0xff] %v2499_v58  ;;  %3371 = vmatmul.msk.bf16.vlgmr.msra.gmra.mxu3 %vm2694_vm9, %v2662_v61  ;;  %v2823_v58 = vrot.slane %v5002_v20, 2  ;;  %v2829_v61 = vrot.slane %v5031_v44, 2 }
 0x40e   : > { %v2252_v51 = vrot.slane %v2196_v19, 3  ;;  %2963 = vst [vmem:[%s4944_s12 + $0x40] sm:$0x3] %v2951_v63  ;;  %v5043_v31 = vpop.f32.mrf.mxu1  ;;  %v2992_v63 = vadd.f32 %v4937_v4, %v2821_v23  ;;  %v2827_v20 = vrot.slane %v5023_v39, 4 }
 0x410   : > { %v2502_v25 = vsel %vm2253_vm4, %v2196_v19, %v2252_v51  ;;  %v2503_v26 = vsel %vm2257_vm5, %v2196_v19, %v2252_v51  ;;  %v2506_v28 = vsel %vm2261_vm6, %v2196_v19, %v2252_v51  ;;  %v2993_v51 = vadd.f32 %v5049_v11, %v2822_v55 }
 0x411   : > { %v2505_v59 = vrot.slane %v2503_v26, 1  ;;  %v2508_v3 = vrot.slane %v2506_v28, 2  ;;  %2665 = vst [vmem:[#allocation1 + $0x1] ss:$9 sm:$0xff] %v2502_v25  ;;  %v2995_v28 = vadd.f32 %v5056_v9, %v2823_v58 }
 0x413   : > { %2667 = vst [vmem:[#allocation1 + $0x2] ss:$9 sm:$0xff] %v2505_v59 }
 0x414   : > { %2669 = vst [vmem:[#allocation1 + $0x3] ss:$9 sm:$0xff] %v2508_v3 }
 0x415   : > { %3105 = vst [vmem:[#allocation1 + $0x20] ss:$4 sm:$0xff] %v2981_v32  ;;  %v3001_v32 = vadd.f32 %v4937_v4, %v2829_v61 }
 0x419   : > { %v5058_v15 = vpop.f32.mrf.mxu1 }
 0x41a   : > { %v2835_v54 = vrot.slane %v5058_v15, 2  ;;  %v2836_v43 = vrot.slane %v5058_v15, 4  ;;  %v3006_v39 = vadd.f32 %v4937_v4, %v5058_v15 }
 0x41b   : > { %v2670_v34 = vld [vmem:[#allocation1] sm:$0xff] }
 0x41c   : > { %3097 = vst [vmem:[#allocation1] ss:$4 sm:$0xff] %v2977_v21  ;;  %v2937_v14 = vadd.f32 %v2835_v54, %v2831_v29  ;;  %v3107_v48 = vld.sshfl [vmem:[#allocation1 + $0x20] sm:$0xff pattern:$0x73625140]  ;;  %v2997_v21 = vadd.f32 %v4937_v4, %v2826_v8  ;;  %v2998_v29 = vadd.f32 %v5049_v11, %v2827_v20 }
 0x41d   : > { %3099 = vst [vmem:[#allocation1 + $0x1] ss:$4 sm:$0xff] %v2978_v5  ;;  %3372 = vmatmul.msk.bf16.gmra.mxu3 %vm2694_vm9, %v2670_v34  ;;  %v2999_v5 = vadd.f32 %v5053_v16, %v2828_v7  ;;  %v3000_v34 = vadd.f32 %v5056_v9, %v5031_v44 }
 0x41e   : > { %3101 = vst [vmem:[#allocation1 + $0x2] ss:$4 sm:$0xff] %v2979_v52  ;;  %v2952_v62 = vadd.f32 %v4937_v4, %v2937_v14  ;;  %v2832_v14 = vrot.slane %v5043_v31, 2 }
 0x41f   : > { %3103 = vst [vmem:[#allocation1 + $0x3] ss:$4 sm:$0xff] %v2980_v53 }
 0x420   : > { %3112 = vst [vmem:[#allocation1 + $0x20] ss:$4 sm:$0xff] %v2986_v41  ;;  %v2834_v41 = vrot.slane %v5043_v31, 6  ;;  %v3003_v27 = vadd.f32 %v5049_v11, %v2832_v14 }
 0x421   : > { %3210 = vst [vmem:[%s4944_s12 + $0xa] sm:$0x3] %v3107_v48  ;;  %v2757_v53 = vpop.f32.mrf.mxu1  ;;  %v2833_v48 = vrot.slane %v5043_v31, 4 }
 0x422   : > { %2964 = vst [vmem:[%s4944_s12 + $0x50] sm:$0x3] %v2952_v62  ;;  %v3002_v62 = vadd.f32 %v4937_v4, %v5043_v31  ;;  %v2840_v10 = vrot.slane %v2757_v53, 6  ;;  %v2837_v31 = vrot.slane %v5058_v15, 6  ;;  %v3008_v22 = vadd.f32 %v5049_v11, %v2757_v53 }
 0x423   : > { %v3004_v13 = vadd.f32 %v5053_v16, %v2833_v48 }
 0x426   : > { %v3106_v38 = vld.sshfl [vmem:[#allocation1] sm:$0xff pattern:$0x73625140] }
 0x427   : > { %3108 = vst [vmem:[#allocation1] ss:$4 sm:$0xff] %v2982_v36  ;;  %v3114_v30 = vld.sshfl [vmem:[#allocation1 + $0x20] sm:$0xff pattern:$0x73625140]  ;;  %v3005_v36 = vadd.f32 %v5056_v9, %v2834_v41 }
 0x428   : > { %3109 = vst [vmem:[#allocation1 + $0x1] ss:$4 sm:$0xff] %v2983_v0  ;;  %v3011_v0 = vadd.f32 %v4937_v4, %v2840_v10 }
 0x429   : > { %3110 = vst [vmem:[#allocation1 + $0x2] ss:$4 sm:$0xff] %v2984_v46  ;;  %v2838_v46 = vrot.slane %v2757_v53, 2 }
 0x42a   : > { %3111 = vst [vmem:[#allocation1 + $0x3] ss:$4 sm:$0xff] %v2985_v50  ;;  %v2839_v50 = vrot.slane %v2757_v53, 4 }
 0x42b   : > { %3119 = vst [vmem:[#allocation1 + $0x20] ss:$4 sm:$0xff] %v2991_v1  ;;  %v3007_v1 = vadd.f32 %v4937_v4, %v2837_v31 }
 0x42c   : > { %3209 = vst [vmem:[%s4944_s12 + $0x2] sm:$0xff] %v3106_v38 }
 0x42d   : > { %3212 = vst [vmem:[%s4944_s12 + $0x1a] sm:$0x3] %v3114_v30 }
 0x431   : > { %v3113_v35 = vld.sshfl [vmem:[#allocation1] sm:$0xff pattern:$0x73625140] }
 0x432   : > { %3115 = vst [vmem:[#allocation1] ss:$4 sm:$0xff] %v2987_v56  ;;  %v3121_v60 = vld.sshfl [vmem:[#allocation1 + $0x20] sm:$0xff pattern:$0x73625140]  ;;  %v3009_v56 = vadd.f32 %v5053_v16, %v2838_v46 }
 0x433   : > { %3116 = vst [vmem:[#allocation1 + $0x1] ss:$4 sm:$0xff] %v2988_v2  ;;  %v5095_v33 = vpop.f32.mrf.mxu2  ;;  %v3010_v2 = vadd.f32 %v5056_v9, %v2839_v50 }
 0x434   : > { %3117 = vst [vmem:[#allocation1 + $0x2] ss:$4 sm:$0xff] %v2989_v37  ;;  %v2938_v17 = vadd.f32 %v2836_v43, %v5095_v33  ;;  %v2841_v25 = vrot.slane %v5095_v33, 2 }
 0x435   : > { %3118 = vst [vmem:[#allocation1 + $0x3] ss:$4 sm:$0xff] %v2990_v6  ;;  %v2842_v6 = vrot.slane %v5095_v33, 4 }
 0x436   : > { %3126 = vst [vmem:[#allocation1 + $0x20] ss:$4 sm:$0xff] %v2996_v42  ;;  %v2953_v49 = vadd.f32 %v4937_v4, %v2938_v17 }
 0x437   : > { %3211 = vst [vmem:[%s4944_s12 + $0x12] sm:$0xff] %v3113_v35  ;;  %v3012_v23 = vadd.f32 %v4937_v4, %v2842_v6 }
 0x438   : > { %3214 = vst [vmem:[%s4944_s12 + $0x2a] sm:$0x3] %v3121_v60  ;;  %v2843_v60 = vrot.slane %v5095_v33, 6 }
 0x439   : > { %2965 = vst [vmem:[%s4944_s12 + $0x60] sm:$0x3] %v2953_v49 }
 0x43a   : > { %v3013_v55 = vadd.f32 %v5049_v11, %v2843_v60 }
 0x43b   : > { %v5108_v19 = vpop.f32.mrf.mxu2 }
 0x43c   : > { %v3120_v57 = vld.sshfl [vmem:[#allocation1] sm:$0xff pattern:$0x73625140]  ;;  %v2846_v26 = vrot.slane %v5108_v19, 6  ;;  %v2845_v18 = vrot.slane %v5108_v19, 4  ;;  %v2844_v42 = vrot.slane %v5108_v19, 2  ;;  %v3014_v58 = vadd.f32 %v5053_v16, %v5108_v19 }
 0x43d   : > { %3122 = vst [vmem:[#allocation1] ss:$4 sm:$0xff] %v2992_v63  ;;  %v3128_v59 = vld.sshfl [vmem:[#allocation1 + $0x20] sm:$0xff pattern:$0x73625140] }
 0x43e   : > { %3123 = vst [vmem:[#allocation1 + $0x1] ss:$4 sm:$0xff] %v2993_v51  ;;  %v2939_v3 = vadd.f32 %v2846_v26, %v2841_v25  ;;  %v3016_v35 = vadd.f32 %v4937_v4, %v2845_v18  ;;  %v3015_v63 = vadd.f32 %v5056_v9, %v2844_v42 }
 0x43f   : > { %3124 = vst [vmem:[#allocation1 + $0x2] ss:$4 sm:$0xff] %v2994_v47 }
 0x440   : > { %3125 = vst [vmem:[#allocation1 + $0x3] ss:$4 sm:$0xff] %v2995_v28  ;;  %v2954_v24 = vadd.f32 %v4937_v4, %v2939_v3 }
 0x441   : > { %3133 = vst [vmem:[#allocation1 + $0x20] ss:$4 sm:$0xff] %v3001_v32 }
 0x442   : > { %3213 = vst [vmem:[%s4944_s12 + $0x22] sm:$0xff] %v3120_v57 }
 0x443   : > { %3216 = vst [vmem:[%s4944_s12 + $0x3a] sm:$0x3] %v3128_v59 }
 0x444   : > { %2966 = vst [vmem:[%s4944_s12 + $0x70] sm:$0x3] %v2954_v24 }
 0x447   : > { %v3127_v54 = vld.sshfl [vmem:[#allocation1] sm:$0xff pattern:$0x73625140] }
 0x448   : > { %3129 = vst [vmem:[#allocation1] ss:$4 sm:$0xff] %v2997_v21  ;;  %v3135_v52 = vld.sshfl [vmem:[#allocation1 + $0x20] sm:$0xff pattern:$0x73625140] }
 0x449   : > { %3130 = vst [vmem:[#allocation1 + $0x1] ss:$4 sm:$0xff] %v2998_v29 }
 0x44a   : > { %3131 = vst [vmem:[#allocation1 + $0x2] ss:$4 sm:$0xff] %v2999_v5 }
 0x44b   : > { %3132 = vst [vmem:[#allocation1 + $0x3] ss:$4 sm:$0xff] %v3000_v34 }
 0x44c   : > { %3215 = vst [vmem:[%s4944_s12 + $0x32] sm:$0xff] %v3127_v54 }
 0x44d   : > { %3140 = vst [vmem:[#allocation1 + $0x20] ss:$4 sm:$0xff] %v3006_v39 }
 0x44e   : > { %3218 = vst [vmem:[%s4944_s12 + $0x4a] sm:$0x3] %v3135_v52 }
 0x452   : > { %v3134_v44 = vld.sshfl [vmem:[#allocation1] sm:$0xff pattern:$0x73625140] }
 0x453   : > { %3217 = vst [vmem:[%s4944_s12 + $0x42] sm:$0xff] %v3134_v44 }
 0x454   : > { %3136 = vst [vmem:[#allocation1] ss:$4 sm:$0xff] %v3002_v62  ;;  %v3142_v40 = vld.sshfl [vmem:[#allocation1 + $0x20] sm:$0xff pattern:$0x73625140] }
 0x455   : > { %3137 = vst [vmem:[#allocation1 + $0x1] ss:$4 sm:$0xff] %v3003_v27 }
 0x456   : > { %3138 = vst [vmem:[#allocation1 + $0x2] ss:$4 sm:$0xff] %v3004_v13  ;;  %v2765_v38 = vpop.f32.mrf.mxu2 }
 0x457   : > { %3139 = vst [vmem:[#allocation1 + $0x3] ss:$4 sm:$0xff] %v3005_v36  ;;  %v2847_v51 = vrot.slane %v2765_v38, 2  ;;  %v2848_v57 = vrot.slane %v2765_v38, 4  ;;  %v2849_v26 = vrot.slane %v2765_v38, 6 }
 0x458   : > { %3147 = vst [vmem:[#allocation1 + $0x20] ss:$4 sm:$0xff] %v3011_v0 }
 0x459   : > { %3220 = vst [vmem:[%s4944_s12 + $0x5a] sm:$0x3] %v3142_v40  ;;  %v3017_v47 = vadd.f32 %v4937_v4, %v2847_v51  ;;  %v3018_v19 = vadd.f32 %v5049_v11, %v2848_v57  ;;  %v3019_v59 = vadd.f32 %v5053_v16, %v2849_v26 }
 0x45e   : > { %v3141_v30 = vld.sshfl [vmem:[#allocation1] sm:$0xff pattern:$0x73625140]  ;;  %v2767_v45 = vpop.f32.mrf.mxu2 }
 0x45f   : > { %3219 = vst [vmem:[%s4944_s12 + $0x52] sm:$0xff] %v3141_v30  ;;  %v2851_v12 = vrot.slane %v2767_v45, 4  ;;  %v3149_v15 = vld.sshfl [vmem:[#allocation1 + $0x20] sm:$0xff pattern:$0x73625140]  ;;  %v2850_v17 = vrot.slane %v2767_v45, 2  ;;  %v3020_v3 = vadd.f32 %v5056_v9, %v2767_v45 }
 0x460   : > { %3143 = vst [vmem:[#allocation1] ss:$4 sm:$0xff] %v3007_v1  ;;  %v2852_v8 = vrot.slane %v2767_v45, 6 }
 0x461   : > { %3144 = vst [vmem:[#allocation1 + $0x1] ss:$4 sm:$0xff] %v3008_v22  ;;  %v2940_v37 = vadd.f32 %v2851_v12, %v2765_v38  ;;  %v3021_v33 = vadd.f32 %v4937_v4, %v2850_v17 }
 0x462   : > { %3145 = vst [vmem:[#allocation1 + $0x2] ss:$4 sm:$0xff] %v3009_v56 }
 0x463   : > { %3146 = vst [vmem:[#allocation1 + $0x3] ss:$4 sm:$0xff] %v3010_v2  ;;  %v2955_v43 = vadd.f32 %v4937_v4, %v2940_v37 }
 0x464   : > { %3154 = vst [vmem:[#allocation1 + $0x20] ss:$4 sm:$0xff] %v3016_v35 }
 0x465   : > { %3222 = vst [vmem:[%s4944_s12 + $0x6a] sm:$0x3] %v3149_v15 }
 0x466   : > { %2967 = vst [vmem:[%s4944_s12 + $0x80] sm:$0x3] %v2955_v43 }
 0x46a   : > { %v3148_v49 = vld.sshfl [vmem:[#allocation1] sm:$0xff pattern:$0x73625140] }
 0x46b   : > { %3221 = vst [vmem:[%s4944_s12 + $0x62] sm:$0xff] %v3148_v49  ;;  %v3156_v61 = vld.sshfl [vmem:[#allocation1 + $0x20] sm:$0xff pattern:$0x73625140] }
 0x46c   : > { %3150 = vst [vmem:[#allocation1] ss:$4 sm:$0xff] %v3012_v23 }
 0x46d   : > { %3151 = vst [vmem:[#allocation1 + $0x1] ss:$4 sm:$0xff] %v3013_v55 }
 0x46e   : > { %3152 = vst [vmem:[#allocation1 + $0x2] ss:$4 sm:$0xff] %v3014_v58 }
 0x46f   : > { %3153 = vst [vmem:[#allocation1 + $0x3] ss:$4 sm:$0xff] %v3015_v63 }
 0x470   : > { %3224 = vst [vmem:[%s4944_s12 + $0x7a] sm:$0x3] %v3156_v61 }
 0x471   : > { %3161 = vst [vmem:[#allocation1 + $0x20] ss:$4 sm:$0xff] %v3021_v33  ;;  %v2770_v25 = vpop.f32.mrf.mxu2 }
 0x472   : > { %v2853_v29 = vrot.slane %v2770_v25, 2  ;;  %v2854_v54 = vrot.slane %v2770_v25, 4  ;;  %v2855_v34 = vrot.slane %v2770_v25, 6  ;;  %v3022_v52 = vadd.f32 %v4937_v4, %v2770_v25 }
 0x474   : > { %v3023_v39 = vadd.f32 %v5049_v11, %v2853_v29  ;;  %v3024_v53 = vadd.f32 %v5053_v16, %v2854_v54  ;;  %v3025_v48 = vadd.f32 %v5056_v9, %v2855_v34 }
 0x476   : > { %v3155_v28 = vld.sshfl [vmem:[#allocation1] sm:$0xff pattern:$0x73625140] }
 0x477   : > { %3223 = vst [vmem:[%s4944_s12 + $0x72] sm:$0xff] %v3155_v28 }
 0x478   : > { %3157 = vst [vmem:[#allocation1] ss:$4 sm:$0xff] %v3017_v47  ;;  %v3163_v32 = vld.sshfl [vmem:[#allocation1 + $0x20] sm:$0xff pattern:$0x73625140] }
 0x479   : > { %3158 = vst [vmem:[#allocation1 + $0x1] ss:$4 sm:$0xff] %v3018_v19  ;;  %v2772_v24 = vpop.f32.mrf.mxu2 }
 0x47a   : > { %3159 = vst [vmem:[#allocation1 + $0x2] ss:$4 sm:$0xff] %v3019_v59  ;;  %v2856_v20 = vrot.slane %v2772_v24, 2  ;;  %v3026_v7 = vadd.f32 %v4937_v4, %v2772_v24  ;;  %v2858_v44 = vrot.slane %v2772_v24, 6  ;;  %v2857_v50 = vrot.slane %v2772_v24, 4 }
 0x47b   : > { %3160 = vst [vmem:[#allocation1 + $0x3] ss:$4 sm:$0xff] %v3020_v3 }
 0x47c   : > { %3226 = vst [vmem:[%s4944_s12 + $0x8a] sm:$0x3] %v3163_v32  ;;  %v2941_v21 = vadd.f32 %v2856_v20, %v2852_v8  ;;  %v3027_v62 = vadd.f32 %v4937_v4, %v2858_v44 }
 0x47d   : > { %3168 = vst [vmem:[#allocation1 + $0x20] ss:$4 sm:$0xff] %v3026_v7 }
 0x47e   : > { %v2956_v5 = vadd.f32 %v4937_v4, %v2941_v21 }
 0x480   : > { %2968 = vst [vmem:[%s4944_s12 + $0x90] sm:$0x3] %v2956_v5 }
 0x482   : > { %v3162_v14 = vld.sshfl [vmem:[#allocation1] sm:$0xff pattern:$0x73625140] }
 0x483   : > { %3225 = vst [vmem:[%s4944_s12 + $0x82] sm:$0xff] %v3162_v14 }
 0x484   : > { %3164 = vst [vmem:[#allocation1] ss:$4 sm:$0xff] %v3022_v52  ;;  %v3170_v41 = vld.sshfl [vmem:[#allocation1 + $0x20] sm:$0xff pattern:$0x73625140] }
 0x485   : > { %3165 = vst [vmem:[#allocation1 + $0x1] ss:$4 sm:$0xff] %v3023_v39 }
 0x486   : > { %3166 = vst [vmem:[#allocation1 + $0x2] ss:$4 sm:$0xff] %v3024_v53 }
 0x487   : > { %3167 = vst [vmem:[#allocation1 + $0x3] ss:$4 sm:$0xff] %v3025_v48 }
 0x488   : > { %3228 = vst [vmem:[%s4944_s12 + $0x9a] sm:$0x3] %v3170_v41 }
 0x48e   : > { %v3169_v10 = vld.sshfl [vmem:[#allocation1] sm:$0xff pattern:$0x73625140] }
 0x48f   : > { %3227 = vst [vmem:[%s4944_s12 + $0x92] sm:$0xff] %v3169_v10 }
 0x490   : > { %3171 = vst [vmem:[#allocation1] ss:$4 sm:$0xff] %v3027_v62  ;;  %v2775_v27 = vpop.f32.mrf.mxu3 }
 0x491   : > { %v2859_v13 = vrot.slane %v2775_v27, 2  ;;  %v2860_v36 = vrot.slane %v2775_v27, 4  ;;  %v2861_v40 = vrot.slane %v2775_v27, 6  ;;  %v3028_v0 = vadd.f32 %v5049_v11, %v2775_v27 }
 0x493   : > { %v3029_v38 = vadd.f32 %v5053_v16, %v2859_v13  ;;  %v3030_v31 = vadd.f32 %v5056_v9, %v2860_v36  ;;  %v3031_v46 = vadd.f32 %v4937_v4, %v2861_v40  ;;  %3172 = vst [vmem:[#allocation1 + $0x1] ss:$4 sm:$0xff] %v3028_v0 }
 0x495   : > { %3173 = vst [vmem:[#allocation1 + $0x2] ss:$4 sm:$0xff] %v3029_v38 }
 0x496   : > { %3174 = vst [vmem:[#allocation1 + $0x3] ss:$4 sm:$0xff] %v3030_v31 }
 0x497   : > { %3175 = vst [vmem:[#allocation1 + $0x20] ss:$4 sm:$0xff] %v3031_v46 }
 0x498   : > { %v2777_v30 = vpop.f32.mrf.mxu3 }
 0x499   : > { %v2863_v1 = vrot.slane %v2777_v30, 4  ;;  %v2864_v18 = vrot.slane %v2777_v30, 6  ;;  %v2942_v22 = vadd.f32 %v2857_v50, %v2777_v30  ;;  %v2862_v35 = vrot.slane %v2777_v30, 2 }
 0x49b   : > { %v2957_v45 = vadd.f32 %v4937_v4, %v2942_v22  ;;  %v3032_v56 = vadd.f32 %v4937_v4, %v2863_v1  ;;  %v3033_v2 = vadd.f32 %v5049_v11, %v2864_v18 }
 0x49d   : > { %v3176_v12 = vld.sshfl [vmem:[#allocation1] sm:$0xff pattern:$0x73625140]  ;;  %2969 = vst [vmem:[%s4944_s12 + $0xa0] sm:$0x3] %v2957_v45 }
 0x49e   : > { %v3177_v15 = vld.sshfl [vmem:[#allocation1 + $0x20] sm:$0xff pattern:$0x73625140]  ;;  %3229 = vst [vmem:[%s4944_s12 + $0xa2] sm:$0xff] %v3176_v12 }
 0x49f   : > { %3230 = vst [vmem:[%s4944_s12 + $0xaa] sm:$0x3] %v3177_v15 }
 0x4a0   : > { %3178 = vst [vmem:[#allocation1] ss:$4 sm:$0xff] %v3032_v56  ;;  %v2780_v37 = vpop.f32.mrf.mxu3 }
 0x4a1   : > { %3179 = vst [vmem:[#allocation1 + $0x1] ss:$4 sm:$0xff] %v3033_v2  ;;  %v2865_v43 = vrot.slane %v2780_v37, 2  ;;  %v2866_v6 = vrot.slane %v2780_v37, 4  ;;  %v2867_v60 = vrot.slane %v2780_v37, 6  ;;  %v3034_v42 = vadd.f32 %v5053_v16, %v2780_v37 }
 0x4a3   : > { %v2943_v17 = vadd.f32 %v2867_v60, %v2862_v35  ;;  %v3035_v49 = vadd.f32 %v5056_v9, %v2865_v43  ;;  %v3036_v11 = vadd.f32 %v4937_v4, %v2866_v6  ;;  %3180 = vst [vmem:[#allocation1 + $0x2] ss:$4 sm:$0xff] %v3034_v42 }
 0x4a5   : > { %v2958_v23 = vadd.f32 %v4937_v4, %v2943_v17  ;;  %3181 = vst [vmem:[#allocation1 + $0x3] ss:$4 sm:$0xff] %v3035_v49 }
 0x4a6   : > { %3182 = vst [vmem:[#allocation1 + $0x20] ss:$4 sm:$0xff] %v3036_v11 }
 0x4a7   : > { %2970 = vst [vmem:[%s4944_s12 + $0xb0] sm:$0x3] %v2958_v23 }
 0x4a8   : > { %v2782_v55 = vpop.f32.mrf.mxu3 }
 0x4ac   : > { %v3183_v58 = vld.sshfl [vmem:[#allocation1] sm:$0xff pattern:$0x73625140] }
 0x4ad   : > { %v3184_v63 = vld.sshfl [vmem:[#allocation1 + $0x20] sm:$0xff pattern:$0x73625140]  ;;  %3231 = vst [vmem:[%s4944_s12 + $0xb2] sm:$0xff] %v3183_v58 }
 0x4ae   : > { %3232 = vst [vmem:[%s4944_s12 + $0xba] sm:$0x3] %v3184_v63 }
 0x4af PF: > { %s13_s14 = sadd.s32 1, %s3455_s14   ;;  %s5217_s12 = smov %s3451_s13 }
 0x4b0   : > { %p10_p5 = scmp.ge.s32.totalorder %s13_s14, 4   ;;  %s5218_s13 = smov %s5220_s15 }
 0x4b2   :  { %12 = sbr.rel (!%p10_p5) target bundleno = 2 (0x2), region = 74 }

</bundles_post_ra>
